<compile_context>
chip_gen: v7x
topology: tpu7x:2x2x1
jax: 0.10.0
libtpu: 0.0.40
codegen_flags: <defaults>
</compile_context>

<pallas_src>
import functools

import jax
import jax.numpy as jnp
import numpy as np
from jax.experimental import pallas as pl
from jax.experimental.pallas import tpu as pltpu


def _round_up(x, m):
    return (x + m - 1) // m * m


def _block_kernel(*refs, H, W, Wp, Co_pad, cg_pad, n_per_group, gn_eps,
                  has_scale_shift):
    # refs (with scale_shift):   x, w, bias, gamma, beta, scale, shift, out
    # refs (without):            x, w, bias, gamma, beta, out
    if has_scale_shift:
        (x_ref, w_ref, bias_ref, gamma_ref, beta_ref,
         scale_ref, shift_ref, out_ref) = refs
    else:
        x_ref, w_ref, bias_ref, gamma_ref, beta_ref, out_ref = refs
        scale_ref = shift_ref = None

    M = H * Wp  # output rows in "padded-width" layout (columns W, W+1 are garbage)

    xv = x_ref[0]                                    # (rows, Cin) f32
    w_bf = w_ref[...].astype(jnp.bfloat16)           # (9, Cin, Co_pad)

    # --- 3x3 conv (padding=1) as 9 shifted matmuls: fused im2col ---
    acc = jnp.zeros((M, Co_pad), jnp.float32)
    for k in range(9):
        dy, dx = k // 3, k % 3
        off = dy * Wp + dx
        xs = xv[off:off + M, :].astype(jnp.bfloat16)           # (M, Cin)
        acc = acc + jnp.dot(xs, w_bf[k],
                            preferred_element_type=jnp.float32)
    y = acc + bias_ref[...]                                    # (M, Co_pad) f32

    # --- mask garbage columns (w >= W) of the padded-width layout before stats ---
    rowf = jax.lax.broadcasted_iota(jnp.int32, (M, Co_pad), 0).astype(jnp.float32)
    colf = rowf - jnp.floor(rowf / float(Wp)) * float(Wp)
    valid = (colf < (float(W) - 0.5)).astype(jnp.float32)
    ym = y * valid                                             # exact 0 on invalid rows

    # --- GroupNorm stats (one-pass E[y^2]-mean^2 in f32; padded channels are exact 0) ---
    s = jnp.sum(ym, axis=0, keepdims=True)                     # (1, Co_pad)
    ss = jnp.sum(ym * ym, axis=0, keepdims=True)               # (1, Co_pad)

    # block-diagonal group indicator, built in-kernel (no HBM-resident (Co,Co) input)
    ci = jax.lax.broadcasted_iota(jnp.int32, (Co_pad, Co_pad), 0).astype(jnp.float32)
    cj = jax.lax.broadcasted_iota(jnp.int32, (Co_pad, Co_pad), 1).astype(jnp.float32)
    gi = jnp.floor(ci / float(cg_pad))
    gj = jnp.floor(cj / float(cg_pad))
    G = (gi == gj).astype(jnp.float32)                         # (Co_pad, Co_pad)

    gsum = jnp.dot(s, G, preferred_element_type=jnp.float32)   # (1, Co_pad)
    gss = jnp.dot(ss, G, preferred_element_type=jnp.float32)   # (1, Co_pad)
    mean = gsum / n_per_group
    var = gss / n_per_group - mean * mean
    inv = jax.lax.rsqrt(var + gn_eps)

    # --- fold GroupNorm affine (+ optional scale_shift) into one per-channel FMA ---
    a = inv * gamma_ref[...]                                   # (1, Co_pad)
    b = beta_ref[...] - mean * a
    if has_scale_shift:
        sc1 = scale_ref[0] + 1.0                               # (1, Co_pad)
        a = a * sc1
        b = b * sc1 + shift_ref[0]

    z = ym * a + b
    out_ref[0] = z * jax.nn.sigmoid(z)                         # SiLU


def block_forward(x, weight, bias, gamma, beta, scale_shift=None, groups=8):
    """x: (B, Cin, H, W) float32 (NCHW, like PyTorch). Returns (B, Co, H, W) float32."""
    B, Cin, H, W = x.shape
    Co = weight.shape[0]
    assert Co % groups == 0
    cg = Co // groups
    Hp, Wp = H + 2, W + 2
    M = H * Wp

    # lane-dense channel padding: Co_pad multiple of 128, group-aligned so that the
    # padded channels of group g live at [g*cg_pad + cg, (g+1)*cg_pad) with zero
    # weights/bias (so they contribute exactly 0 to the group statistics).
    cg_pad = cg
    while (groups * cg_pad) % 128 != 0:
        cg_pad += 1
    Co_pad = groups * cg_pad

    def pad_ch(v):  # (..., Co) -> (..., Co_pad) in group-aligned padded layout
        v = v.reshape(v.shape[:-1] + (groups, cg))
        v = jnp.pad(v, [(0, 0)] * (v.ndim - 1) + [(0, cg_pad - cg)])
        return v.reshape(v.shape[:-2] + (Co_pad,))

    # --- weight standardization (parameter prep, plain JAX) ---
    ws_eps = 1e-5  # x.dtype == float32 branch in the PyTorch module
    w_mean = jnp.mean(weight, axis=(1, 2, 3), keepdims=True)
    w_var = jnp.var(weight, axis=(1, 2, 3), keepdims=True)   # unbiased=False
    w_norm = (weight - w_mean) * jax.lax.rsqrt(w_var + ws_eps)          # (Co,Cin,3,3)
    w_k = jnp.transpose(w_norm, (2, 3, 1, 0)).reshape(9, Cin, Co)       # (9,Cin,Co)
    w_k = pad_ch(w_k).astype(jnp.float32)                               # (9,Cin,Co_pad)

    bias_p = pad_ch(bias.astype(jnp.float32)).reshape(1, Co_pad)
    gamma_p = pad_ch(gamma.astype(jnp.float32)).reshape(1, Co_pad)
    beta_p = pad_ch(beta.astype(jnp.float32)).reshape(1, Co_pad)

    # --- zero-padded NHWC image flattened over (H+2, W+2); conv im2col happens in-kernel ---
    x_nhwc = jnp.transpose(x, (0, 2, 3, 1))
    xp = jnp.pad(x_nhwc, ((0, 0), (1, 1), (1, 1), (0, 0)))              # (B,Hp,Wp,Cin)
    rows = _round_up(Hp * Wp + 2, 8)  # +2 so the (dy=2,dx=2) shifted slice stays in-bounds
    x_flat = jnp.pad(xp.reshape(B, Hp * Wp, Cin),
                     ((0, 0), (0, rows - Hp * Wp), (0, 0))).astype(jnp.float32)

    has_ss = scale_shift is not None
    operands = [x_flat, w_k, bias_p, gamma_p, beta_p]
    in_specs = [
        pl.BlockSpec((1, rows, Cin), lambda b: (b, 0, 0)),     # padded image (per batch)
        pl.BlockSpec((9, Cin, Co_pad), lambda b: (0, 0, 0)),   # conv weights (resident)
        pl.BlockSpec((1, Co_pad), lambda b: (0, 0)),           # bias
        pl.BlockSpec((1, Co_pad), lambda b: (0, 0)),           # gamma
        pl.BlockSpec((1, Co_pad), lambda b: (0, 0)),           # beta
    ]
    if has_ss:
        scale, shift = scale_shift
        scale_p = pad_ch(scale.reshape(B, Co).astype(jnp.float32)).reshape(B, 1, Co_pad)
        shift_p = pad_ch(shift.reshape(B, Co).astype(jnp.float32)).reshape(B, 1, Co_pad)
        operands += [scale_p, shift_p]
        in_specs += [pl.BlockSpec((1, 1, Co_pad), lambda b: (b, 0, 0)),
                     pl.BlockSpec((1, 1, Co_pad), lambda b: (b, 0, 0))]

    kernel = functools.partial(
        _block_kernel, H=H, W=W, Wp=Wp, Co_pad=Co_pad, cg_pad=cg_pad,
        n_per_group=float(H * W * cg), gn_eps=1e-5, has_scale_shift=has_ss)

    out = pl.pallas_call(
        kernel,
        out_shape=jax.ShapeDtypeStruct((B, M, Co_pad), jnp.float32),
        grid_spec=pltpu.PrefetchScalarGridSpec(
            num_scalar_prefetch=0,
            grid=(B,),
            in_specs=in_specs,
            out_specs=pl.BlockSpec((1, M, Co_pad), lambda b: (b, 0, 0)),
        ),
        compiler_params=pltpu.CompilerParams(
            dimension_semantics=("parallel",),
            vmem_limit_bytes=64 * 1024 * 1024),
    )(*operands)

    # strip padded-width garbage columns and padded channels, back to NCHW
    out = out.reshape(B, H, Wp, groups, cg_pad)[:, :, :W, :, :cg]
    out = out.reshape(B, H, W, Co)
    return jnp.transpose(out, (0, 3, 1, 2))


def _reference(x, weight, bias, gamma, beta, scale_shift, groups=8):
    """Pure-JAX reference mirroring the PyTorch module (conv inputs quantized to bf16
    like the kernel's MXU path; accumulation/stats in f32)."""
    ws_eps = 1e-5
    m = jnp.mean(weight, axis=(1, 2, 3), keepdims=True)
    v = jnp.var(weight, axis=(1, 2, 3), keepdims=True)
    wn = (weight - m) * jax.lax.rsqrt(v + ws_eps)
    y = jax.lax.conv_general_dilated(
        x.astype(jnp.bfloat16), wn.astype(jnp.bfloat16),
        window_strides=(1, 1), padding="SAME",
        dimension_numbers=("NCHW", "OIHW", "NCHW"),
        preferred_element_type=jnp.float32)
    y = y + bias[None, :, None, None]
    B, C, H, W = y.shape
    cg = C // groups
    yr = y.reshape(B, groups, cg, H, W)
    gm = jnp.mean(yr, axis=(2, 3, 4), keepdims=True)
    gv = jnp.var(yr, axis=(2, 3, 4), keepdims=True)
    yn = ((yr - gm) * jax.lax.rsqrt(gv + 1e-5)).reshape(B, C, H, W)
    yn = yn * gamma[None, :, None, None] + beta[None, :, None, None]
    if scale_shift is not None:
        scale, shift = scale_shift
        yn = yn * (scale.reshape(B, C, 1, 1) + 1.0) + shift.reshape(B, C, 1, 1)
    return yn * jax.nn.sigmoid(yn)


if __name__ == "__main__":
    B, dim, dim_out, H, W, groups = 2, 4, 32, 16, 16, 8

    key = jax.random.PRNGKey(0)
    kx, kw, kb, kg, kbt, ks, ksh = jax.random.split(key, 7)

    x = jax.random.normal(kx, (B, dim, H, W), jnp.float32)
    weight = 0.3 * jax.random.normal(kw, (dim_out, dim, 3, 3), jnp.float32)
    bias = 0.1 * jax.random.normal(kb, (dim_out,), jnp.float32)
    gamma = 1.0 + 0.1 * jax.random.normal(kg, (dim_out,), jnp.float32)
    beta = 0.1 * jax.random.normal(kbt, (dim_out,), jnp.float32)
    scale = 0.2 * jax.random.normal(ks, (B, dim_out, 1, 1), jnp.float32)
    shift = 0.2 * jax.random.normal(ksh, (B, dim_out, 1, 1), jnp.float32)
    scale_shift = (scale, shift)

    out = jax.block_until_ready(
        block_forward(x, weight, bias, gamma, beta, scale_shift, groups=groups))
    ref = jax.block_until_ready(
        _reference(x, weight, bias, gamma, beta, scale_shift, groups=groups))
    np.testing.assert_allclose(np.asarray(out), np.asarray(ref),
                               rtol=2e-3, atol=2e-3)

    # also exercise the scale_shift=None path (separate, leaner compiled kernel)
    out_none = jax.block_until_ready(
        block_forward(x, weight, bias, gamma, beta, None, groups=groups))
    ref_none = jax.block_until_ready(
        _reference(x, weight, bias, gamma, beta, None, groups=groups))
    np.testing.assert_allclose(np.asarray(out_none), np.asarray(ref_none),
                               rtol=2e-3, atol=2e-3)

    print("KERNEL_OK")
</pallas_src>

<mosaic_0001>
module attributes {stable_mosaic.version = 11 : i64} {
  func.func @_block_kernel(%arg0: i32, %arg1: memref<1x328x4xf32, #tpu.memory_space<vmem>>, %arg2: memref<9x4x128xf32, #tpu.memory_space<vmem>>, %arg3: memref<1x128xf32, #tpu.memory_space<vmem>>, %arg4: memref<1x128xf32, #tpu.memory_space<vmem>>, %arg5: memref<1x128xf32, #tpu.memory_space<vmem>>, %arg6: memref<1x1x128xf32, #tpu.memory_space<vmem>>, %arg7: memref<1x1x128xf32, #tpu.memory_space<vmem>>, %arg8: memref<1x288x128xf32, #tpu.memory_space<vmem>>) attributes {dimension_semantics = [#tpu.dimension_semantics<parallel>], iteration_bounds = array<i64: 2>, scalar_prefetch = 0 : i64, scratch_operands = 0 : i64, tpu.core_type = #tpu.core_type<tc>, window_params = [{transform_indices = @transform_0, window_bounds = array<i64: 1, 328, 4>}, {pipeline_mode = #tpu.pipeline_mode<synchronous>, transform_indices = @transform_1, window_bounds = array<i64: 9, 4, 128>}, {pipeline_mode = #tpu.pipeline_mode<synchronous>, transform_indices = @transform_2, window_bounds = array<i64: 1, 128>}, {pipeline_mode = #tpu.pipeline_mode<synchronous>, transform_indices = @transform_3, window_bounds = array<i64: 1, 128>}, {pipeline_mode = #tpu.pipeline_mode<synchronous>, transform_indices = @transform_4, window_bounds = array<i64: 1, 128>}, {transform_indices = @transform_5, window_bounds = array<i64: 1, 1, 128>}, {transform_indices = @transform_6, window_bounds = array<i64: 1, 1, 128>}, {transform_indices = @transform_7, window_bounds = array<i64: 1, 288, 128>}]} {
    %c0 = arith.constant 0 : index
    %c0_0 = arith.constant 0 : index
    %c0_1 = arith.constant 0 : index
    %0 = vector.load %arg1[%c0, %c0_0, %c0_1] : memref<1x328x4xf32, #tpu.memory_space<vmem>>, vector<1x328x4xf32>
    %1 = vector.shape_cast %0 : vector<1x328x4xf32> to vector<328x4xf32>
    %c0_2 = arith.constant 0 : index
    %c0_3 = arith.constant 0 : index
    %c0_4 = arith.constant 0 : index
    %2 = vector.load %arg2[%c0_2, %c0_3, %c0_4] : memref<9x4x128xf32, #tpu.memory_space<vmem>>, vector<9x4x128xf32>
    %3 = arith.truncf %2 : vector<9x4x128xf32> to vector<9x4x128xbf16>
    %cst = arith.constant 0.000000e+00 : f32
    %4 = vector.broadcast %cst : f32 to vector<288x128xf32>
    %5 = vector.extract_strided_slice %1 {offsets = [0, 0], sizes = [288, 4], strides = [1, 1]} : vector<328x4xf32> to vector<288x4xf32>
    %6 = arith.truncf %5 : vector<288x4xf32> to vector<288x4xbf16>
    %7 = vector.extract_strided_slice %3 {offsets = [0, 0, 0], sizes = [1, 4, 128], strides = [1, 1, 1]} : vector<9x4x128xbf16> to vector<1x4x128xbf16>
    %8 = vector.shape_cast %7 : vector<1x4x128xbf16> to vector<4x128xbf16>
    %cst_5 = arith.constant dense<0.000000e+00> : vector<288x128xf32>
    %9 = tpu.matmul %6, %8, %cst_5 {dimension_numbers = #tpu.dot_dimension_numbers<[1], [0], [0], [1], [0, 0, 1, 1], [], []>} : vector<288x4xbf16>, vector<4x128xbf16>, vector<288x128xf32> -> vector<288x128xf32>
    %10 = arith.addf %4, %9 : vector<288x128xf32>
    %11 = vector.extract_strided_slice %1 {offsets = [1, 0], sizes = [288, 4], strides = [1, 1]} : vector<328x4xf32> to vector<288x4xf32>
    %12 = arith.truncf %11 : vector<288x4xf32> to vector<288x4xbf16>
    %13 = vector.extract_strided_slice %3 {offsets = [1, 0, 0], sizes = [1, 4, 128], strides = [1, 1, 1]} : vector<9x4x128xbf16> to vector<1x4x128xbf16>
    %14 = vector.shape_cast %13 : vector<1x4x128xbf16> to vector<4x128xbf16>
    %cst_6 = arith.constant dense<0.000000e+00> : vector<288x128xf32>
    %15 = tpu.matmul %12, %14, %cst_6 {dimension_numbers = #tpu.dot_dimension_numbers<[1], [0], [0], [1], [0, 0, 1, 1], [], []>} : vector<288x4xbf16>, vector<4x128xbf16>, vector<288x128xf32> -> vector<288x128xf32>
    %16 = arith.addf %10, %15 : vector<288x128xf32>
    %17 = vector.extract_strided_slice %1 {offsets = [2, 0], sizes = [288, 4], strides = [1, 1]} : vector<328x4xf32> to vector<288x4xf32>
    %18 = arith.truncf %17 : vector<288x4xf32> to vector<288x4xbf16>
    %19 = vector.extract_strided_slice %3 {offsets = [2, 0, 0], sizes = [1, 4, 128], strides = [1, 1, 1]} : vector<9x4x128xbf16> to vector<1x4x128xbf16>
    %20 = vector.shape_cast %19 : vector<1x4x128xbf16> to vector<4x128xbf16>
    %cst_7 = arith.constant dense<0.000000e+00> : vector<288x128xf32>
    %21 = tpu.matmul %18, %20, %cst_7 {dimension_numbers = #tpu.dot_dimension_numbers<[1], [0], [0], [1], [0, 0, 1, 1], [], []>} : vector<288x4xbf16>, vector<4x128xbf16>, vector<288x128xf32> -> vector<288x128xf32>
    %22 = arith.addf %16, %21 : vector<288x128xf32>
    %23 = vector.extract_strided_slice %1 {offsets = [18, 0], sizes = [288, 4], strides = [1, 1]} : vector<328x4xf32> to vector<288x4xf32>
    %24 = arith.truncf %23 : vector<288x4xf32> to vector<288x4xbf16>
    %25 = vector.extract_strided_slice %3 {offsets = [3, 0, 0], sizes = [1, 4, 128], strides = [1, 1, 1]} : vector<9x4x128xbf16> to vector<1x4x128xbf16>
    %26 = vector.shape_cast %25 : vector<1x4x128xbf16> to vector<4x128xbf16>
    %cst_8 = arith.constant dense<0.000000e+00> : vector<288x128xf32>
    %27 = tpu.matmul %24, %26, %cst_8 {dimension_numbers = #tpu.dot_dimension_numbers<[1], [0], [0], [1], [0, 0, 1, 1], [], []>} : vector<288x4xbf16>, vector<4x128xbf16>, vector<288x128xf32> -> vector<288x128xf32>
    %28 = arith.addf %22, %27 : vector<288x128xf32>
    %29 = vector.extract_strided_slice %1 {offsets = [19, 0], sizes = [288, 4], strides = [1, 1]} : vector<328x4xf32> to vector<288x4xf32>
    %30 = arith.truncf %29 : vector<288x4xf32> to vector<288x4xbf16>
    %31 = vector.extract_strided_slice %3 {offsets = [4, 0, 0], sizes = [1, 4, 128], strides = [1, 1, 1]} : vector<9x4x128xbf16> to vector<1x4x128xbf16>
    %32 = vector.shape_cast %31 : vector<1x4x128xbf16> to vector<4x128xbf16>
    %cst_9 = arith.constant dense<0.000000e+00> : vector<288x128xf32>
    %33 = tpu.matmul %30, %32, %cst_9 {dimension_numbers = #tpu.dot_dimension_numbers<[1], [0], [0], [1], [0, 0, 1, 1], [], []>} : vector<288x4xbf16>, vector<4x128xbf16>, vector<288x128xf32> -> vector<288x128xf32>
    %34 = arith.addf %28, %33 : vector<288x128xf32>
    %35 = vector.extract_strided_slice %1 {offsets = [20, 0], sizes = [288, 4], strides = [1, 1]} : vector<328x4xf32> to vector<288x4xf32>
    %36 = arith.truncf %35 : vector<288x4xf32> to vector<288x4xbf16>
    %37 = vector.extract_strided_slice %3 {offsets = [5, 0, 0], sizes = [1, 4, 128], strides = [1, 1, 1]} : vector<9x4x128xbf16> to vector<1x4x128xbf16>
    %38 = vector.shape_cast %37 : vector<1x4x128xbf16> to vector<4x128xbf16>
    %cst_10 = arith.constant dense<0.000000e+00> : vector<288x128xf32>
    %39 = tpu.matmul %36, %38, %cst_10 {dimension_numbers = #tpu.dot_dimension_numbers<[1], [0], [0], [1], [0, 0, 1, 1], [], []>} : vector<288x4xbf16>, vector<4x128xbf16>, vector<288x128xf32> -> vector<288x128xf32>
    %40 = arith.addf %34, %39 : vector<288x128xf32>
    %41 = vector.extract_strided_slice %1 {offsets = [36, 0], sizes = [288, 4], strides = [1, 1]} : vector<328x4xf32> to vector<288x4xf32>
    %42 = arith.truncf %41 : vector<288x4xf32> to vector<288x4xbf16>
    %43 = vector.extract_strided_slice %3 {offsets = [6, 0, 0], sizes = [1, 4, 128], strides = [1, 1, 1]} : vector<9x4x128xbf16> to vector<1x4x128xbf16>
    %44 = vector.shape_cast %43 : vector<1x4x128xbf16> to vector<4x128xbf16>
    %cst_11 = arith.constant dense<0.000000e+00> : vector<288x128xf32>
    %45 = tpu.matmul %42, %44, %cst_11 {dimension_numbers = #tpu.dot_dimension_numbers<[1], [0], [0], [1], [0, 0, 1, 1], [], []>} : vector<288x4xbf16>, vector<4x128xbf16>, vector<288x128xf32> -> vector<288x128xf32>
    %46 = arith.addf %40, %45 : vector<288x128xf32>
    %47 = vector.extract_strided_slice %1 {offsets = [37, 0], sizes = [288, 4], strides = [1, 1]} : vector<328x4xf32> to vector<288x4xf32>
    %48 = arith.truncf %47 : vector<288x4xf32> to vector<288x4xbf16>
    %49 = vector.extract_strided_slice %3 {offsets = [7, 0, 0], sizes = [1, 4, 128], strides = [1, 1, 1]} : vector<9x4x128xbf16> to vector<1x4x128xbf16>
    %50 = vector.shape_cast %49 : vector<1x4x128xbf16> to vector<4x128xbf16>
    %cst_12 = arith.constant dense<0.000000e+00> : vector<288x128xf32>
    %51 = tpu.matmul %48, %50, %cst_12 {dimension_numbers = #tpu.dot_dimension_numbers<[1], [0], [0], [1], [0, 0, 1, 1], [], []>} : vector<288x4xbf16>, vector<4x128xbf16>, vector<288x128xf32> -> vector<288x128xf32>
    %52 = arith.addf %46, %51 : vector<288x128xf32>
    %53 = vector.extract_strided_slice %1 {offsets = [38, 0], sizes = [288, 4], strides = [1, 1]} : vector<328x4xf32> to vector<288x4xf32>
    %54 = arith.truncf %53 : vector<288x4xf32> to vector<288x4xbf16>
    %55 = vector.extract_strided_slice %3 {offsets = [8, 0, 0], sizes = [1, 4, 128], strides = [1, 1, 1]} : vector<9x4x128xbf16> to vector<1x4x128xbf16>
    %56 = vector.shape_cast %55 : vector<1x4x128xbf16> to vector<4x128xbf16>
    %cst_13 = arith.constant dense<0.000000e+00> : vector<288x128xf32>
    %57 = tpu.matmul %54, %56, %cst_13 {dimension_numbers = #tpu.dot_dimension_numbers<[1], [0], [0], [1], [0, 0, 1, 1], [], []>} : vector<288x4xbf16>, vector<4x128xbf16>, vector<288x128xf32> -> vector<288x128xf32>
    %58 = arith.addf %52, %57 : vector<288x128xf32>
    %c0_14 = arith.constant 0 : index
    %c0_15 = arith.constant 0 : index
    %59 = vector.load %arg3[%c0_14, %c0_15] : memref<1x128xf32, #tpu.memory_space<vmem>>, vector<1x128xf32>
    %60 = vector.broadcast %59 : vector<1x128xf32> to vector<288x128xf32>
    %61 = arith.addf %58, %60 : vector<288x128xf32>
    %62 = tpu.iota {dimensions = array<i32: 0>} : vector<288x128xi32>
    %63 = arith.sitofp %62 : vector<288x128xi32> to vector<288x128xf32>
    %cst_16 = arith.constant 1.800000e+01 : f32
    %64 = vector.broadcast %cst_16 : f32 to vector<288x128xf32>
    %65 = arith.divf %63, %64 : vector<288x128xf32>
    %66 = math.floor %65 : vector<288x128xf32>
    %cst_17 = arith.constant 1.800000e+01 : f32
    %67 = vector.broadcast %cst_17 : f32 to vector<288x128xf32>
    %68 = arith.mulf %66, %67 : vector<288x128xf32>
    %69 = arith.subf %63, %68 : vector<288x128xf32>
    %cst_18 = arith.constant 1.550000e+01 : f32
    %70 = vector.broadcast %cst_18 : f32 to vector<288x128xf32>
    %71 = arith.cmpf olt, %69, %70 : vector<288x128xf32>
    %72 = arith.extui %71 : vector<288x128xi1> to vector<288x128xi32>
    %73 = arith.sitofp %72 : vector<288x128xi32> to vector<288x128xf32>
    %74 = arith.mulf %61, %73 : vector<288x128xf32>
    %cst_19 = arith.constant dense<0.000000e+00> : vector<128xf32>
    %75 = vector.multi_reduction <add>, %74, %cst_19 [0] : vector<288x128xf32> to vector<128xf32>
    %76 = vector.shape_cast %75 : vector<128xf32> to vector<1x128xf32>
    %77 = arith.mulf %74, %74 : vector<288x128xf32>
    %cst_20 = arith.constant dense<0.000000e+00> : vector<128xf32>
    %78 = vector.multi_reduction <add>, %77, %cst_20 [0] : vector<288x128xf32> to vector<128xf32>
    %79 = vector.shape_cast %78 : vector<128xf32> to vector<1x128xf32>
    %80 = tpu.iota {dimensions = array<i32: 0>} : vector<128x128xi32>
    %81 = arith.sitofp %80 : vector<128x128xi32> to vector<128x128xf32>
    %82 = tpu.iota {dimensions = array<i32: 1>} : vector<128x128xi32>
    %83 = arith.sitofp %82 : vector<128x128xi32> to vector<128x128xf32>
    %cst_21 = arith.constant 1.600000e+01 : f32
    %84 = vector.broadcast %cst_21 : f32 to vector<128x128xf32>
    %85 = arith.divf %81, %84 : vector<128x128xf32>
    %86 = math.floor %85 : vector<128x128xf32>
    %cst_22 = arith.constant 1.600000e+01 : f32
    %87 = vector.broadcast %cst_22 : f32 to vector<128x128xf32>
    %88 = arith.divf %83, %87 : vector<128x128xf32>
    %89 = math.floor %88 : vector<128x128xf32>
    %90 = arith.cmpf oeq, %86, %89 : vector<128x128xf32>
    %91 = arith.extui %90 : vector<128x128xi1> to vector<128x128xi32>
    %92 = arith.sitofp %91 : vector<128x128xi32> to vector<128x128xf32>
    %cst_23 = arith.constant dense<0.000000e+00> : vector<1x128xf32>
    %93 = tpu.matmul %76, %92, %cst_23 {dimension_numbers = #tpu.dot_dimension_numbers<[1], [0], [0], [1], [0, 0, 1, 1], [], []>} : vector<1x128xf32>, vector<128x128xf32>, vector<1x128xf32> -> vector<1x128xf32>
    %cst_24 = arith.constant dense<0.000000e+00> : vector<1x128xf32>
    %94 = tpu.matmul %79, %92, %cst_24 {dimension_numbers = #tpu.dot_dimension_numbers<[1], [0], [0], [1], [0, 0, 1, 1], [], []>} : vector<1x128xf32>, vector<128x128xf32>, vector<1x128xf32> -> vector<1x128xf32>
    %cst_25 = arith.constant 1.024000e+03 : f32
    %95 = vector.broadcast %cst_25 : f32 to vector<1x128xf32>
    %96 = arith.divf %93, %95 : vector<1x128xf32>
    %cst_26 = arith.constant 1.024000e+03 : f32
    %97 = vector.broadcast %cst_26 : f32 to vector<1x128xf32>
    %98 = arith.divf %94, %97 : vector<1x128xf32>
    %99 = arith.mulf %96, %96 : vector<1x128xf32>
    %100 = arith.subf %98, %99 : vector<1x128xf32>
    %cst_27 = arith.constant 9.99999974E-6 : f32
    %101 = vector.broadcast %cst_27 : f32 to vector<1x128xf32>
    %102 = arith.addf %100, %101 : vector<1x128xf32>
    %103 = math.rsqrt %102 : vector<1x128xf32>
    %c0_28 = arith.constant 0 : index
    %c0_29 = arith.constant 0 : index
    %104 = vector.load %arg4[%c0_28, %c0_29] : memref<1x128xf32, #tpu.memory_space<vmem>>, vector<1x128xf32>
    %105 = arith.mulf %103, %104 : vector<1x128xf32>
    %c0_30 = arith.constant 0 : index
    %c0_31 = arith.constant 0 : index
    %106 = vector.load %arg5[%c0_30, %c0_31] : memref<1x128xf32, #tpu.memory_space<vmem>>, vector<1x128xf32>
    %107 = arith.mulf %96, %105 : vector<1x128xf32>
    %108 = arith.subf %106, %107 : vector<1x128xf32>
    %c0_32 = arith.constant 0 : index
    %c0_33 = arith.constant 0 : index
    %c0_34 = arith.constant 0 : index
    %109 = vector.load %arg6[%c0_32, %c0_33, %c0_34] : memref<1x1x128xf32, #tpu.memory_space<vmem>>, vector<1x1x128xf32>
    %110 = vector.shape_cast %109 : vector<1x1x128xf32> to vector<1x128xf32>
    %cst_35 = arith.constant 1.000000e+00 : f32
    %111 = vector.broadcast %cst_35 : f32 to vector<1x128xf32>
    %112 = arith.addf %110, %111 : vector<1x128xf32>
    %113 = arith.mulf %105, %112 : vector<1x128xf32>
    %114 = arith.mulf %108, %112 : vector<1x128xf32>
    %c0_36 = arith.constant 0 : index
    %c0_37 = arith.constant 0 : index
    %c0_38 = arith.constant 0 : index
    %115 = vector.load %arg7[%c0_36, %c0_37, %c0_38] : memref<1x1x128xf32, #tpu.memory_space<vmem>>, vector<1x1x128xf32>
    %116 = vector.shape_cast %115 : vector<1x1x128xf32> to vector<1x128xf32>
    %117 = arith.addf %114, %116 : vector<1x128xf32>
    %118 = vector.broadcast %113 : vector<1x128xf32> to vector<288x128xf32>
    %119 = arith.mulf %74, %118 : vector<288x128xf32>
    %120 = vector.broadcast %117 : vector<1x128xf32> to vector<288x128xf32>
    %121 = arith.addf %119, %120 : vector<288x128xf32>
    %122 = arith.negf %121 : vector<288x128xf32>
    %123 = math.exp %122 : vector<288x128xf32>
    %cst_39 = arith.constant 1.000000e+00 : f32
    %124 = vector.broadcast %cst_39 : f32 to vector<288x128xf32>
    %125 = arith.addf %124, %123 : vector<288x128xf32>
    %126 = arith.divf %124, %125 : vector<288x128xf32>
    %127 = arith.mulf %121, %126 : vector<288x128xf32>
    %c0_40 = arith.constant 0 : index
    %c0_41 = arith.constant 0 : index
    %c0_42 = arith.constant 0 : index
    %128 = vector.load %arg8[%c0_40, %c0_41, %c0_42] : memref<1x288x128xf32, #tpu.memory_space<vmem>>, vector<1x288x128xf32>
    %129 = vector.shape_cast %128 : vector<1x288x128xf32> to vector<288x128xf32>
    %130 = vector.shape_cast %127 : vector<288x128xf32> to vector<1x288x128xf32>
    tpu.vector_store %arg8[%c0_40, %c0_41, %c0_42], %130 {strides = array<i32>} : memref<1x288x128xf32, #tpu.memory_space<vmem>>, vector<1x288x128xf32>,
    return
  }
  func.func @transform_0(%arg0: i32) -> (i32, i32, i32) {
    %c0_i32 = arith.constant 0 : i32
    %c0_i32_0 = arith.constant 0 : i32
    %c0_i32_1 = arith.constant 0 : i32
    return %arg0, %c0_i32, %c0_i32_0 : i32, i32, i32
  }
  func.func @transform_1(%arg0: i32) -> (i32, i32, i32) {
    %c0_i32 = arith.constant 0 : i32
    %c0_i32_0 = arith.constant 0 : i32
    %c0_i32_1 = arith.constant 0 : i32
    %c0_i32_2 = arith.constant 0 : i32
    return %c0_i32, %c0_i32_0, %c0_i32_1 : i32, i32, i32
  }
  func.func @transform_2(%arg0: i32) -> (i32, i32) {
    %c0_i32 = arith.constant 0 : i32
    %c0_i32_0 = arith.constant 0 : i32
    %c0_i32_1 = arith.constant 0 : i32
    return %c0_i32, %c0_i32_0 : i32, i32
  }
  func.func @transform_3(%arg0: i32) -> (i32, i32) {
    %c0_i32 = arith.constant 0 : i32
    %c0_i32_0 = arith.constant 0 : i32
    %c0_i32_1 = arith.constant 0 : i32
    return %c0_i32, %c0_i32_0 : i32, i32
  }
  func.func @transform_4(%arg0: i32) -> (i32, i32) {
    %c0_i32 = arith.constant 0 : i32
    %c0_i32_0 = arith.constant 0 : i32
    %c0_i32_1 = arith.constant 0 : i32
    return %c0_i32, %c0_i32_0 : i32, i32
  }
  func.func @transform_5(%arg0: i32) -> (i32, i32, i32) {
    %c0_i32 = arith.constant 0 : i32
    %c0_i32_0 = arith.constant 0 : i32
    %c0_i32_1 = arith.constant 0 : i32
    return %arg0, %c0_i32, %c0_i32_0 : i32, i32, i32
  }
  func.func @transform_6(%arg0: i32) -> (i32, i32, i32) {
    %c0_i32 = arith.constant 0 : i32
    %c0_i32_0 = arith.constant 0 : i32
    %c0_i32_1 = arith.constant 0 : i32
    return %arg0, %c0_i32, %c0_i32_0 : i32, i32, i32
  }
  func.func @transform_7(%arg0: i32) -> (i32, i32, i32) {
    %c0_i32 = arith.constant 0 : i32
    %c0_i32_0 = arith.constant 0 : i32
    %c0_i32_1 = arith.constant 0 : i32
    return %arg0, %c0_i32, %c0_i32_0 : i32, i32, i32
  }
}

</mosaic_0001>

<bundles_post_ra>
// kernel: tpu_custom_call.1
= control target key start
LH: loop header
LB: loop body
LE: loop exit
PB: predicated region body
PF: predicated region fallthrough
CT: control target
= control target key end

     0   :  { %s8891_s0 = inlined_call_operand.hbm [shape: f32[2,328,4], index: 0, kind: input, shape index: {}]   ;;  %s8892_s1 = inlined_call_operand.hbm [shape: f32[9,4,128], index: 1, kind: input, shape index: {}]   ;;  %s8893_s2 = inlined_call_operand.hbm [shape: f32[1,128], index: 2, kind: input, shape index: {}]   ;;  %s8894_s3 = inlined_call_operand.hbm [shape: f32[1,128], index: 3, kind: input, shape index: {}]   ;;  %s8895_s4 = inlined_call_operand.hbm [shape: f32[1,128], index: 4, kind: input, shape index: {}]   ;;  %s8896_s5 = inlined_call_operand.hbm [shape: f32[2,1,128], index: 5, kind: input, shape index: {}]   ;;  %s8897_s6 = inlined_call_operand.hbm [shape: f32[2,1,128], index: 6, kind: input, shape index: {}]   ;;  %s8898_s7 = inlined_call_operand.hbm [shape: f32[2,288,128], index: 7, kind: output, shape index: {}]  }
   0x1   :  { %8993 = sst [smem:[#allocation62_spill]] %s8892_s1 }
   0x2   :  { %8994 = sst [smem:[#allocation63_spill]] %s8894_s3 }
   0x3   :  { %8995 = sst [smem:[#allocation64_spill]] %s8896_s5 }
   0x4   :  { %12 = vsyncpa [#allocation3], 0 }
   0x5   :  { %14 = vsyncpa [#allocation3 + $0x1], 0 }
   0x6   :  { %15 = vsyncpa [#allocation6], 0 }
   0x7   :  { %16 = vsyncpa [#allocation9], 0 }
   0x8   :  { %17 = vsyncpa [#allocation12], 0 }
   0x9   :  { %19 = vsyncpa [#allocation12 + $0x1], 0 }
   0xa   :  { %20 = vsyncpa [#allocation4], 0 }
   0xb   :  { %22 = vsyncpa [#allocation4 + $0x1], 0  ;;  %s6369_s24 = smov 0   ;;  %s6371_s25 = smov 0  }
   0xc   :  { %s6373_s26 = smov 0   ;;  %s6375_s27 = smov 0  }
   0xd LB: > { %8996 = sst [smem:[#allocation20_spill]] %s6305_s26  ;;  %s6311_s28 = smov [#allocation5]   ;;  %s6309_s27 = sphi %s6375_s27, %s9249_s27   ;;  %s6305_s26 = sphi %s6373_s26, %s9251_s26   ;;  %s6301_s25 = sphi %s6371_s25, %s9253_s25   ;;  %s6297_s24 = sphi %s6369_s24, %s9252_s24  }
   0xe   : > { %s233_s29 = sshll.u32 %s6311_s28, 4  ;;  %s6390_s30 = sadd.s32 4294967295, %s6309_s27   ;;  %s6395_s29 = int_to_ptr.vmem [resolvable:$true] %s233_s29 }
   0xf   : > { %p4509_p0 = scmp.ge.s32.totalorder %s6309_s27, 1  ;;  %p8903_p1 = scmp.eq.s32.totalorder %s6390_s30, 0 }
  0x10   : > { %p221_p2 = scmp.lt.s32.totalorder %s6309_s27, 3  ;;  %s6312_s9 = smov [#allocation8]  }
  0x11   : > { %s258_s10 = sshll.u32 %s6312_s9, 4  ;;  %s8999_s1 = sld [smem:[#allocation62_spill]]  ;;  %s6410_s10 = int_to_ptr.vmem [resolvable:$true] %s258_s10 }
  0x12   : > { %p6397_p3 = pnand %p4509_p0, %p221_p2 }
  0x14   : > { %s8997_s8 = scalar_select %p6397_p3, 1, 0 }
  0x15   : > { %p5800_p5 = pneg %p6397_p3 }
  0x17   : > { %p6406_p6 = pnand %p5800_p5, %p8903_p1  ;;  %s6029_s14 = scalar_lea.hbm %s8999_s1, 576 }
  0x18   : > { %p6030_p7 = scmp.ne.s32.totalorder %s8999_s1, %s6029_s14  ;;  %p6036_p11 = scmp.lt.u32.totalorder %s6029_s14, %s8999_s1 }
  0x19   : > { %s8998_s11 = scalar_select %p6406_p6, 1, 0 }
  0x1a   : > { %p6420_p8 = pneg %p6406_p6 }
  0x1c   : > { %s9000_s17 = scalar_select %p6420_p8, 1, 0 }
  0x1d   : > { %p6032_p9 = pnand %p6420_p8, %p6030_p7 }
  0x1f   : > { %p6033_p10 = pneg %p6032_p9 }
  0x21   : > { %p6038_p12 = pnand %p6036_p11, %p6033_p10 }
  0x23   : > { %6041 = shalt.err (!%p6038_p12)
}
  0x24   : > { %s6042_s20 = scalar_lea.vmem %s6395_s29, 576  ;;  %p6050_p5 = scmp.lt.s32.totalorder %s6395_s29, %s6395_s29 }
  0x25   : > { %p6043_p13 = scmp.ne.s32.totalorder %s6395_s29, %s6042_s20  ;;  %p6051_p4 = scmp.lt.s32.totalorder %s6042_s20, %s6042_s20 }
  0x27   : > { %p6045_p0 = pnand %p6043_p13, %p6420_p8  ;;  %p6052_p7 = por %p6051_p4, %p6050_p5 }
  0x29   : > { %p6046_p2 = pneg %p6045_p0 }
  0x2b   : > { %p6053_p9 = pnand %p6052_p7, %p6046_p2 }
  0x2d   : > { %6056 = shalt.err (!%p6053_p9)
}
  0x2e   : > { %s6313_s21 = smov 64   ;;  %s6314_s22 = smov 4  }
  0x2f   : > { %5803 = dma.hbm_to_vmem [thread:$0]  (!%p6406_p6), %s8999_s1, 576, %s6395_s29, [#allocation6], %s6313_s21, %s6313_s21, %s6314_s22  }
  0x30   : > { %s9001_s3 = sld [smem:[#allocation63_spill]] }
  0x36   : > { %s6057_s13 = scalar_lea.hbm %s9001_s3, 16 }
  0x37   : > { %p6058_p4 = scmp.ne.s32.totalorder %s9001_s3, %s6057_s13  ;;  %p6064_p12 = scmp.lt.u32.totalorder %s6057_s13, %s9001_s3 }
  0x39   : > { %p6060_p10 = pnand %p6058_p4, %p6420_p8 }
  0x3b   : > { %p6061_p11 = pneg %p6060_p10 }
  0x3d   : > { %p6066_p13 = pnand %p6064_p12, %p6061_p11 }
  0x3f   : > { %6069 = shalt.err (!%p6066_p13)
}
  0x40   : > { %s6070_s29 = scalar_lea.vmem %s6410_s10, 16  ;;  %s6077_s19 = scalar_lea.vmem %s6410_s10, 32 }
  0x41   : > { %p6071_p0 = scmp.ne.s32.totalorder %s6410_s10, %s6070_s29  ;;  %p6078_p7 = scmp.lt.s32.totalorder %s6410_s10, %s6410_s10 }
  0x42   : > { %p6079_p9 = scmp.lt.s32.totalorder %s6077_s19, %s6070_s29 }
  0x43   : > { %p6073_p2 = pnand %p6071_p0, %p6420_p8 }
  0x44   : > { %p6080_p4 = por %p6079_p9, %p6078_p7 }
  0x45   : > { %p6074_p5 = pneg %p6073_p2 }
  0x47   : > { %p6081_p10 = pnand %p6080_p4, %p6074_p5 }
  0x49   : > { %6084 = shalt.err (!%p6081_p10)
}
  0x4a   : > { %5809 = dma.hbm_to_vmem [thread:$0]  (!%p6406_p6), %s9001_s3, 16, %s6410_s10, [#allocation9]  }
  0x4b   : > { %s4508_s22 = sadd.s32 4294967294, %s6309_s27   ;;  %s6467_s23 = sadd.s32 1, %s6309_s27  }
  0x4c   : > { %9002 = sst [smem:[#allocation21_spill]] %s6467_s23  ;;  %s32_s28 = ssub.s32 %s6309_s27, %s6467_s23 }
  0x4d   : > { %s35_s9 = sadd.s32 1, %s6305_s26  ;;  %p33_p11 = scmp.eq.s32.totalorder %s32_s28, 0 }
  0x4e   : > { %p42_p12 = scmp.ne.s32.totalorder %s6305_s26, %s6301_s25  ;;  %p43_p13 = scmp.eq.s32.totalorder %s6309_s27, 0 }
  0x4f   : > { %p48_p0 = scmp.ne.s32.totalorder %s6301_s25, %s6297_s24  ;;  %p208_p7 = scmp.eq.s32.totalorder %s6390_s30, 1 }
  0x50   : > { %s6478_s12 = scalar_select %p33_p11, %s6305_s26, %s35_s9  }
  0x51   : > { %p44_p2 = por %p43_p13, %p42_p12  ;;  %p6482_p5 = por %p8903_p1, %p48_p0 }
  0x52   : > { %9003 = sst [smem:[#allocation22_spill]] %s6478_s12  ;;  %p214_p9 = scmp.eq.s32.totalorder %s4508_s22, 1 }
  0x53   : > { %s9004_s13 = scalar_select %p6482_p5, 1, 0 }
  0x54   : > { %p5831_p4 = scmp.lt.s32.totalorder %s6309_s27, 2  ;;  %s6489_s10 = sand.u32 1, %s6305_s26  }
  0x55   : > { %p6491_p10 = por %p208_p7, %p42_p12  ;;  %p6495_p3 = por %p214_p9, %p48_p0 }
  0x56   : > { %p6499_p11 = pnand %p5831_p4, %p44_p2  ;;  %s301_s18 = sand.u32 1, %s6309_s27  }
  0x57   : > { %s9005_s14 = scalar_select %p6491_p10, 1, 0 }
  0x58   : > { %s9006_s15 = scalar_select %p6495_p3, 1, 0 }
  0x59   : > { %s9008_s16 = scalar_select %p6499_p11, 1, 0 }
  0x5a   : > { %9007 = sst [smem:[#allocation23_spill]] %s9006_s15  ;;  %s4516_s29 = sshll.u32 %s6309_s27, 4 }
  0x5b   : > { %s9009_s5 = sld [smem:[#allocation64_spill]]  ;;  %s304_s22 = scalar_lea.vmem [#allocation11], %s6489_s10 }
  0x5c   : > { %s311_s28 = sshll.u32 %s304_s22, 4  ;;  %s6516_s3 = scalar_lea.hbm %s8897_s6, %s4516_s29  ;;  %s6511_s28 = int_to_ptr.vmem [resolvable:$true] %s311_s28 }
  0x5d   : > { %s6518_s12 = scalar_lea.sflag [#allocation12], %s301_s18  ;;  %p6524_p13 = pneg %p6499_p11 }
  0x61   : > { %s6508_s21 = scalar_lea.hbm %s9009_s5, %s4516_s29  ;;  %s6090_s23 = scalar_lea.hbm %s9009_s5, 32 }
  0x62   : > { %s6085_s26 = scalar_lea.hbm %s6508_s21, 16  ;;  %p6091_p7 = scmp.lt.u32.totalorder %s6508_s21, %s9009_s5 }
  0x63   : > { %p6086_p12 = scmp.ne.s32.totalorder %s6508_s21, %s6085_s26  ;;  %p6092_p9 = scmp.lt.u32.totalorder %s6090_s23, %s6085_s26 }
  0x64   : > { %p6094_p1 = scmp.lt.u32.totalorder %s6085_s26, %s6508_s21 }
  0x65   : > { %p6088_p0 = pnand %p6524_p13, %p6086_p12  ;;  %p6093_p4 = por %p6092_p9, %p6091_p7 }
  0x67   : > { %p6089_p2 = pneg %p6088_p0  ;;  %p6095_p3 = por %p6094_p1, %p6093_p4 }
  0x69   : > { %p6096_p10 = pnand %p6095_p3, %p6089_p2 }
  0x6b   : > { %6099 = shalt.err (!%p6096_p10)
}
  0x6c   : > { %s6100_s18 = scalar_lea.vmem %s6511_s28, 16  ;;  %s6315_s9 = smov [#allocation11]  }
  0x6d   : > { %p6101_p12 = scmp.ne.s32.totalorder %s6511_s28, %s6100_s18  ;;  %s6105_s20 = sshll.u32 %s6315_s9, 4  ;;  %s6106_s20 = int_to_ptr.vmem [resolvable:$false] %s6105_s20 }
  0x6e   : > { %s6107_s22 = scalar_lea.vmem %s6106_s20, 32  ;;  %p6108_p6 = scmp.lt.s32.totalorder %s6511_s28, %s6106_s20 }
  0x6f   : > { %p6103_p0 = pnand %p6101_p12, %p6524_p13  ;;  %p6109_p8 = scmp.lt.s32.totalorder %s6107_s22, %s6100_s18 }
  0x71   : > { %p6104_p5 = pneg %p6103_p0  ;;  %p6110_p7 = por %p6109_p8, %p6108_p6 }
  0x73   : > { %p6111_p9 = pnand %p6110_p7, %p6104_p5 }
  0x75   : > { %6114 = shalt.err (!%p6111_p9)
}
  0x76   : > { %5819 = dma.hbm_to_vmem [thread:$0]  (!%p6499_p11), %s6508_s21, 16, %s6511_s28, %s6518_s12  }
  0x77   : > { %s6316_s26 = smov [#allocation7]   ;;  %s6317_s1 = smov [#allocation10]  }
  0x78   : > { %s247_s23 = sshll.u32 %s6316_s26, 4  ;;  %s269_s29 = sshll.u32 %s6317_s1, 4  ;;  %s248_s23 = int_to_ptr.vmem [resolvable:$true] %s247_s23  ;;  %s6548_s29 = int_to_ptr.vmem [resolvable:$true] %s269_s29 }
  0x79   : > { %s6115_s18 = scalar_lea.hbm %s8893_s2, 16  ;;  %p9011_p3 = scmp.ne.s32.totalorder %s9000_s17, 0 }
  0x7a   : > { %p6116_p1 = scmp.ne.s32.totalorder %s8893_s2, %s6115_s18  ;;  %p6122_p5 = scmp.lt.u32.totalorder %s6115_s18, %s8893_s2 }
  0x7c   : > { %p6118_p6 = pnand %p6116_p1, %p9011_p3 }
  0x7e   : > { %p6119_p8 = pneg %p6118_p6 }
  0x80   : > { %p6124_p10 = pnand %p6122_p5, %p6119_p8 }
  0x82   : > { %6127 = shalt.err (!%p6124_p10)
}
  0x83   : > { %s6128_s28 = scalar_lea.vmem %s248_s23, 16  ;;  %s6135_s26 = scalar_lea.vmem %s248_s23, 32 }
  0x84   : > { %p6129_p2 = scmp.ne.s32.totalorder %s248_s23, %s6128_s28  ;;  %p6136_p0 = scmp.lt.s32.totalorder %s248_s23, %s248_s23 }
  0x85   : > { %p6137_p7 = scmp.lt.s32.totalorder %s6135_s26, %s6128_s28 }
  0x86   : > { %p6131_p4 = pnand %p6129_p2, %p9011_p3 }
  0x87   : > { %p6138_p9 = por %p6137_p7, %p6136_p0 }
  0x88   : > { %p6132_p12 = pneg %p6131_p4 }
  0x8a   : > { %p6139_p11 = pnand %p6138_p9, %p6132_p12 }
  0x8c   : > { %6142 = shalt.err (!%p6139_p11)
}
  0x8d   : > { %p9012_p1 = scmp.ne.s32.totalorder %s8998_s11, 0  ;;  %s6143_s20 = scalar_lea.hbm %s8895_s4, 16 }
  0x8e   : > { %p6144_p6 = scmp.ne.s32.totalorder %s8895_s4, %s6143_s20  ;;  %p6150_p11 = scmp.lt.u32.totalorder %s6143_s20, %s8895_s4 }
  0x8f   : > { %5806 = dma.hbm_to_vmem [thread:$0]  (!%p9012_p1), %s8893_s2, 16, %s248_s23, [#allocation6]  }
  0x90   : > { %p6146_p8 = pnand %p6144_p6, %p9011_p3 }
  0x92   : > { %p6147_p5 = pneg %p6146_p8 }
  0x94   : > { %p6152_p10 = pnand %p6150_p11, %p6147_p5 }
  0x96   : > { %6155 = shalt.err (!%p6152_p10)
}
  0x97   : > { %s6156_s23 = scalar_lea.vmem %s6548_s29, 16  ;;  %s6163_s26 = scalar_lea.vmem %s6548_s29, 32 }
  0x98   : > { %p6157_p2 = scmp.ne.s32.totalorder %s6548_s29, %s6156_s23  ;;  %p6164_p0 = scmp.lt.s32.totalorder %s6548_s29, %s6548_s29 }
  0x99   : > { %p6165_p7 = scmp.lt.s32.totalorder %s6163_s26, %s6156_s23 }
  0x9a   : > { %p6159_p4 = pnand %p6157_p2, %p9011_p3 }
  0x9b   : > { %p6166_p9 = por %p6165_p7, %p6164_p0 }
  0x9c   : > { %p6160_p12 = pneg %p6159_p4 }
  0x9e   : > { %p6167_p6 = pnand %p6166_p9, %p6160_p12 }
  0xa0   : > { %6170 = shalt.err (!%p6167_p6)
}
  0xa1   : > { %5812 = dma.hbm_to_vmem [thread:$0]  (!%p9012_p1), %s8895_s4, 16, %s6548_s29, [#allocation9]  }
  0xa2   : > { %s5771_s17 = smul.u32 328, %s6489_s10  ;;  %s281_s21 = scalar_lea.sflag [#allocation3], %s6489_s10 }
  0xa3   : > { %s5772_s15 = smul.u32 5248, %s6309_s27  ;;  %s6176_s26 = scalar_lea.hbm %s8891_s0, 10496 }
  0xa4   : > { %s284_s11 = scalar_lea.vmem [#allocation2], %s5771_s17 }
  0xa5   : > { %s6597_s18 = scalar_lea.hbm %s8891_s0, %s5772_s15  ;;  %s291_s22 = sshll.u32 %s284_s11, 4  ;;  %s6599_s22 = int_to_ptr.vmem [resolvable:$true] %s291_s22 }
  0xa6   : > { %s6171_s28 = scalar_lea.hbm %s6597_s18, 5248  ;;  %p6177_p5 = scmp.lt.u32.totalorder %s6597_s18, %s8891_s0 }
  0xa7   : > { %p6172_p3 = scmp.ne.s32.totalorder %s6597_s18, %s6171_s28  ;;  %p6178_p11 = scmp.lt.u32.totalorder %s6176_s26, %s6171_s28 }
  0xa8   : > { %p6180_p2 = scmp.lt.u32.totalorder %s6171_s28, %s6597_s18 }
  0xa9   : > { %p6174_p1 = pnand %p6172_p3, %p6524_p13  ;;  %p6179_p10 = por %p6178_p11, %p6177_p5 }
  0xab   : > { %p6175_p8 = pneg %p6174_p1  ;;  %p6181_p4 = por %p6180_p2, %p6179_p10 }
  0xad   : > { %p6182_p12 = pnand %p6181_p4, %p6175_p8 }
  0xaf   : > { %6185 = shalt.err (!%p6182_p12)
}
  0xb0   : > { %s6186_s17 = scalar_lea.vmem %s6599_s22, 5248  ;;  %s6318_s15 = smov [#allocation2]  }
  0xb1   : > { %p6187_p0 = scmp.ne.s32.totalorder %s6599_s22, %s6186_s17  ;;  %s6191_s9 = sshll.u32 %s6318_s15, 4  ;;  %s6192_s9 = int_to_ptr.vmem [resolvable:$false] %s6191_s9 }
  0xb2   : > { %s6193_s20 = scalar_lea.vmem %s6192_s9, 10496  ;;  %p6194_p6 = scmp.lt.s32.totalorder %s6599_s22, %s6192_s9 }
  0xb3   : > { %p6189_p7 = pnand %p6187_p0, %p6524_p13  ;;  %p6195_p3 = scmp.lt.s32.totalorder %s6193_s20, %s6186_s17 }
  0xb5   : > { %p6190_p9 = pneg %p6189_p7  ;;  %p6196_p1 = por %p6195_p3, %p6194_p6 }
  0xb7   : > { %p6197_p5 = pnand %p6196_p1, %p6190_p9 }
  0xb9   : > { %6200 = shalt.err (!%p6197_p5)
}
  0xba   : > { %s6319_s11 = smov 128   ;;  %s6320_s28 = smov 8  }
  0xbb   : > { %p9013_p8 = scmp.ne.s32.totalorder %s9008_s16, 0  ;;  %s321_s29 = scalar_lea.vmem [#allocation13], %s6489_s10 }
  0xbc   : > { %s328_s23 = sshll.u32 %s321_s29, 4  ;;  %s6201_s26 = scalar_lea.hbm %s6516_s3, 16  ;;  %s329_s23 = int_to_ptr.vmem [resolvable:$true] %s328_s23 }
  0xbd   : > { %5816 = dma.hbm_to_vmem [thread:$0]  (!%p9013_p8), %s6597_s18, 5248, %s6599_s22, %s281_s21, %s6319_s11, %s6319_s11, %s6320_s28  }
  0xbe   : > { %p6202_p11 = scmp.ne.s32.totalorder %s6516_s3, %s6201_s26  ;;  %s6206_s17 = scalar_lea.hbm %s8897_s6, 32 }
  0xbf   : > { %p6207_p4 = scmp.lt.u32.totalorder %s6516_s3, %s8897_s6  ;;  %p6208_p12 = scmp.lt.u32.totalorder %s6206_s17, %s6201_s26 }
  0xc0   : > { %p6204_p10 = pnand %p6202_p11, %p6524_p13  ;;  %p6210_p7 = scmp.lt.u32.totalorder %s6201_s26, %s6516_s3 }
  0xc1   : > { %p6209_p0 = por %p6208_p12, %p6207_p4 }
  0xc2   : > { %p6205_p2 = pneg %p6204_p10 }
  0xc3   : > { %p6211_p9 = por %p6210_p7, %p6209_p0 }
  0xc5   : > { %p6212_p6 = pnand %p6211_p9, %p6205_p2 }
  0xc7   : > { %6215 = shalt.err (!%p6212_p6)
}
  0xc8   : > { %s6216_s10 = scalar_lea.vmem %s329_s23, 16  ;;  %s6321_s18 = smov [#allocation13]  }
  0xc9   : > { %p6217_p3 = scmp.ne.s32.totalorder %s329_s23, %s6216_s10  ;;  %s6221_s22 = sshll.u32 %s6321_s18, 4  ;;  %s6222_s22 = int_to_ptr.vmem [resolvable:$false] %s6221_s22 }
  0xca   : > { %s6223_s21 = scalar_lea.vmem %s6222_s22, 32  ;;  %p6224_p11 = scmp.lt.s32.totalorder %s329_s23, %s6222_s22 }
  0xcb   : > { %p6219_p1 = pnand %p6217_p3, %p6524_p13  ;;  %p6225_p10 = scmp.lt.s32.totalorder %s6223_s21, %s6216_s10 }
  0xcd   : > { %p6220_p5 = pneg %p6219_p1  ;;  %p6226_p8 = por %p6225_p10, %p6224_p11 }
  0xcf   : > { %p6227_p4 = pnand %p6226_p8, %p6220_p5 }
  0xd1   : > { %6230 = shalt.err (!%p6227_p4)
}
  0xd2   : > { %p9014_p12 = scmp.ne.s32.totalorder %s9008_s16, 0  ;;  %p9015_p2 = scmp.ne.s32.totalorder %s8997_s8, 0 }
  0xd4   : > { %5822 = dma.hbm_to_vmem [thread:$0]  (!%p9014_p12), %s6516_s3, 16, %s329_s23, %s6518_s12  }
  0xd5   : > { %337 = sbr.rel (%p9015_p2) target bundleno = 1230 (0x4ce), region = 48 }
  0xdc   : > { %s6647_s19 = sand.u32 1, %s6301_s25   ;;  %p9016_p13 = scmp.ne.s32.totalorder %s9004_s13, 0 }
  0xdd   : > { %s5773_s20 = smul.u32 328, %s6647_s19  ;;  %s340_s11 = scalar_lea.sflag [#allocation3], %s6647_s19 }
  0xdf   : > { %s6651_s28 = scalar_lea.vmem [#allocation2], %s5773_s20 }
  0xe0   : > { %6276 = dma.done.wait (%p9016_p13), %s340_s11, 5248  }
  0xe1   : > { %6278 = vsyncadd (%p9016_p13), %s340_s11, 4294962048  ;;  %p9017_p8 = scmp.eq.s32.totalorder %s6390_s30, 0 }
  0xe3   : > { %6280 = dma.done.wait (%p9017_p8), [#allocation6], 592   ;;  %p9018_p0 = pmov %p9017_p8 }
  0xe5   : > { %6282 = vsyncadd (%p9018_p0), [#allocation6], 4294966704  ;;  %p9019_p7 = pmov %p9018_p0 }
  0xe6   : > { %p9020_p9 = pmov %p9018_p0 }
  0xe7   : > { %6284 = dma.done.wait (%p9019_p7), [#allocation9], 32  }
  0xe8   : > { %6286 = vsyncadd (%p9020_p9), [#allocation9], 4294967264  ;;  %s364_s3 = sand.u32 1, %s6390_s30   ;;  %s367_s12 = scalar_lea.vmem [#allocation11], %s6647_s19 }
  0xe9   : > { %s365_s8 = scalar_lea.sflag [#allocation12], %s364_s3 }
  0xea   : > { %6288 = dma.done.wait (%p9016_p13), %s365_s8, 32  }
  0xeb   : > { %6290 = vsyncadd (%p9016_p13), %s365_s8, 4294967264  ;;  %v460_v0 = vld [vmem:[#allocation5 + $0x10] sm:$0xf]  ;;  %vm697_vm0 = vcmask 1041408   ;;  %v457_v1 = vld [vmem:[#allocation5 + $0x4] sm:$0xf] }
  0xec   : > { %v415_v2 = vld [vmem:[%s6651_s28] sm:$0xff]  ;;  %v469_v3 = vpack.c.bf16 %v460_v0, %v460_v0  ;;  %v466_v4 = vpack.c.bf16 %v457_v1, %v457_v1  ;;  %v416_v5 = vld [vmem:[%s6651_s28 + $0x8] sm:$0xff]  ;;  %v417_v6 = vld [vmem:[%s6651_s28 + $0x10] sm:$0xff]  ;;  %vm493_vm1 = vsmask.f32 7424  ;;  %vm642_vm2 = vcmask 31744  }
  0xed   : > { %v418_v7 = vld [vmem:[%s6651_s28 + $0x18] sm:$0xff]  ;;  %v6675_v8 = vpack.c.bf16 %v416_v5, %v415_v2  ;;  %v419_v10 = vld [vmem:[%s6651_s28 + $0x20] sm:$0xff]  ;;  %v420_v11 = vld [vmem:[%s6651_s28 + $0x28] sm:$0xff]  ;;  %vm1651_vm3 = vsmask.f32 6400  ;;  %vm2007_vm4 = vcmask 1045504  }
  0xee   : > { %v6677_v9 = vpack.c.bf16 %v418_v7, %v417_v6  ;;  %v461_v12 = vld [vmem:[#allocation5 + $0x14] sm:$0xf]  ;;  %5766 = vmatprep.subr.msk.bf16.mxu0 %vm697_vm0, %v469_v3  ;;  %5762 = vmatprep.subr.msk.bf16.mxu1 %vm697_vm0, %v466_v4  ;;  %v1792_v13 = vsel %vm697_vm0, %v469_v3, 0  ;;  %v699_v14 = vsel %vm697_vm0, %v466_v4, 0  ;;  %v6685_v15 = vpack.c.bf16 %v420_v11, %v419_v10  ;;  %v421_v17 = vld [vmem:[%s6651_s28 + $0x30] sm:$0xff]  ;;  %v424_v35 = vld [vmem:[%s6651_s28 + $0x48] sm:$0xff] }
  0xef   : > { %v470_v16 = vpack.c.bf16 %v461_v12, %v461_v12  ;;  %v422_v18 = vld [vmem:[%s6651_s28 + $0x38] sm:$0xff]  ;;  %5167 = vmatpush3.bf16.msra.mxu0 %v1792_v13  ;;  %5015 = vmatpush3.bf16.msra.mxu1 %v699_v14  ;;  %v495_v19 = vshrl.u32 %v6675_v8, 16  ;;  %v497_v20 = vshll.u32 %v6675_v8, 16  ;;  %v423_v34 = vld [vmem:[%s6651_s28 + $0x40] sm:$0xff]  ;;  %v425_v40 = vld [vmem:[%s6651_s28 + $0x50] sm:$0xff]  ;;  %vm1113_vm5 = vcmask 1046528  }
  0xf0   : > { %v502_v21 = vshll.u32 %v6677_v9, 16  ;;  %v506_v22 = vshrl.u32 %v6677_v9, 16  ;;  %v6694_v23 = vshll.u32 %v6685_v15, 16  ;;  %v6697_v24 = vshrl.u32 %v6685_v15, 16  ;;  %v426_v41 = vld [vmem:[%s6651_s28 + $0x58] sm:$0xff]  ;;  %v427_v46 = vld [vmem:[%s6651_s28 + $0x60] sm:$0xff] }
  0xf1   : > { %5767 = vmatprep.subr.msk.bf16.mxu0 %vm697_vm0, %v470_v16  ;;  %v6700_v25 = vpack.c.bf16 %v422_v18, %v421_v17  ;;  %v499_v26 = vrot.slane %v497_v20, 1  ;;  %v428_v47 = vld [vmem:[%s6651_s28 + $0x68] sm:$0xff]  ;;  %v6723_v51 = vpack.c.bf16 %v424_v35, %v423_v34  ;;  %v429_v52 = vld [vmem:[%s6651_s28 + $0x70] sm:$0xff]  ;;  %v430_v53 = vld [vmem:[%s6651_s28 + $0x78] sm:$0xff]  ;;  %v2100_v55 = vsel %vm697_vm0, %v470_v16, 0  ;;  %s375_s13 = scalar_lea.vmem [#allocation13], %s6647_s19 }
  0xf2   : > { %v504_v27 = vrot.slane %v502_v21, 1  ;;  %v1652_v28 = vrot.slane %v506_v22, 1  ;;  %v1653_v29 = vrot.slane %v502_v21, 2  ;;  %v1655_v30 = vrot.slane %v6697_v24, 1  ;;  %v431_v2 = vld [vmem:[%s6651_s28 + $0x80] sm:$0xff]  ;;  %v432_v3 = vld [vmem:[%s6651_s28 + $0x88] sm:$0xff] }
  0xf3   : > { %v1656_v31 = vrot.slane %v6694_v23, 2  ;;  %v512_v32 = vrot.slane %v6694_v23, 1  ;;  %v6706_v33 = vshll.u32 %v6700_v25, 16  ;;  %v500_v36 = vor.u32 %v499_v26, %v495_v19  ;;  %s5774_s16 = smul.u32 288, %s6647_s19  ;;  %s4347_s17 = scalar_lea.sflag [#allocation4], %s6647_s19 }
  0xf4   : > { %v508_v37 = vor.u32 %v506_v22, %v504_v27  ;;  %v1654_v38 = vor.u32 %v1653_v29, %v1652_v28  ;;  %v6711_v39 = vshrl.u32 %v6700_v25, 16  ;;  %v6731_v57 = vpack.c.bf16 %v426_v41, %v425_v40  ;;  %v433_v22 = vld [vmem:[%s6651_s28 + $0x90] sm:$0xff]  ;;  %s5775_s23 = smul.u32 4608, %s6390_s30  ;;  %p9245_p3 = scmp.ne.s32.totalorder %s9005_s14, 0 }
  0xf5   : > { %v1657_v42 = vor.u32 %v1656_v31, %v1655_v30  ;;  %v1660_v43 = vrot.slane %v6706_v33, 2  ;;  %v516_v44 = vor.u32 %v6697_v24, %v512_v32  ;;  %v520_v45 = vrot.slane %v6706_v33, 1  ;;  %v434_v30 = vld [vmem:[%s6651_s28 + $0x98] sm:$0xff]  ;;  %v435_v31 = vld [vmem:[%s6651_s28 + $0xa0] sm:$0xff]  ;;  %s8751_s29 = scalar_lea.vmem [#allocation14], %s5774_s16  ;;  %s6326_s9 = smov [#allocation14]  }
  0xf6   : > { %v505_v48 = vsel %vm493_vm1, %v500_v36, %v504_v27  ;;  %v513_v49 = vsel %vm493_vm1, %v508_v37, %v512_v32  ;;  %v1659_v50 = vrot.slane %v6711_v39, 1  ;;  %v6736_v59 = vshll.u32 %v6723_v51, 16  ;;  %v436_v32 = vld [vmem:[%s6651_s28 + $0xa8] sm:$0xff]  ;;  %s4360_s26 = sshll.u32 %s8751_s29, 4  ;;  %s8841_s1 = scalar_lea.hbm %s8898_s7, %s5775_s23  ;;  %s8843_s26 = int_to_ptr.vmem [resolvable:$true] %s4360_s26 }
  0xf7   : > { %5016 = vmatprep.mubr.msk.bf16.mxu1 %vm642_vm2, %v505_v48  ;;  %v1658_v54 = vsel %vm1651_vm3, %v1654_v38, %v1657_v42  ;;  %v521_v56 = vsel %vm493_vm1, %v516_v44, %v520_v45  ;;  %v6739_v60 = vshrl.u32 %v6723_v51, 16  ;;  %v6741_v61 = vpack.c.bf16 %v428_v47, %v427_v46  ;;  %s6231_s15 = scalar_lea.vmem %s8843_s26, 4608  ;;  %s6235_s10 = sshll.u32 %s6326_s9, 4  ;;  %s6236_s10 = int_to_ptr.vmem [resolvable:$false] %s6235_s10 }
  0xf8   : > { %5168 = vmatprep.mubr.msk.bf16.mxu0 %vm642_vm2, %v1658_v54  ;;  %5017 = vmatmul.mubr.msk.bf16.vlgmr.msra.gmra.mrb[0].mxu1 %vm642_vm2, %v513_v49  ;;  %v1661_v58 = vor.u32 %v1660_v43, %v1659_v50  ;;  %v524_v62 = vor.u32 %v6711_v39, %v520_v45  ;;  %v6746_v63 = vshll.u32 %v6731_v57, 16  ;;  %v6749_v0 = vshrl.u32 %v6731_v57, 16  ;;  %p6232_p6 = scmp.ne.s32.totalorder %s8843_s26, %s6231_s15  ;;  %s6237_s18 = scalar_lea.vmem %s6236_s10, 9216 }
  0xf9   : > { %5020 = vmatprep.mubr.msk.bf16.mxu1 %vm642_vm2, %v521_v56  ;;  %v6751_v1 = vpack.c.bf16 %v430_v53, %v429_v52  ;;  %v1663_v5 = vrot.slane %v6739_v60, 1  ;;  %v1664_v6 = vrot.slane %v6736_v59, 2  ;;  %v528_v7 = vrot.slane %v6736_v59, 1  ;;  %p6238_p11 = scmp.lt.s32.totalorder %s8843_s26, %s6236_s10  ;;  %p6239_p10 = scmp.lt.s32.totalorder %s6237_s18, %s6231_s15 }
  0xfa   : > { %v1662_v4 = vsel %vm1651_vm3, %v1657_v42, %v1661_v58  ;;  %v1667_v10 = vrot.slane %v6749_v0, 1  ;;  %v1668_v11 = vrot.slane %v6746_v63, 2  ;;  %v536_v12 = vrot.slane %v6746_v63, 1  ;;  %p6233_p1 = pnand %p6232_p6, %p9245_p3 }
  0xfb   : > { %5169 = vmatmul.mubr.msk.bf16.vlgmr.msra.gmra.mrb[0].mxu0 %vm642_vm2, %v1662_v4  ;;  %v6764_v13 = vshll.u32 %v6741_v61, 16  ;;  %v1665_v14 = vor.u32 %v1664_v6, %v1663_v5  ;;  %v532_v16 = vor.u32 %v6739_v60, %v528_v7  ;;  %v6768_v17 = vshrl.u32 %v6741_v61, 16  ;;  %v439_v6 = vld [vmem:[%s6651_s28 + $0xc0] sm:$0xff]  ;;  %p6240_p4 = por %p6239_p10, %p6238_p11 }
  0xfc   : > { %5205 = vmatpush3.bf16.msra.mxu0 %v2100_v55  ;;  %v6770_v18 = vpack.c.bf16 %v432_v3, %v431_v2  ;;  %v529_v19 = vsel %vm493_vm1, %v524_v62, %v528_v7  ;;  %v1669_v20 = vor.u32 %v1668_v11, %v1667_v10  ;;  %v6779_v29 = vshll.u32 %v6751_v1, 16  ;;  %v437_v2 = vld [vmem:[%s6651_s28 + $0xb0] sm:$0xff]  ;;  %v438_v3 = vld [vmem:[%s6651_s28 + $0xb8] sm:$0xff]  ;;  %v440_v7 = vld [vmem:[%s6651_s28 + $0xc8] sm:$0xff]  ;;  %p6234_p5 = pneg %p6233_p1 }
  0xfd   : > { %v1672_v21 = vrot.slane %v6764_v13, 2  ;;  %v1666_v26 = vsel %vm1651_vm3, %v1661_v58, %v1665_v14  ;;  %v537_v27 = vsel %vm493_vm1, %v532_v16, %v536_v12  ;;  %v1671_v28 = vrot.slane %v6768_v17, 1 }
  0xfe   : > { %5172 = vmatprep.mubr.msk.bf16.mxu0 %vm642_vm2, %v1666_v26  ;;  %v540_v34 = vor.u32 %v6749_v0, %v536_v12  ;;  %v544_v35 = vrot.slane %v6764_v13, 1  ;;  %v6788_v36 = vshrl.u32 %v6751_v1, 16  ;;  %v1670_v37 = vsel %vm1651_vm3, %v1665_v14, %v1669_v20  ;;  %p6241_p12 = pnand %p6240_p4, %p6234_p5 }
  0xff   : > { %v1673_v38 = vor.u32 %v1672_v21, %v1671_v28  ;;  %v1676_v40 = vrot.slane %v6779_v29, 2  ;;  %v6794_v41 = vshll.u32 %v6770_v18, 16  ;;  %v6799_v43 = vshrl.u32 %v6770_v18, 16 }
 0x100   : > { %5021 = vmatmul.mubr.msk.bf16.gmra.mrb[4].mxu1 %vm642_vm2, %v529_v19  ;;  %v1675_v42 = vrot.slane %v6788_v36, 1  ;;  %v6801_v44 = vpack.c.bf16 %v434_v30, %v433_v22  ;;  %v6803_v45 = vpack.c.bf16 %v436_v32, %v435_v31  ;;  %v548_v47 = vor.u32 %v6768_v17, %v544_v35  ;;  %v441_v32 = vld [vmem:[%s6651_s28 + $0xd0] sm:$0xff] }
 0x101   : > { %5024 = vmatprep.mubr.msk.bf16.mxu1 %vm642_vm2, %v537_v27  ;;  %v1674_v46 = vsel %vm1651_vm3, %v1669_v20, %v1673_v38  ;;  %v552_v48 = vrot.slane %v6779_v29, 1  ;;  %v1680_v49 = vrot.slane %v6794_v41, 2  ;;  %v1679_v50 = vrot.slane %v6799_v43, 1 }
 0x102   : > { %v1677_v52 = vor.u32 %v1676_v40, %v1675_v42  ;;  %v6813_v53 = vshll.u32 %v6801_v44, 16  ;;  %v6816_v54 = vshrl.u32 %v6801_v44, 16  ;;  %v545_v55 = vsel %vm493_vm1, %v540_v34, %v544_v35  ;;  %v442_v34 = vld [vmem:[%s6651_s28 + $0xd8] sm:$0xff] }
 0x103   : > { %5173 = vmatmul.mubr.msk.bf16.gmra.mrb[4].mxu0 %vm642_vm2, %v1670_v37  ;;  %v1681_v56 = vor.u32 %v1680_v49, %v1679_v50  ;;  %v6820_v58 = vshll.u32 %v6803_v45, 16  ;;  %v6823_v62 = vshrl.u32 %v6803_v45, 16  ;;  %v553_v4 = vsel %vm493_vm1, %v548_v47, %v552_v48  ;;  %v444_v47 = vld [vmem:[%s6651_s28 + $0xe8] sm:$0xff] }
 0x104   : > { %5176 = vmatprep.mubr.msk.bf16.mxu0 %vm642_vm2, %v1674_v46  ;;  %v560_v5 = vrot.slane %v6794_v41, 1  ;;  %v1678_v10 = vsel %vm1651_vm3, %v1673_v38, %v1677_v52  ;;  %v1683_v11 = vrot.slane %v6816_v54, 1  ;;  %v1684_v12 = vrot.slane %v6813_v53, 2  ;;  %v443_v46 = vld [vmem:[%s6651_s28 + $0xe0] sm:$0xff] }
 0x105   : > { %v6835_v14 = vpack.c.bf16 %v438_v3, %v437_v2  ;;  %v1682_v16 = vsel %vm1651_vm3, %v1677_v52, %v1681_v56  ;;  %v556_v19 = vor.u32 %v6788_v36, %v552_v48  ;;  %v1687_v20 = vrot.slane %v6823_v62, 1 }
 0x106   : > { %v1688_v21 = vrot.slane %v6820_v58, 2  ;;  %v564_v22 = vor.u32 %v6799_v43, %v560_v5  ;;  %v568_v26 = vrot.slane %v6813_v53, 1  ;;  %v6844_v27 = vpack.c.bf16 %v440_v7, %v439_v6 }
 0x107   : > { %v1685_v28 = vor.u32 %v1684_v12, %v1683_v11  ;;  %v6849_v30 = vshll.u32 %v6835_v14, 16  ;;  %v6852_v31 = vshrl.u32 %v6835_v14, 16  ;;  %v561_v35 = vsel %vm493_vm1, %v556_v19, %v560_v5 }
 0x108   : > { %5025 = vmatmul.mubr.msk.bf16.gmra.mrb[8].mxu1 %vm642_vm2, %v545_v55  ;;  %v1689_v37 = vor.u32 %v1688_v21, %v1687_v20  ;;  %v6858_v38 = vshll.u32 %v6844_v27, 16  ;;  %v6861_v40 = vshrl.u32 %v6844_v27, 16  ;;  %v569_v42 = vsel %vm493_vm1, %v564_v22, %v568_v26  ;;  %v445_v22 = vld [vmem:[%s6651_s28 + $0xf0] sm:$0xff] }
 0x109   : > { %5028 = vmatprep.mubr.msk.bf16.mxu1 %vm642_vm2, %v553_v4  ;;  %9021 = vst [vmem:[#allocation24_spill] sm:$0xff] %v6849_v30  ;;  %9022 = vst [vmem:[#allocation25_spill] sm:$0xff] %v6852_v31  ;;  %v576_v48 = vrot.slane %v6820_v58, 1  ;;  %v6867_v49 = vpack.c.bf16 %v442_v34, %v441_v32  ;;  %v1686_v50 = vsel %vm1651_vm3, %v1681_v56, %v1685_v28  ;;  %v1691_v55 = vrot.slane %v6852_v31, 1  ;;  %v447_v32 = vld [vmem:[%s6651_s28 + $0x100] sm:$0xff]  ;;  %v448_v34 = vld [vmem:[%s6651_s28 + $0x108] sm:$0xff] }
 0x10a   : > { %9023 = vst [vmem:[#allocation26_spill] sm:$0xff] %v6858_v38  ;;  %9024 = vst [vmem:[#allocation27_spill] sm:$0xff] %v6861_v40  ;;  %v572_v52 = vor.u32 %v6816_v54, %v568_v26  ;;  %v1692_v2 = vrot.slane %v6849_v30, 2  ;;  %v1690_v3 = vsel %vm1651_vm3, %v1685_v28, %v1689_v37  ;;  %v1695_v4 = vrot.slane %v6861_v40, 1  ;;  %v446_v26 = vld [vmem:[%s6651_s28 + $0xf8] sm:$0xff] }
 0x10b   : > { %5177 = vmatmul.mubr.msk.bf16.gmra.mrb[8].mxu0 %vm642_vm2, %v1678_v10  ;;  %v1696_v5 = vrot.slane %v6858_v38, 2  ;;  %v6878_v6 = vpack.c.bf16 %v444_v47, %v443_v46  ;;  %v580_v56 = vor.u32 %v6823_v62, %v576_v48  ;;  %v584_v7 = vrot.slane %v6849_v30, 1 }
 0x10c   : > { %5180 = vmatprep.mubr.msk.bf16.mxu0 %vm642_vm2, %v1682_v16  ;;  %v6884_v10 = vshll.u32 %v6867_v49, 16  ;;  %v6887_v11 = vshrl.u32 %v6867_v49, 16  ;;  %v1693_v12 = vor.u32 %v1692_v2, %v1691_v55  ;;  %v577_v16 = vsel %vm493_vm1, %v572_v52, %v576_v48 }
 0x10d   : > { %v1697_v19 = vor.u32 %v1696_v5, %v1695_v4  ;;  %v6892_v20 = vshll.u32 %v6878_v6, 16  ;;  %v6895_v21 = vshrl.u32 %v6878_v6, 16  ;;  %v585_v28 = vsel %vm493_vm1, %v580_v56, %v584_v7  ;;  %v456_v4 = vld [vmem:[#allocation5] sm:$0xf] }
 0x10e   : > { %9025 = vst [vmem:[#allocation28_spill] sm:$0xff] %v6884_v10  ;;  %9026 = vst [vmem:[#allocation29_spill] sm:$0xff] %v6887_v11  ;;  %v1694_v46 = vsel %vm1651_vm3, %v1689_v37, %v1693_v12  ;;  %v588_v47 = vor.u32 %v6852_v31, %v584_v7  ;;  %v592_v48 = vrot.slane %v6858_v38, 1  ;;  %v600_v5 = vrot.slane %v6884_v10, 1 }
 0x10f   : > { %9027 = vst [vmem:[#allocation30_spill] sm:$0xff] %v6892_v20  ;;  %9028 = vst [vmem:[#allocation31_spill] sm:$0xff] %v6895_v21  ;;  %v1698_v52 = vsel %vm1651_vm3, %v1693_v12, %v1697_v19  ;;  %v1703_v55 = vrot.slane %v6895_v21, 1  ;;  %v1704_v2 = vrot.slane %v6892_v20, 2  ;;  %vm2545_vm6 = vsmask.f32 5376 }
 0x110   : > { %5029 = vmatmul.mubr.msk.bf16.gmra.mrb[12].mxu1 %vm642_vm2, %v561_v35  ;;  %v1699_v35 = vrot.slane %v6887_v11, 1  ;;  %v596_v37 = vor.u32 %v6861_v40, %v592_v48  ;;  %vm2901_vm7 = vcmask 1044480  }
 0x111   : > { %5032 = vmatprep.mubr.msk.bf16.mxu1 %vm642_vm2, %v569_v42  ;;  %v1700_v42 = vrot.slane %v6884_v10, 2  ;;  %v452_v10 = vld [vmem:[%s6651_s28 + $0x128] sm:$0xff] }
 0x113   : > { %5181 = vmatmul.mubr.msk.bf16.gmra.mrb[12].mxu0 %vm642_vm2, %v1686_v50  ;;  %v6908_v50 = vpack.c.bf16 %v446_v26, %v445_v22  ;;  %v1701_v56 = vor.u32 %v1700_v42, %v1699_v35  ;;  %v593_v22 = vsel %vm493_vm1, %v588_v47, %v592_v48  ;;  %v1705_v26 = vor.u32 %v1704_v2, %v1703_v55  ;;  %v450_v35 = vld [vmem:[%s6651_s28 + $0x118] sm:$0xff]  ;;  %v462_v42 = vld [vmem:[#allocation5 + $0x18] sm:$0xf] }
 0x114   : > { %5184 = vmatprep.mubr.msk.bf16.mxu0 %vm642_vm2, %v1690_v3  ;;  %v6914_v3 = vpack.c.bf16 %v448_v34, %v447_v32  ;;  %v449_v34 = vld [vmem:[%s6651_s28 + $0x110] sm:$0xff]  ;;  %v604_v48 = vor.u32 %v6887_v11, %v600_v5  ;;  %v608_v55 = vrot.slane %v6892_v20, 1  ;;  %v6948_v40 = vpack.c.bf16 %v462_v42, %v462_v42 }
 0x115   : > { %v6921_v7 = vshll.u32 %v6908_v50, 16  ;;  %v6924_v12 = vshrl.u32 %v6908_v50, 16  ;;  %v1702_v47 = vsel %vm1651_vm3, %v1697_v19, %v1701_v56  ;;  %v458_v11 = vld [vmem:[#allocation5 + $0x8] sm:$0xf] }
 0x116   : > { %v6931_v32 = vshrl.u32 %v6914_v3, 16  ;;  %5768 = vmatprep.subr.msk.bf16.mxu0 %vm697_vm0, %v6948_v40 }
 0x117   : > { %9029 = vst [vmem:[#allocation32_spill] sm:$0xff] %v6921_v7  ;;  %9030 = vst [vmem:[#allocation33_spill] sm:$0xff] %v6924_v12  ;;  %v1707_v2 = vrot.slane %v6924_v12, 1  ;;  %v1708_v38 = vrot.slane %v6921_v7, 2  ;;  %v616_v20 = vrot.slane %v6921_v7, 1 }
 0x118   : > { %5033 = vmatmul.mubr.msk.bf16.gmra.mrb[16].mxu1 %vm642_vm2, %v577_v16  ;;  %v465_v16 = vpack.c.bf16 %v456_v4, %v456_v4  ;;  %9032 = vst [vmem:[#allocation35_spill] sm:$0xff] %v6931_v32  ;;  %v1711_v19 = vrot.slane %v6931_v32, 1 }
 0x119   : > { %5036 = vmatprep.mubr.msk.bf16.mxu1 %vm642_vm2, %v585_v28  ;;  %v6928_v28 = vshll.u32 %v6914_v3, 16 }
 0x11a   : > { %5763 = vmatprep.subr.msk.bf16.mxu1 %vm697_vm0, %v465_v16  ;;  %v915_v4 = vsel %vm697_vm0, %v465_v16, 0  ;;  %v1706_v16 = vsel %vm1651_vm3, %v1701_v56, %v1705_v26 }
 0x11b   : > { %5185 = vmatmul.mubr.msk.bf16.gmra.mrb[16].mxu0 %vm642_vm2, %v1694_v46  ;;  %9031 = vst [vmem:[#allocation34_spill] sm:$0xff] %v6928_v28  ;;  %v601_v46 = vsel %vm493_vm1, %v596_v37, %v600_v5  ;;  %5053 = vmatpush3.bf16.msra.mxu1 %v915_v4  ;;  %v6946_v37 = vpack.c.bf16 %v450_v35, %v449_v34  ;;  %v1712_v5 = vrot.slane %v6928_v28, 2 }
 0x11c   : > { %5188 = vmatprep.mubr.msk.bf16.mxu0 %vm642_vm2, %v1698_v52  ;;  %v451_v52 = vld [vmem:[%s6651_s28 + $0x120] sm:$0xff]  ;;  %v1709_v34 = vor.u32 %v1708_v38, %v1707_v2  ;;  %v620_v38 = vor.u32 %v6924_v12, %v616_v20  ;;  %v624_v2 = vrot.slane %v6928_v28, 1 }
 0x11d   : > { %9033 = vst [vmem:[#allocation36_spill] sm:$0xff] %v6946_v37  ;;  %v6954_v4 = vpack.c.bf16 %v452_v10, %v451_v52  ;;  %v6963_v56 = vshll.u32 %v6946_v37, 16  ;;  %v6966_v35 = vshrl.u32 %v6946_v37, 16  ;;  %v609_v10 = vsel %vm493_vm1, %v604_v48, %v608_v55 }
 0x11e   : > { %v1713_v42 = vor.u32 %v1712_v5, %v1711_v19  ;;  %v1710_v48 = vsel %vm1651_vm3, %v1705_v26, %v1709_v34  ;;  %v628_v26 = vor.u32 %v6931_v32, %v624_v2 }
 0x11f   : > { %9034 = vst [vmem:[#allocation37_spill] sm:$0xff] %v6954_v4  ;;  %9035 = vst [vmem:[#allocation38_spill] sm:$0xff] %v6963_v56  ;;  %v8924_v7 = vshll.u32 %v6954_v4, 16  ;;  %v1716_v19 = vrot.slane %v6963_v56, 2  ;;  %v632_v28 = vrot.slane %v6963_v56, 1 }
 0x120   : > { %5037 = vmatmul.mubr.msk.bf16.gmra.mrb[20].mxu1 %vm642_vm2, %v593_v22  ;;  %v612_v22 = vor.u32 %v6895_v21, %v608_v55  ;;  %9036 = vst [vmem:[#allocation39_spill] sm:$0xff] %v6966_v35  ;;  %v6972_v21 = vld [vmem:[%s6651_s28 + $0x130] sm:$0xff]  ;;  %v1715_v55 = vrot.slane %v6966_v35, 1 }
 0x121   : > { %5040 = vmatprep.mubr.msk.bf16.mxu1 %vm642_vm2, %v601_v46  ;;  %v8922_v46 = vshrl.u32 %v6954_v4, 16  ;;  %v6985_v5 = vpack.c.bf16 %v6972_v21, %v6972_v21 }
 0x123   : > { %5189 = vmatmul.mubr.msk.bf16.gmra.mrb[20].mxu0 %vm642_vm2, %v1702_v47  ;;  %v617_v47 = vsel %vm493_vm1, %v612_v22, %v616_v20  ;;  %9037 = vst [vmem:[#allocation40_spill] sm:$0xff] %v6985_v5  ;;  %v1714_v20 = vsel %vm1651_vm3, %v1709_v34, %v1713_v42  ;;  %v1725_v22 = vrot.slane %v8924_v7, 2  ;;  %v1729_v34 = vshrl.u32 %v6985_v5, 16 }
 0x124   : > { %5192 = vmatprep.mubr.msk.bf16.mxu0 %vm642_vm2, %v1706_v16  ;;  %v6977_v16 = vpack.c.bf16 %v451_v52, %v451_v52  ;;  %v1722_v52 = vrot.slane %v8922_v46, 1  ;;  %v1732_v12 = vshll.u32 %v6985_v5, 16  ;;  %v625_v46 = vsel %vm493_vm1, %v620_v38, %v624_v2 }
 0x125   : > { %v633_v7 = vsel %vm493_vm1, %v628_v26, %v632_v28  ;;  %v1731_v56 = vrot.slane %v1729_v34, 1  ;;  %v2015_v34 = vrot.slane %v6731_v57, 2 }
 0x126   : > { %v1726_v30 = vor.u32 %v1725_v22, %v1722_v52  ;;  %v1734_v32 = vrot.slane %v1732_v12, 2  ;;  %v463_v52 = vld [vmem:[#allocation5 + $0x1c] sm:$0xf]  ;;  %v2330_v22 = vsel %vm697_vm0, %v6948_v40, 0 }
 0x128   : > { %5041 = vmatmul.mubr.msk.bf16.gmra.mrb[24].mxu1 %vm642_vm2, %v609_v10  ;;  %v467_v10 = vpack.c.bf16 %v458_v11, %v458_v11  ;;  %v638_v11 = vshll.u32 %v6977_v16, 16  ;;  %v1735_v38 = vor.u32 %v1734_v32, %v1731_v56  ;;  %v2013_v32 = vrot.slane %v6723_v51, 2 }
 0x129   : > { %5044 = vmatprep.mubr.msk.bf16.mxu1 %vm642_vm2, %v617_v47  ;;  %v1717_v47 = vor.u32 %v1716_v19, %v1715_v55  ;;  %v636_v19 = vor.u32 %v6966_v35, %v632_v28  ;;  %v2011_v28 = vrot.slane %v6700_v25, 2  ;;  %v1115_v35 = vrot.slane %v6677_v9, 1 }
 0x12a   : > { %5764 = vmatprep.subr.msk.bf16.mxu1 %vm697_vm0, %v467_v10  ;;  %v1206_v56 = vsel %vm697_vm0, %v467_v10, 0  ;;  %v454_v10 = vld [vmem:[%s6651_s28 + $0x138] sm:$0xff] }
 0x12b   : > { %5193 = vmatmul.mubr.msk.bf16.gmra.mrb[24].mxu0 %vm642_vm2, %v1710_v48  ;;  %v1718_v48 = vsel %vm1651_vm3, %v1713_v42, %v1717_v47  ;;  %v1727_v55 = vsel %vm1651_vm3, %v1717_v47, %v1726_v30  ;;  %v2009_v42 = vrot.slane %v6685_v15, 2  ;;  %v7033_v26 = vsel %vm2007_vm4, %v2011_v28, %v2013_v32 }
 0x12c   : > { %5196 = vmatprep.mubr.msk.bf16.mxu0 %vm642_vm2, %v1714_v20  ;;  %v640_v20 = vrot.slane %v638_v11, 1  ;;  %v7035_v47 = vpack.c.bf16 %v463_v52, %v463_v52  ;;  %v7044_v40 = vpack.c.bf16 %v454_v10, %v6972_v21  ;;  %v2017_v11 = vrot.slane %v6741_v61, 2 }
 0x12d   : > { %v2029_v10 = vrot.slane %v6844_v27, 2 }
 0x12e   : > { %v641_v2 = vsel %vm493_vm1, %v636_v19, %v640_v20  ;;  %v7056_v19 = vsel %vm2007_vm4, %v2013_v32, %v2015_v34  ;;  %v7067_v20 = vsel %vm2007_vm4, %v2015_v34, %v2017_v11  ;;  %v2025_v32 = vrot.slane %v6803_v45, 2 }
 0x130   : > { %5045 = vmatmul.mubr.msk.bf16.gmra.mrb[28].mxu1 %vm642_vm2, %v625_v46  ;;  %v2008_v46 = vrot.slane %v6677_v9, 2 }
 0x131   : > { %5048 = vmatprep.mubr.msk.bf16.mxu1 %vm642_vm2, %v633_v7  ;;  %v1736_v7 = vsel %vm1651_vm3, %v1726_v30, %v1735_v38  ;;  %v7026_v30 = vsel %vm2007_vm4, %v2009_v42, %v2011_v28  ;;  %v459_v38 = vld [vmem:[#allocation5 + $0xc] sm:$0xf]  ;;  %v2023_v28 = vrot.slane %v6801_v44, 2 }
 0x132   : > { %v2010_v12 = vsel %vm2007_vm4, %v2008_v46, %v2009_v42  ;;  %v7074_v46 = vpack.c.bf16 %v459_v38, %v459_v38  ;;  %v2021_v42 = vrot.slane %v6770_v18, 2  ;;  %v2031_v38 = vrot.slane %v6867_v49, 2 }
 0x133   : > { %5197 = vmatmul.mubr.msk.bf16.gmra.mrb[28].mxu0 %vm642_vm2, %v1718_v48  ;;  %v7050_v48 = vrot.slane %v6954_v4, 2  ;;  %v7103_v52 = vsel %vm2007_vm4, %v2023_v28, %v2025_v32  ;;  %v1114_v4 = vrot.slane %v6675_v8, 1 }
 0x134   : > { %5200 = vmatprep.mubr.msk.bf16.mxu0 %vm642_vm2, %v1727_v55  ;;  %v8927_v55 = vrot.slane %v7044_v40, 2 }
 0x135   : > { %v1116_v31 = vsel %vm1113_vm5, %v1114_v4, %v1115_v35 }
 0x136   : > { %v7062_v21 = vsel %vm2007_vm4, %v7050_v48, %v8927_v55  ;;  %v2039_v55 = vrot.slane %v6946_v37, 2 }
 0x138   : > { %5049 = vmatmul.mubr.msk.bf16.gmra.mrb[32].mxu1 %vm642_vm2, %v641_v2  ;;  %v2019_v2 = vrot.slane %v6751_v1, 2 }
 0x139   : > { %5054 = vmatprep.mubr.msk.bf16.mxu1 %vm642_vm2, %v6675_v8  ;;  %v1117_v8 = vrot.slane %v6685_v15, 1 }
 0x13b   : > { %5201 = vmatmul.mubr.msk.bf16.gmra.mrb[32].mxu0 %vm642_vm2, %v1736_v7  ;;  %v7082_v7 = vsel %vm2007_vm4, %v2017_v11, %v2019_v2 }
 0x13c   : > { %5206 = vmatprep.mubr.msk.bf16.mxu0 %vm642_vm2, %v2010_v12  ;;  %v7087_v12 = vsel %vm2007_vm4, %v2019_v2, %v2021_v42  ;;  %v2033_v2 = vrot.slane %v6878_v6, 2 }
 0x140   : > { %5055 = vmatmul.mubr.msk.bf16.vlgmr.msra.gmra.mrb[0].mxu1 %vm642_vm2, %v6677_v9  ;;  %v1119_v9 = vrot.slane %v6700_v25, 1 }
 0x141   : > { %5058 = vmatprep.mubr.msk.bf16.mxu1 %vm642_vm2, %v6685_v15  ;;  %5091 = vmatpush3.bf16.msra.mxu1 %v1206_v56  ;;  %v7098_v56 = vsel %vm2007_vm4, %v2021_v42, %v2023_v28  ;;  %v7130_v42 = vsel %vm2007_vm4, %v2029_v10, %v2031_v38  ;;  %v7135_v28 = vsel %vm2007_vm4, %v2031_v38, %v2033_v2 }
 0x142   : > { %5765 = vmatprep.subr.msk.bf16.mxu1 %vm697_vm0, %v7074_v46  ;;  %v7191_v4 = vsel %vm1113_vm5, %v1117_v8, %v1119_v9 }
 0x143   : > { %5207 = vmatmul.mubr.msk.bf16.vlgmr.msra.gmra.mrb[0].mxu0 %vm642_vm2, %v7026_v30 }
 0x144   : > { %5243 = vmatpush3.bf16.msra.mxu0 %v2330_v22  ;;  %5210 = vmatprep.mubr.msk.bf16.mxu0 %vm642_vm2, %v7033_v26  ;;  %v2027_v22 = vrot.slane %v6835_v14, 2 }
 0x145   : > { %5769 = vmatprep.subr.msk.bf16.mxu0 %vm697_vm0, %v7035_v47 }
 0x146   : > { %v7114_v34 = vsel %vm2007_vm4, %v2025_v32, %v2027_v22  ;;  %v7119_v11 = vsel %vm2007_vm4, %v2027_v22, %v2029_v10  ;;  %v2035_v32 = vrot.slane %v6908_v50, 2  ;;  %v2037_v22 = vrot.slane %v6914_v3, 2 }
 0x148   : > { %5059 = vmatmul.mubr.msk.bf16.gmra.mrb[4].mxu1 %vm642_vm2, %v6700_v25  ;;  %v7146_v10 = vsel %vm2007_vm4, %v2033_v2, %v2035_v32  ;;  %v7151_v38 = vsel %vm2007_vm4, %v2035_v32, %v2037_v22  ;;  %v7161_v2 = vsel %vm2007_vm4, %v2037_v22, %v2039_v55  ;;  %v7167_v32 = vsel %vm2007_vm4, %v2039_v55, %v7050_v48 }
 0x149   : > { %5062 = vmatprep.mubr.msk.bf16.mxu1 %vm642_vm2, %v6723_v51  ;;  %v2043_v22 = vrot.slane %v6985_v5, 2  ;;  %v7188_v5 = vsel %vm1113_vm5, %v1115_v35, %v1117_v8  ;;  %v1127_v8 = vrot.slane %v6751_v1, 1 }
 0x14b   : > { %5211 = vmatmul.mubr.msk.bf16.gmra.mrb[4].mxu0 %vm642_vm2, %v7056_v19  ;;  %v2044_v55 = vsel %vm2007_vm4, %v7050_v48, %v2043_v22  ;;  %v1436_v48 = vsel %vm697_vm0, %v7074_v46, 0  ;;  %v464_v22 = vld [vmem:[#allocation5 + $0x20] sm:$0xf] }
 0x14c   : > { %5214 = vmatprep.mubr.msk.bf16.mxu0 %vm642_vm2, %v7067_v20  ;;  %v7202_v35 = vpack.c.bf16 %v464_v22, %v464_v22  ;;  %v1131_v22 = vrot.slane %v6801_v44, 1 }
 0x150   : > { %5063 = vmatmul.mubr.msk.bf16.gmra.mrb[8].mxu1 %vm642_vm2, %v6731_v57 }
 0x151   : > { %5066 = vmatprep.mubr.msk.bf16.mxu1 %vm642_vm2, %v6741_v61 }
 0x153   : > { %5215 = vmatmul.mubr.msk.bf16.gmra.mrb[8].mxu0 %vm642_vm2, %v7082_v7 }
 0x154   : > { %5218 = vmatprep.mubr.msk.bf16.mxu0 %vm642_vm2, %v7087_v12 }
 0x158   : > { %5067 = vmatmul.mubr.msk.bf16.gmra.mrb[12].mxu1 %vm642_vm2, %v6751_v1 }
 0x159   : > { %5070 = vmatprep.mubr.msk.bf16.mxu1 %vm642_vm2, %v6770_v18 }
 0x15b   : > { %5219 = vmatmul.mubr.msk.bf16.gmra.mrb[12].mxu0 %vm642_vm2, %v7098_v56 }
 0x15c   : > { %5222 = vmatprep.mubr.msk.bf16.mxu0 %vm642_vm2, %v7103_v52 }
 0x160   : > { %5071 = vmatmul.mubr.msk.bf16.gmra.mrb[16].mxu1 %vm642_vm2, %v6801_v44 }
 0x161   : > { %5074 = vmatprep.mubr.msk.bf16.mxu1 %vm642_vm2, %v6803_v45 }
 0x163   : > { %5223 = vmatmul.mubr.msk.bf16.gmra.mrb[16].mxu0 %vm642_vm2, %v7114_v34 }
 0x164   : > { %5226 = vmatprep.mubr.msk.bf16.mxu0 %vm642_vm2, %v7119_v11 }
 0x168   : > { %5075 = vmatmul.mubr.msk.bf16.gmra.mrb[20].mxu1 %vm642_vm2, %v6835_v14 }
 0x169   : > { %5078 = vmatprep.mubr.msk.bf16.mxu1 %vm642_vm2, %v6844_v27 }
 0x16b   : > { %5227 = vmatmul.mubr.msk.bf16.gmra.mrb[20].mxu0 %vm642_vm2, %v7130_v42 }
 0x16c   : > { %5230 = vmatprep.mubr.msk.bf16.mxu0 %vm642_vm2, %v7135_v28 }
 0x170   : > { %5079 = vmatmul.mubr.msk.bf16.gmra.mrb[24].mxu1 %vm642_vm2, %v6867_v49 }
 0x171   : > { %5082 = vmatprep.mubr.msk.bf16.mxu1 %vm642_vm2, %v6878_v6 }
 0x173   : > { %5231 = vmatmul.mubr.msk.bf16.gmra.mrb[24].mxu0 %vm642_vm2, %v7146_v10 }
 0x174   : > { %5234 = vmatprep.mubr.msk.bf16.mxu0 %vm642_vm2, %v7151_v38 }
 0x178   : > { %5083 = vmatmul.mubr.msk.bf16.gmra.mrb[28].mxu1 %vm642_vm2, %v6908_v50 }
 0x179   : > { %5086 = vmatprep.mubr.msk.bf16.mxu1 %vm642_vm2, %v6914_v3 }
 0x17b   : > { %5235 = vmatmul.mubr.msk.bf16.gmra.mrb[28].mxu0 %vm642_vm2, %v7161_v2 }
 0x17c   : > { %5238 = vmatprep.mubr.msk.bf16.mxu0 %vm642_vm2, %v7167_v32 }
 0x180   : > { %5087 = vmatmul.mubr.msk.bf16.gmra.mrb[32].mxu1 %vm642_vm2, %v6946_v37 }
 0x181   : > { %5092 = vmatprep.mubr.msk.bf16.mxu1 %vm642_vm2, %v1116_v31  ;;  %v2686_v31 = vsel %vm697_vm0, %v7035_v47, 0 }
 0x183   : > { %5239 = vmatmul.mubr.msk.bf16.gmra.mrb[32].mxu0 %vm642_vm2, %v2044_v55  ;;  %v1123_v55 = vrot.slane %v6731_v57, 1 }
 0x184   : > { %5244 = vmatprep.mubr.msk.bf16.mxu0 %vm642_vm2, %v7026_v30  ;;  %v1121_v30 = vrot.slane %v6723_v51, 1 }
 0x186   : > { %v7210_v46 = vsel %vm1113_vm5, %v1119_v9, %v1121_v30  ;;  %v7215_v47 = vsel %vm1113_vm5, %v1121_v30, %v1123_v55  ;;  %v1135_v30 = vrot.slane %v6835_v14, 1 }
 0x188   : > { %5093 = vmatmul.mubr.msk.bf16.vlgmr.msra.gmra.mrb[0].mxu1 %vm642_vm2, %v7188_v5 }
 0x189   : > { %5096 = vmatprep.mubr.msk.bf16.mxu1 %vm642_vm2, %v7191_v4  ;;  %5129 = vmatpush3.bf16.msra.mxu1 %v1436_v48  ;;  %v1129_v48 = vrot.slane %v6770_v18, 1 }
 0x18b   : > { %5245 = vmatmul.mubr.msk.bf16.vlgmr.msra.gmra.mrb[0].mxu0 %vm642_vm2, %v7033_v26  ;;  %v1125_v26 = vrot.slane %v6741_v61, 1 }
 0x18c   : > { %5281 = vmatpush3.bf16.msra.mxu0 %v2686_v31  ;;  %5248 = vmatprep.mubr.msk.bf16.mxu0 %vm642_vm2, %v7056_v19  ;;  %v1133_v31 = vrot.slane %v6803_v45, 1 }
 0x18d   : > { %5770 = vmatprep.subr.msk.bf16.mxu0 %vm697_vm0, %v7202_v35  ;;  %v7228_v19 = vsel %vm1113_vm5, %v1123_v55, %v1125_v26  ;;  %v7231_v9 = vsel %vm1113_vm5, %v1125_v26, %v1127_v8  ;;  %v1137_v55 = vrot.slane %v6844_v27, 1  ;;  %v1139_v26 = vrot.slane %v6867_v49, 1 }
 0x190   : > { %5097 = vmatmul.mubr.msk.bf16.gmra.mrb[4].mxu1 %vm642_vm2, %v7210_v46 }
 0x191   : > { %5100 = vmatprep.mubr.msk.bf16.mxu1 %vm642_vm2, %v7215_v47 }
 0x193   : > { %5249 = vmatmul.mubr.msk.bf16.gmra.mrb[4].mxu0 %vm642_vm2, %v7067_v20  ;;  %v7244_v20 = vsel %vm1113_vm5, %v1127_v8, %v1129_v48  ;;  %v1141_v8 = vrot.slane %v6878_v6, 1 }
 0x194   : > { %5252 = vmatprep.mubr.msk.bf16.mxu0 %vm642_vm2, %v7082_v7  ;;  %v7247_v7 = vsel %vm1113_vm5, %v1129_v48, %v1131_v22 }
 0x198   : > { %5101 = vmatmul.mubr.msk.bf16.gmra.mrb[8].mxu1 %vm642_vm2, %v7228_v19 }
 0x199   : > { %5104 = vmatprep.mubr.msk.bf16.mxu1 %vm642_vm2, %v7231_v9 }
 0x19b   : > { %5253 = vmatmul.mubr.msk.bf16.gmra.mrb[8].mxu0 %vm642_vm2, %v7087_v12  ;;  %v7260_v12 = vsel %vm1113_vm5, %v1131_v22, %v1133_v31  ;;  %v1145_v22 = vrot.slane %v6914_v3, 1 }
 0x19c   : > { %5256 = vmatprep.mubr.msk.bf16.mxu0 %vm642_vm2, %v7098_v56  ;;  %v7263_v56 = vsel %vm1113_vm5, %v1133_v31, %v1135_v30  ;;  %v7303_v31 = vrot.slane %v6946_v37, 1 }
 0x1a0   : > { %5105 = vmatmul.mubr.msk.bf16.gmra.mrb[12].mxu1 %vm642_vm2, %v7244_v20 }
 0x1a1   : > { %5108 = vmatprep.mubr.msk.bf16.mxu1 %vm642_vm2, %v7247_v7 }
 0x1a3   : > { %5257 = vmatmul.mubr.msk.bf16.gmra.mrb[12].mxu0 %vm642_vm2, %v7103_v52  ;;  %v7276_v52 = vsel %vm1113_vm5, %v1135_v30, %v1137_v55  ;;  %v7315_v30 = vsel %vm1113_vm5, %v1145_v22, %v7303_v31 }
 0x1a4   : > { %5260 = vmatprep.mubr.msk.bf16.mxu0 %vm642_vm2, %v7114_v34  ;;  %v7279_v34 = vsel %vm1113_vm5, %v1137_v55, %v1139_v26  ;;  %v1149_v55 = vrot.slane %v6977_v16, 1 }
 0x1a8   : > { %5109 = vmatmul.mubr.msk.bf16.gmra.mrb[16].mxu1 %vm642_vm2, %v7260_v12 }
 0x1a9   : > { %5112 = vmatprep.mubr.msk.bf16.mxu1 %vm642_vm2, %v7263_v56 }
 0x1ab   : > { %5261 = vmatmul.mubr.msk.bf16.gmra.mrb[16].mxu0 %vm642_vm2, %v7119_v11  ;;  %v1143_v11 = vrot.slane %v6908_v50, 1 }
 0x1ac   : > { %5264 = vmatprep.mubr.msk.bf16.mxu0 %vm642_vm2, %v7130_v42  ;;  %v7292_v42 = vsel %vm1113_vm5, %v1139_v26, %v1141_v8 }
 0x1ad   : > { %v7295_v48 = vsel %vm1113_vm5, %v1141_v8, %v1143_v11  ;;  %v2549_v8 = vrot.slane %v6711_v39, 2  ;;  %v2554_v39 = vrot.slane %v6736_v59, 3 }
 0x1b0   : > { %5113 = vmatmul.mubr.msk.bf16.gmra.mrb[20].mxu1 %vm642_vm2, %v7276_v52 }
 0x1b1   : > { %5116 = vmatprep.mubr.msk.bf16.mxu1 %vm642_vm2, %v7279_v34 }
 0x1b3   : > { %5265 = vmatmul.mubr.msk.bf16.gmra.mrb[20].mxu0 %vm642_vm2, %v7135_v28  ;;  %v7310_v28 = vsel %vm1113_vm5, %v1143_v11, %v1145_v22  ;;  %v2550_v11 = vrot.slane %v6706_v33, 3  ;;  %v1150_v22 = vsel %vm1113_vm5, %v7303_v31, %v1149_v55  ;;  %v2553_v33 = vrot.slane %v6739_v60, 2 }
 0x1b4   : > { %5268 = vmatprep.mubr.msk.bf16.mxu0 %vm642_vm2, %v7146_v10  ;;  %v455_v10 = vld [vmem:[%s6651_s28 + $0x140] sm:$0xff]  ;;  %v2558_v55 = vrot.slane %v6746_v63, 3  ;;  %v2561_v60 = vrot.slane %v6768_v17, 2 }
 0x1b5   : > { %v7320_v26 = vpack.c.bf16 %v455_v10, %v455_v10  ;;  %v2551_v37 = vor.u32 %v2550_v11, %v2549_v8  ;;  %v2565_v8 = vrot.slane %v6788_v36, 2  ;;  %v2566_v11 = vrot.slane %v6779_v29, 3 }
 0x1b6   : > { %v2573_v36 = vrot.slane %v6816_v54, 2  ;;  %v9039_v54 = vld [vmem:[#allocation25_spill] sm:$0xff] }
 0x1b7   : > { %v2321_v16 = vrot.slane %v7320_v26, 2 }
 0x1b8   : > { %5117 = vmatmul.mubr.msk.bf16.gmra.mrb[24].mxu1 %vm642_vm2, %v7292_v42 }
 0x1b9   : > { %5120 = vmatprep.mubr.msk.bf16.mxu1 %vm642_vm2, %v7295_v48 }
 0x1bb   : > { %5269 = vmatmul.mubr.msk.bf16.gmra.mrb[24].mxu0 %vm642_vm2, %v7151_v38  ;;  %v2546_v38 = vrot.slane %v6697_v24, 2 }
 0x1bc   : > { %5272 = vmatprep.mubr.msk.bf16.mxu0 %vm642_vm2, %v7161_v2  ;;  %v2547_v2 = vrot.slane %v6694_v23, 3  ;;  %v9038_v23 = vrot.slane %v7044_v40, 2 }
 0x1be   : > { %v2548_v10 = vor.u32 %v2547_v2, %v2546_v38  ;;  %v2322_v24 = vsel %vm2007_vm4, %v9038_v23, %v2321_v16  ;;  %v2555_v38 = vor.u32 %v2554_v39, %v2553_v33 }
 0x1c0   : > { %5121 = vmatmul.mubr.msk.bf16.gmra.mrb[28].mxu1 %vm642_vm2, %v7310_v28  ;;  %v2556_v59 = vsel %vm2545_vm6, %v2551_v37, %v2555_v38 }
 0x1c1   : > { %5124 = vmatprep.mubr.msk.bf16.mxu1 %vm642_vm2, %v7315_v30 }
 0x1c3   : > { %5273 = vmatmul.mubr.msk.bf16.gmra.mrb[28].mxu0 %vm642_vm2, %v7167_v32  ;;  %v2557_v32 = vrot.slane %v6749_v0, 2  ;;  %v2994_v0 = vsel %vm697_vm0, %v7202_v35, 0  ;;  %v2570_v35 = vrot.slane %v6794_v41, 3 }
 0x1c4   : > { %5276 = vmatprep.mubr.msk.bf16.mxu0 %vm642_vm2, %v7062_v21  ;;  %v2552_v21 = vsel %vm2545_vm6, %v2548_v10, %v2551_v37  ;;  %v2567_v37 = vor.u32 %v2566_v11, %v2565_v8  ;;  %v9040_v10 = vld [vmem:[#allocation24_spill] sm:$0xff]  ;;  %v9047_v11 = vld [vmem:[#allocation33_spill] sm:$0xff] }
 0x1c5   : > { %v2559_v2 = vor.u32 %v2558_v55, %v2557_v32  ;;  %v2582_v23 = vrot.slane %v9040_v10, 3  ;;  %v9043_v32 = vld [vmem:[#allocation29_spill] sm:$0xff] }
 0x1c6   : > { %v2589_v55 = vrot.slane %v9043_v32, 2  ;;  %v9053_v10 = vld [vmem:[#allocation37_spill] sm:$0xff]  ;;  %v2626_v32 = vshll.u32 %v7320_v26, 16 }
 0x1c7   : > { %v2560_v63 = vsel %vm2545_vm6, %v2555_v38, %v2559_v2  ;;  %v9044_v38 = vld [vmem:[#allocation28_spill] sm:$0xff] }
 0x1c8   : > { %5125 = vmatmul.mubr.msk.bf16.gmra.mrb[32].mxu1 %vm642_vm2, %v1150_v22  ;;  %v2581_v22 = vrot.slane %v9039_v54, 2  ;;  %v2614_v54 = vshrl.u32 %v7044_v40, 16 }
 0x1c9   : > { %5130 = vmatprep.mubr.msk.bf16.mxu1 %vm642_vm2, %v7188_v5  ;;  %v2562_v5 = vrot.slane %v6764_v13, 3 }
 0x1cb   : > { %5277 = vmatmul.mubr.msk.bf16.gmra.mrb[32].mxu0 %vm642_vm2, %v2322_v24  ;;  %v2563_v17 = vor.u32 %v2562_v5, %v2561_v60  ;;  %v2583_v24 = vor.u32 %v2582_v23, %v2581_v22  ;;  %v9045_v5 = vld [vmem:[#allocation31_spill] sm:$0xff]  ;;  %v2617_v22 = vshll.u32 %v7044_v40, 16  ;;  %v9054_v23 = vshrl.u32 %v9053_v10, 16 }
 0x1cc   : > { %5282 = vmatprep.mubr.msk.bf16.mxu0 %vm642_vm2, %v2552_v21 }
 0x1cd   : > { %v2564_v13 = vsel %vm2545_vm6, %v2559_v2, %v2563_v17  ;;  %v2568_v29 = vsel %vm2545_vm6, %v2563_v17, %v2567_v37  ;;  %v2590_v2 = vrot.slane %v9044_v38, 3  ;;  %v2597_v17 = vrot.slane %v9047_v11, 2 }
 0x1ce   : > { %v2905_v11 = vrot.slane %v6723_v51, 3  ;;  %v2913_v51 = vrot.slane %v6770_v18, 3  ;;  %v2921_v18 = vrot.slane %v6844_v27, 3  ;;  %v2929_v27 = vrot.slane %v6914_v3, 3 }
 0x1cf   : > { %v2937_v3 = vrot.slane %v7320_v26, 3 }
 0x1d0   : > { %5131 = vmatmul.mubr.msk.bf16.vlgmr.msra.gmra.mrb[0].mxu1 %vm642_vm2, %v7191_v4  ;;  %v2569_v4 = vrot.slane %v6799_v43, 2  ;;  %v2577_v43 = vrot.slane %v6823_v62, 2  ;;  %v9041_v62 = vld [vmem:[#allocation27_spill] sm:$0xff] }
 0x1d1   : > { %5134 = vmatprep.mubr.msk.bf16.mxu1 %vm642_vm2, %v7210_v46  ;;  %v2574_v46 = vrot.slane %v6813_v53, 3  ;;  %v2585_v33 = vrot.slane %v9041_v62, 2 }
 0x1d3   : > { %5283 = vmatmul.mubr.msk.bf16.vlgmr.msra.gmra.mrb[0].mxu0 %vm642_vm2, %v2556_v59  ;;  %v2575_v16 = vor.u32 %v2574_v46, %v2573_v36  ;;  %v2591_v59 = vor.u32 %v2590_v2, %v2589_v55 }
 0x1d4   : > { %5319 = vmatpush3.bf16.msra.mxu0 %v2994_v0  ;;  %5286 = vmatprep.mubr.msk.bf16.mxu0 %vm642_vm2, %v2560_v63  ;;  %v2593_v0 = vrot.slane %v9045_v5, 2 }
 0x1d8   : > { %5135 = vmatmul.mubr.msk.bf16.gmra.mrb[4].mxu1 %vm642_vm2, %v7215_v47  ;;  %v2571_v47 = vor.u32 %v2570_v35, %v2569_v4 }
 0x1d9   : > { %5138 = vmatprep.mubr.msk.bf16.mxu1 %vm642_vm2, %v7228_v19  ;;  %v2578_v19 = vrot.slane %v6820_v58, 3 }
 0x1da   : > { %v2572_v41 = vsel %vm2545_vm6, %v2567_v37, %v2571_v47  ;;  %v2576_v53 = vsel %vm2545_vm6, %v2571_v47, %v2575_v16  ;;  %v9048_v37 = vld [vmem:[#allocation32_spill] sm:$0xff] }
 0x1db   : > { %5287 = vmatmul.mubr.msk.bf16.gmra.mrb[4].mxu0 %vm642_vm2, %v2564_v13  ;;  %v2598_v13 = vrot.slane %v9048_v37, 3 }
 0x1dc   : > { %5290 = vmatprep.mubr.msk.bf16.mxu0 %vm642_vm2, %v2568_v29  ;;  %v9049_v29 = vld [vmem:[#allocation35_spill] sm:$0xff] }
 0x1dd   : > { %v2599_v4 = vor.u32 %v2598_v13, %v2597_v17  ;;  %v2601_v36 = vrot.slane %v9049_v29, 2  ;;  %v2907_v17 = vrot.slane %v6731_v57, 3  ;;  %v2911_v13 = vrot.slane %v6751_v1, 3 }
 0x1de   : > { %v2915_v57 = vrot.slane %v6801_v44, 3  ;;  %v2919_v1 = vrot.slane %v6835_v14, 3  ;;  %v2923_v44 = vrot.slane %v6867_v49, 3  ;;  %v2927_v14 = vrot.slane %v6908_v50, 3  ;;  %v9057_v49 = vld [vmem:[#allocation36_spill] sm:$0xff] }
 0x1df   : > { %v2935_v50 = vrot.slane %v7044_v40, 3 }
 0x1e0   : > { %5139 = vmatmul.mubr.msk.bf16.gmra.mrb[8].mxu1 %vm642_vm2, %v7231_v9  ;;  %v2579_v9 = vor.u32 %v2578_v19, %v2577_v43  ;;  %v9052_v43 = vld [vmem:[#allocation38_spill] sm:$0xff]  ;;  %v2916_v29 = vsel %vm2901_vm7, %v2913_v51, %v2915_v57 }
 0x1e1   : > { %5142 = vmatprep.mubr.msk.bf16.mxu1 %vm642_vm2, %v7244_v20  ;;  %v9042_v20 = vld [vmem:[#allocation26_spill] sm:$0xff]  ;;  %v2606_v19 = vrot.slane %v9052_v43, 3  ;;  %v2931_v43 = vrot.slane %v9057_v49, 3 }
 0x1e2   : > { %v2580_v58 = vsel %vm2545_vm6, %v2575_v16, %v2579_v9  ;;  %v2586_v39 = vrot.slane %v9042_v20, 3  ;;  %v2584_v21 = vsel %vm2545_vm6, %v2579_v9, %v2583_v24  ;;  %v9051_v16 = vld [vmem:[#allocation39_spill] sm:$0xff]  ;;  %v2609_v9 = vrot.slane %v9054_v23, 2 }
 0x1e3   : > { %5291 = vmatmul.mubr.msk.bf16.gmra.mrb[8].mxu0 %vm642_vm2, %v2572_v41  ;;  %v2605_v41 = vrot.slane %v9051_v16, 2  ;;  %v2619_v20 = vrot.slane %v2617_v22, 3  ;;  %v2938_v22 = vsel %vm2901_vm7, %v2935_v50, %v2937_v3 }
 0x1e4   : > { %5294 = vmatprep.mubr.msk.bf16.mxu0 %vm642_vm2, %v2576_v53 }
 0x1e5   : > { %v2607_v53 = vor.u32 %v2606_v19, %v2605_v41  ;;  %v2930_v19 = vsel %vm2901_vm7, %v2927_v14, %v2929_v27 }
 0x1e8   : > { %5143 = vmatmul.mubr.msk.bf16.gmra.mrb[12].mxu1 %vm642_vm2, %v7247_v7  ;;  %v2587_v7 = vor.u32 %v2586_v39, %v2585_v33  ;;  %v2616_v33 = vrot.slane %v2614_v54, 2  ;;  %v1425_v39 = vrot.slane %v9053_v10, 1 }
 0x1e9   : > { %5146 = vmatprep.mubr.msk.bf16.mxu1 %vm642_vm2, %v7260_v12  ;;  %v9046_v12 = vld [vmem:[#allocation30_spill] sm:$0xff] }
 0x1ea   : > { %v2588_v60 = vsel %vm2545_vm6, %v2583_v24, %v2587_v7  ;;  %v2594_v63 = vrot.slane %v9046_v12, 3  ;;  %v2592_v8 = vsel %vm2545_vm6, %v2587_v7, %v2591_v59  ;;  %v9055_v24 = vshll.u32 %v9053_v10, 16 }
 0x1eb   : > { %5295 = vmatmul.mubr.msk.bf16.gmra.mrb[12].mxu0 %vm642_vm2, %v2580_v58  ;;  %v2620_v55 = vor.u32 %v2619_v20, %v2616_v33  ;;  %v1426_v38 = vsel %vm1113_vm5, %v7303_v31, %v1425_v39  ;;  %v2628_v7 = vrot.slane %v2626_v32, 3  ;;  %v2902_v12 = vrot.slane %v6685_v15, 3 }
 0x1ec   : > { %5298 = vmatprep.mubr.msk.bf16.mxu0 %vm642_vm2, %v2584_v21  ;;  %v2610_v58 = vrot.slane %v9055_v24, 3  ;;  %v2623_v21 = vshrl.u32 %v7320_v26, 16  ;;  %v2908_v15 = vsel %vm2901_vm7, %v2905_v11, %v2907_v17  ;;  %v8940_v26 = vmov 0.0|0.0  }
 0x1ed   : > { %5426 = vmatprep.subr.bf16.mxu1 %v8940_v26 }
 0x1ee   : > { %v2625_v2 = vrot.slane %v2623_v21, 2 }
 0x1f0   : > { %5147 = vmatmul.mubr.msk.bf16.gmra.mrb[16].mxu1 %vm642_vm2, %v7263_v56  ;;  %v2595_v56 = vor.u32 %v2594_v63, %v2593_v0  ;;  %v2629_v0 = vor.u32 %v2628_v7, %v2625_v2  ;;  %v9058_v2 = vmov 0  ;;  %v9061_v7 = vmov 0 }
 0x1f1   : > { %5150 = vmatprep.mubr.msk.bf16.mxu1 %vm642_vm2, %v7276_v52  ;;  %v9050_v52 = vld [vmem:[#allocation34_spill] sm:$0xff] }
 0x1f2   : > { %v2596_v35 = vsel %vm2545_vm6, %v2591_v59, %v2595_v56  ;;  %v2602_v46 = vrot.slane %v9050_v52, 3  ;;  %v2600_v47 = vsel %vm2545_vm6, %v2595_v56, %v2599_v4  ;;  %v2630_v63 = vsel %vm2545_vm6, %v2620_v55, %v2629_v0 }
 0x1f3   : > { %5299 = vmatmul.mubr.msk.bf16.gmra.mrb[16].mxu0 %vm642_vm2, %v2588_v60  ;;  %v9056_v60 = vld [vmem:[#allocation40_spill] sm:$0xff] }
 0x1f4   : > { %5302 = vmatprep.mubr.msk.bf16.mxu0 %vm642_vm2, %v2592_v8  ;;  %v1427_v5 = vrot.slane %v9056_v60, 1 }
 0x1f6   : > { %v1428_v31 = vsel %vm1113_vm5, %v1425_v39, %v1427_v5 }
 0x1f8   : > { %5151 = vmatmul.mubr.msk.bf16.gmra.mrb[20].mxu1 %vm642_vm2, %v7279_v34  ;;  %v2603_v34 = vor.u32 %v2602_v46, %v2601_v36  ;;  %v2922_v46 = vsel %vm2901_vm7, %v2919_v1, %v2921_v18 }
 0x1f9   : > { %5154 = vmatprep.mubr.msk.bf16.mxu1 %vm642_vm2, %v7292_v42 }
 0x1fa   : > { %v2604_v42 = vsel %vm2545_vm6, %v2599_v4, %v2603_v34  ;;  %v2608_v62 = vsel %vm2545_vm6, %v2603_v34, %v2607_v53  ;;  %v2932_v34 = vsel %vm2901_vm7, %v2929_v27, %v2931_v43 }
 0x1fb   : > { %5303 = vmatmul.mubr.msk.bf16.gmra.mrb[20].mxu0 %vm642_vm2, %v2596_v35  ;;  %v2914_v35 = vsel %vm2901_vm7, %v2911_v13, %v2913_v51  ;;  %v9070_v51 = vmov 0 }
 0x1fc   : > { %5306 = vmatprep.mubr.msk.bf16.mxu0 %vm642_vm2, %v2600_v47  ;;  %v2924_v47 = vsel %vm2901_vm7, %v2921_v18, %v2923_v44 }
 0x200   : > { %5155 = vmatmul.mubr.msk.bf16.gmra.mrb[24].mxu1 %vm642_vm2, %v7295_v48  ;;  %v2611_v48 = vor.u32 %v2610_v58, %v2609_v9 }
 0x201   : > { %5158 = vmatprep.mubr.msk.bf16.mxu1 %vm642_vm2, %v7310_v28 }
 0x202   : > { %v2612_v28 = vsel %vm2545_vm6, %v2607_v53, %v2611_v48  ;;  %v2621_v59 = vsel %vm2545_vm6, %v2611_v48, %v2620_v55 }
 0x203   : > { %5307 = vmatmul.mubr.msk.bf16.gmra.mrb[24].mxu0 %vm642_vm2, %v2604_v42  ;;  %v3252_v42 = vlaneseq }
 0x204   : > { %5310 = vmatprep.mubr.msk.bf16.mxu0 %vm642_vm2, %v2608_v62 }
 0x205   : > { %v7508_v23 = vshrl.u32 %v3252_v42, 7  ;;  %v3733_v24 = vand.u32 127, %v3252_v42  ;;  %v9085_v42 = vmov 0 }
 0x207   : > { %v7512_v40 = vcvt.s32.f32 %v7508_v23  ;;  %v3255_v33 = vadd.s32 16, %v7508_v23  ;;  %v3256_v20 = vadd.s32 24, %v7508_v23  ;;  %v3734_v39 = vcvt.s32.f32 %v3733_v24 }
 0x208   : > { %5159 = vmatmul.mubr.msk.bf16.gmra.mrb[28].mxu1 %vm642_vm2, %v7315_v30  ;;  %v2903_v30 = vrot.slane %v6700_v25, 3  ;;  %v2909_v25 = vrot.slane %v6741_v61, 3  ;;  %v2917_v61 = vrot.slane %v6803_v45, 3  ;;  %v2925_v45 = vrot.slane %v6878_v6, 3 }
 0x209   : > { %5162 = vmatprep.mubr.msk.bf16.mxu1 %vm642_vm2, %v1426_v38  ;;  %v2933_v6 = vrot.slane %v9053_v10, 3  ;;  %v3254_v10 = vadd.s32 8, %v7508_v23  ;;  %v3736_v58 = vmul.f32 0.0625, %v7512_v40  ;;  %v3768_v32 = vmul.f32 0.0625, %v3734_v39 }
 0x20a   : > { %v2904_v8 = vsel %vm2901_vm7, %v2902_v12, %v2903_v30  ;;  %v2906_v37 = vsel %vm2901_vm7, %v2903_v30, %v2905_v11  ;;  %v2910_v56 = vsel %vm2901_vm7, %v2907_v17, %v2909_v25  ;;  %v2912_v4 = vsel %vm2901_vm7, %v2909_v25, %v2911_v13 }
 0x20b   : > { %5311 = vmatmul.mubr.msk.bf16.gmra.mrb[28].mxu0 %vm642_vm2, %v2612_v28  ;;  %v2918_v36 = vsel %vm2901_vm7, %v2915_v57, %v2917_v61  ;;  %v2920_v52 = vsel %vm2901_vm7, %v2917_v61, %v2919_v1  ;;  %v2926_v16 = vsel %vm2901_vm7, %v2923_v44, %v2925_v45  ;;  %v2928_v41 = vsel %vm2901_vm7, %v2925_v45, %v2927_v14 }
 0x20c   : > { %5314 = vmatprep.mubr.msk.bf16.mxu0 %vm642_vm2, %v2621_v59  ;;  %v2934_v53 = vsel %vm2901_vm7, %v2931_v43, %v2933_v6  ;;  %v2936_v54 = vsel %vm2901_vm7, %v2933_v6, %v2935_v50  ;;  %v7514_v9 = vcvt.s32.f32 %v3254_v10  ;;  %v3752_v48 = vfloor.f32 %v3736_v58 }
 0x20d   : > { %v7521_v55 = vcvt.s32.f32 %v3255_v33  ;;  %v7523_v38 = vcvt.s32.f32 %v3256_v20  ;;  %v7525_v28 = vfloor.f32 %v3768_v32  ;;  %v3257_v5 = vadd.s32 32, %v7508_v23 }
 0x20e   : > { %v3737_v62 = vmul.f32 0.0625, %v7514_v9  ;;  %v3258_v0 = vadd.s32 40, %v7508_v23  ;;  %v3259_v25 = vadd.s32 48, %v7508_v23  ;;  %v3260_v13 = vadd.s32 56, %v7508_v23 }
 0x20f   : > { %vm7528_vm8 = vcmp.eq.f32.partialorder %v3752_v48, %v7525_v28  ;;  %v3738_v59 = vmul.f32 0.0625, %v7521_v55  ;;  %v3739_v60 = vmul.f32 0.0625, %v7523_v38  ;;  %v7566_v11 = vcvt.s32.f32 %v3257_v5 }
 0x210   : > { %5163 = vmatmul.mubr.msk.bf16.gmra.mrb[32].mxu1 %vm642_vm2, %v1428_v31  ;;  %v3753_v21 = vfloor.f32 %v3737_v62  ;;  %v9059_v2 = vsel %vm7528_vm8, 4294967295, %v9058_v2  ;;  %v8942_v31 = vmov 1.0|1.0   ;;  %v7568_v17 = vcvt.s32.f32 %v3258_v0 }
 0x211   : > { %9060 = vst [vmem:[#allocation25_spill] sm:$0xff] %v9059_v2  ;;  %v3754_v12 = vfloor.f32 %v3738_v59  ;;  %v3755_v30 = vfloor.f32 %v3739_v60  ;;  %v9073_v57 = vmov 0  ;;  %v3261_v45 = vadd.s32 64, %v7508_v23 }
 0x212   : > { %vm7533_vm9 = vcmp.eq.f32.partialorder %v3753_v21, %v7525_v28  ;;  %v3262_v14 = vadd.s32 72, %v7508_v23  ;;  %v3263_v10 = vadd.s32 80, %v7508_v23  ;;  %v3264_v24 = vadd.s32 88, %v7508_v23 }
 0x213   : > { %5315 = vmatmul.mubr.msk.bf16.gmra.mrb[32].mxu0 %vm642_vm2, %v2630_v63  ;;  %v9062_v7 = vsel %vm7533_vm9, 4294967295, %v9061_v7  ;;  %vm8939_vm10 = vmpackc.low %vm7533_vm9, %vm7528_vm8  ;;  %vm7553_vm11 = vcmp.eq.f32.partialorder %v3754_v12, %v7525_v28  ;;  %v9064_v63 = vmov 0  ;;  %vm7558_vm12 = vcmp.eq.f32.partialorder %v3755_v30, %v7525_v28 }
 0x214   : > { %5320 = vmatprep.mubr.msk.bf16.mxu0 %vm642_vm2, %v2904_v8  ;;  %9063 = vst [vmem:[#allocation24_spill] sm:$0xff] %v9062_v7  ;;  %5428 = vmatpush3.bf16.msk.msra.mxu1 %vm8939_vm10, %v8942_v31  ;;  %v9065_v63 = vsel %vm7553_vm11, 4294967295, %v9064_v63  ;;  %v9067_v8 = vmov 0  ;;  %vm8938_vm13 = vmpackc.low %vm7558_vm12, %vm7553_vm11  ;;  %v7640_v49 = vcvt.s32.f32 %v3261_v45  ;;  %v7642_v43 = vcvt.s32.f32 %v3262_v14 }
 0x215   : > { %5429 = vmatprep.subr.bf16.mxu1 %v8940_v26  ;;  %9066 = vst [vmem:[#allocation27_spill] sm:$0xff] %v9065_v63  ;;  %v9068_v8 = vsel %vm7558_vm12, 4294967295, %v9067_v8  ;;  %v7684_v39 = vcvt.s32.f32 %v3263_v10  ;;  %v7686_v48 = vcvt.s32.f32 %v3264_v24  ;;  %v3265_v21 = vadd.s32 96, %v7508_v23 }
 0x216   : > { %9069 = vst [vmem:[#allocation26_spill] sm:$0xff] %v9068_v8  ;;  %v3744_v6 = vmul.f32 0.0625, %v7640_v49  ;;  %v3745_v50 = vmul.f32 0.0625, %v7642_v43  ;;  %v3266_v32 = vadd.s32 104, %v7508_v23  ;;  %v3328_v5 = vmul.f32 0.055555556, %v7521_v55 }
 0x217   : > { %v3746_v59 = vmul.f32 0.0625, %v7684_v39  ;;  %v3747_v60 = vmul.f32 0.0625, %v7686_v48  ;;  %v3326_v0 = vmul.f32 0.055555556, %v7512_v40  ;;  %v3267_v12 = vadd.s32 112, %v7508_v23 }
 0x218   : > { %5431 = vmatpush3.bf16.msk.msra.mxu1 %vm8938_vm13, %v8942_v31  ;;  %v3761_v3 = vfloor.f32 %v3745_v50  ;;  %v3268_v30 = vadd.s32 120, %v7508_v23  ;;  %v3327_v24 = vmul.f32 0.055555556, %v7514_v9  ;;  %vm8948_vm13 = vmmov 0  }
 0x219   : > { %5432 = vmatprep.subr.bf16.mxu1 %v8940_v26  ;;  %v3362_v50 = vfloor.f32 %v3326_v0  ;;  %v3330_v0 = vmul.f32 0.055555556, %v7566_v11 }
 0x21a   : > { %vm7659_vm5 = vcmp.eq.f32.partialorder %v3761_v3, %v7525_v28  ;;  %v7725_v3 = vcvt.s32.f32 %v3267_v12  ;;  %v7727_v10 = vcvt.s32.f32 %v3268_v30  ;;  %v9098_v30 = vmov 0 }
 0x21b   : > { %5321 = vmatmul.mubr.msk.bf16.vlgmr.msra.gmra.mrb[0].mxu0 %vm642_vm2, %v2906_v37  ;;  %v3740_v37 = vmul.f32 0.0625, %v7566_v11  ;;  %v9086_v42 = vsel %vm7659_vm5, 4294967295, %v9085_v42 }
 0x21c   : > { %5324 = vmatprep.mubr.msk.bf16.mxu0 %vm642_vm2, %v2908_v15  ;;  %v3741_v15 = vmul.f32 0.0625, %v7568_v17  ;;  %9087 = vst [vmem:[#allocation32_spill] sm:$0xff] %v9086_v42  ;;  %v3366_v42 = vfloor.f32 %v3330_v0  ;;  %v3341_v2 = vmul.f32 0.055555556, %v7727_v10 }
 0x223   : > { %5325 = vmatmul.mubr.msk.bf16.gmra.mrb[4].mxu0 %vm642_vm2, %v2910_v56  ;;  %v3756_v56 = vfloor.f32 %v3740_v37  ;;  %v3762_v37 = vfloor.f32 %v3746_v59 }
 0x224   : > { %5328 = vmatprep.mubr.msk.bf16.mxu0 %vm642_vm2, %v2912_v4  ;;  %v3757_v4 = vfloor.f32 %v3741_v15  ;;  %v3763_v15 = vfloor.f32 %v3747_v60  ;;  %v3750_v60 = vmul.f32 0.0625, %v7725_v3 }
 0x225   : > { %vm7582_vm14 = vcmp.eq.f32.partialorder %v3756_v56, %v7525_v28  ;;  %v7700_v56 = vcvt.s32.f32 %v3266_v32  ;;  %vm7705_vm7 = vcmp.eq.f32.partialorder %v3762_v37, %v7525_v28  ;;  %v9101_v37 = vmov 0 }
 0x226   : > { %v9071_v51 = vsel %vm7582_vm14, 4294967295, %v9070_v51  ;;  %vm7587_vm15 = vcmp.eq.f32.partialorder %v3757_v4, %v7525_v28 }
 0x227   : > { %9072 = vst [vmem:[#allocation29_spill] sm:$0xff] %v9071_v51  ;;  %v9074_v57 = vsel %vm7587_vm15, 4294967295, %v9073_v57  ;;  %vm8936_vm0 = vmpackc.low %vm7587_vm15, %vm7582_vm14  ;;  %v3749_v14 = vmul.f32 0.0625, %v7700_v56 }
 0x228   : > { %9075 = vst [vmem:[#allocation28_spill] sm:$0xff] %v9074_v57  ;;  %5434 = vmatpush3.bf16.msk.msra.mxu1 %vm8936_vm0, %v8942_v31 }
 0x229   : > { %5435 = vmatprep.subr.bf16.mxu1 %v8940_v26  ;;  %v3765_v32 = vfloor.f32 %v3749_v14  ;;  %v3331_v14 = vmul.f32 0.055555556, %v7568_v17 }
 0x22b   : > { %5329 = vmatmul.mubr.msk.bf16.gmra.mrb[8].mxu0 %vm642_vm2, %v2914_v35  ;;  %v7595_v35 = vcvt.s32.f32 %v3259_v25 }
 0x22c   : > { %5332 = vmatprep.mubr.msk.bf16.mxu0 %vm642_vm2, %v2916_v29  ;;  %v7597_v29 = vcvt.s32.f32 %v3260_v13  ;;  %v7698_v13 = vcvt.s32.f32 %v3265_v21 }
 0x22d   : > { %v3332_v59 = vmul.f32 0.055555556, %v7595_v35 }
 0x22e   : > { %v3748_v45 = vmul.f32 0.0625, %v7698_v13  ;;  %v3333_v12 = vmul.f32 0.055555556, %v7597_v29 }
 0x230   : > { %v3764_v21 = vfloor.f32 %v3748_v45 }
 0x232   : > { %vm7743_vm0 = vcmp.eq.f32.partialorder %v3764_v21, %v7525_v28  ;;  %v3766_v21 = vfloor.f32 %v3750_v60  ;;  %v9111_v60 = vmov 0 }
 0x233   : > { %5333 = vmatmul.mubr.msk.bf16.gmra.mrb[12].mxu0 %vm642_vm2, %v2918_v36  ;;  %v3742_v36 = vmul.f32 0.0625, %v7595_v35  ;;  %v9099_v30 = vsel %vm7743_vm0, 4294967295, %v9098_v30 }
 0x234   : > { %5336 = vmatprep.mubr.msk.bf16.mxu0 %vm642_vm2, %v2920_v52  ;;  %v3743_v52 = vmul.f32 0.0625, %v7597_v29  ;;  %9100 = vst [vmem:[#allocation36_spill] sm:$0xff] %v9099_v30  ;;  %v3398_v30 = vmul.f32 18.0, %v3362_v50 }
 0x236   : > { %v3434_v0 = vsub.f32 %v7512_v40, %v3398_v30 }
 0x23b   : > { %5337 = vmatmul.mubr.msk.bf16.gmra.mrb[16].mxu0 %vm642_vm2, %v2922_v46  ;;  %v3758_v46 = vfloor.f32 %v3742_v36  ;;  %v9090_v36 = vmov 0 }
 0x23c   : > { %5340 = vmatprep.mubr.msk.bf16.mxu0 %vm642_vm2, %v2924_v47  ;;  %v3759_v47 = vfloor.f32 %v3743_v52  ;;  %v9091_v36 = vsel %vm7705_vm7, 4294967295, %v9090_v36  ;;  %v9093_v52 = vmov 0 }
 0x23d   : > { %vm7619_vm1 = vcmp.eq.f32.partialorder %v3758_v46, %v7525_v28  ;;  %9092 = vst [vmem:[#allocation39_spill] sm:$0xff] %v9091_v36  ;;  %v3363_v36 = vfloor.f32 %v3327_v24 }
 0x243   : > { %5341 = vmatmul.mubr.msk.bf16.gmra.mrb[20].mxu0 %vm642_vm2, %v2926_v16  ;;  %v9076_v16 = vmov 0 }
 0x244   : > { %5344 = vmatprep.mubr.msk.bf16.mxu0 %vm642_vm2, %v2928_v41  ;;  %v9077_v16 = vsel %vm7619_vm1, 4294967295, %v9076_v16  ;;  %v9079_v41 = vmov 0 }
 0x245   : > { %9078 = vst [vmem:[#allocation31_spill] sm:$0xff] %v9077_v16  ;;  %v3369_v16 = vfloor.f32 %v3333_v12 }
 0x24b   : > { %5345 = vmatmul.mubr.msk.bf16.gmra.mrb[24].mxu0 %vm642_vm2, %v2930_v19 }
 0x24c   : > { %5348 = vmatprep.mubr.msk.bf16.mxu0 %vm642_vm2, %v2932_v34 }
 0x253   : > { %5349 = vmatmul.mubr.msk.bf16.gmra.mrb[28].mxu0 %vm642_vm2, %v2934_v53 }
 0x254   : > { %5352 = vmatprep.mubr.msk.bf16.mxu0 %vm642_vm2, %v2936_v54  ;;  %v3760_v54 = vfloor.f32 %v3744_v6 }
 0x256   : > { %vm7654_vm4 = vcmp.eq.f32.partialorder %v3760_v54, %v7525_v28  ;;  %v3329_v54 = vmul.f32 0.055555556, %v7523_v38 }
 0x257   : > { %vm8934_vm6 = vmpackc.low %vm7659_vm5, %vm7654_vm4 }
 0x258   : > { %v3365_v45 = vfloor.f32 %v3329_v54 }
 0x25a   : > { %v3401_v24 = vmul.f32 18.0, %v3365_v45  ;;  %v3402_v45 = vmul.f32 18.0, %v3366_v42 }
 0x25b   : > { %5353 = vmatmul.mubr.msk.bf16.gmra.mrb[32].mxu0 %vm642_vm2, %v2938_v22  ;;  %vm7624_vm2 = vcmp.eq.f32.partialorder %v3759_v47, %v7525_v28  ;;  %v9082_v22 = vmov 0  ;;  %v3364_v47 = vfloor.f32 %v3328_v5  ;;  %v3751_v5 = vmul.f32 0.0625, %v7727_v10 }
 0x25c   : > { %v9080_v41 = vsel %vm7624_vm2, 4294967295, %v9079_v41  ;;  %vm8935_vm3 = vmpackc.low %vm7624_vm2, %vm7619_vm1  ;;  %v9083_v22 = vsel %vm7654_vm4, 4294967295, %v9082_v22 }
 0x25d   : > { %9081 = vst [vmem:[#allocation30_spill] sm:$0xff] %v9080_v41  ;;  %5437 = vmatpush3.bf16.msk.msra.mxu1 %vm8935_vm3, %v8942_v31  ;;  %9084 = vst [vmem:[#allocation33_spill] sm:$0xff] %v9083_v22  ;;  %v3400_v54 = vmul.f32 18.0, %v3364_v47  ;;  %v9108_v22 = vmov 0  ;;  %v3437_v41 = vsub.f32 %v7523_v38, %v3401_v24 }
 0x25e   : > { %5438 = vmatprep.subr.bf16.mxu1 %v8940_v26 }
 0x25f   : > { %v3436_v50 = vsub.f32 %v7521_v55, %v3400_v54 }
 0x261   : > { %5440 = vmatpush3.bf16.msk.msra.mxu1 %vm8934_vm6, %v8942_v31  ;;  %vm7710_vm6 = vcmp.eq.f32.partialorder %v3763_v15, %v7525_v28  ;;  %v8944_v15 = vmov 0.0  }
 0x262   : > { %5441 = vmatprep.subr.bf16.mxu1 %v8940_v26  ;;  %v9094_v52 = vsel %vm7710_vm6, 4294967295, %v9093_v52  ;;  %vm8937_vm3 = vmpackc.low %vm7710_vm6, %vm7705_vm7  ;;  %5388 = vmatprep.mubr.msk.f32.mxu1 %vm8948_vm13, %v8944_v15  ;;  %vm7771_vm13 = vcmp.eq.f32.partialorder %v3766_v21, %v7525_v28  ;;  %v3367_v21 = vfloor.f32 %v3331_v14  ;;  %v3405_v14 = vmul.f32 18.0, %v3369_v16 }
 0x263   : > { %9095 = vst [vmem:[#allocation38_spill] sm:$0xff] %v9094_v52  ;;  %v9107_v52 = vmov 0.0|0.0   ;;  %v9109_v22 = vsel %vm7771_vm13, 4294967295, %v9108_v22  ;;  %v3438_v16 = vsub.f32 %v7566_v11, %v3402_v45 }
 0x264   : > { %9110 = vst [vmem:[#allocation44_spill] sm:$0xff] %v9109_v22  ;;  %v3403_v51 = vmul.f32 18.0, %v3367_v21  ;;  %v3337_v22 = vmul.f32 0.055555556, %v7686_v48  ;;  %v3441_v38 = vsub.f32 %v7597_v29, %v3405_v14  ;;  %v9120_v21 = vmov 0.0  }
 0x265   : > { %5443 = vmatpush3.bf16.msk.msra.mxu1 %vm8937_vm3, %v8942_v31  ;;  %vm7748_vm3 = vcmp.eq.f32.partialorder %v3765_v32, %v7525_v28  ;;  %v9105_v32 = vmov 1.0|1.0   ;;  %vm3474_vm6 = vcmp.lt.f32.partialorder %v3438_v16, 15.5  ;;  %v3340_v14 = vmul.f32 0.055555556, %v7725_v3 }
 0x266   : > { %5444 = vmatprep.subr.bf16.mxu1 %v8940_v26  ;;  %v9102_v37 = vsel %vm7748_vm3, 4294967295, %v9101_v37  ;;  %vm8955_vm10 = vmpackc.low %vm7748_vm3, %vm7743_vm0  ;;  %v3767_v26 = vfloor.f32 %v3751_v5  ;;  %v3439_v30 = vsub.f32 %v7568_v17, %v3403_v51  ;;  %v3373_v24 = vfloor.f32 %v3337_v22 }
 0x267   : > { %9103 = vst [vmem:[#allocation41_spill] sm:$0xff] %v9102_v37  ;;  %v3368_v37 = vfloor.f32 %v3332_v59  ;;  %v3399_v59 = vmul.f32 18.0, %v3363_v36  ;;  %vm3477_vm4 = vcmp.lt.f32.partialorder %v3441_v38, 15.5  ;;  %v7826_v51 = vadd.s32 144, %v7508_v23 }
 0x268   : > { %vm7776_vm7 = vcmp.eq.f32.partialorder %v3767_v26, %v7525_v28  ;;  %v3336_v26 = vmul.f32 0.055555556, %v7684_v39  ;;  %v3334_v28 = vmul.f32 0.055555556, %v7640_v49  ;;  %vm3475_vm5 = vcmp.lt.f32.partialorder %v3439_v30, 15.5 }
 0x269   : > { %5446 = vmatpush3.bf16.msk.msra.mxu1 %vm8955_vm10, %v9105_v32  ;;  %v9112_v60 = vsel %vm7776_vm7, 4294967295, %v9111_v60  ;;  %vm8963_vm10 = vmpackc.low %vm7776_vm7, %vm7771_vm13  ;;  %v3404_v12 = vmul.f32 18.0, %v3368_v37  ;;  %v3435_v55 = vsub.f32 %v7514_v9, %v3399_v59  ;;  %vm3470_vm13 = vcmp.lt.f32.partialorder %v3434_v0, 15.5 }
 0x26a   : > { %5447 = vmatprep.subr.bf16.mxu1 %v9107_v52  ;;  %9113 = vst [vmem:[#allocation45_spill] sm:$0xff] %v9112_v60  ;;  %v3372_v57 = vfloor.f32 %v3336_v26  ;;  %v3370_v60 = vfloor.f32 %v3334_v28  ;;  %vm3473_vm7 = vcmp.lt.f32.partialorder %v3437_v41, 15.5  ;;  %v7818_v9 = vsel %vm3470_vm13, 1.0, %v9120_v21 }
 0x26b   : > { %v3440_v40 = vsub.f32 %v7595_v35, %v3404_v12  ;;  %vm3471_vm0 = vcmp.lt.f32.partialorder %v3435_v55, 15.5  ;;  %v3335_v35 = vmul.f32 0.055555556, %v7642_v43  ;;  %v7822_v11 = vsel %vm3473_vm7, 1.0, %v9120_v21 }
 0x26c   : > { %v3408_v37 = vmul.f32 18.0, %v3372_v57  ;;  %v3406_v54 = vmul.f32 18.0, %v3370_v60  ;;  %v7829_v57 = vadd.s32 128, %v7508_v23  ;;  %v7834_v41 = vsel %vm3471_vm0, 1.0, %v9120_v21 }
 0x26d   : > { %5449 = vmatpush3.bf16.msk.msra.mxu1 %vm8963_vm10, %v9105_v32  ;;  %vm3472_vm10 = vcmp.lt.f32.partialorder %v3436_v50, 15.5  ;;  %vm3476_vm3 = vcmp.lt.f32.partialorder %v3440_v40, 15.5  ;;  %v3409_v60 = vmul.f32 18.0, %v3373_v24  ;;  %v7838_v28 = vadd.s32 152, %v7508_v23 }
 0x26e   : > { %5450 = vmatprep.subr.bf16.mxu1 %v9107_v52  ;;  %v7815_v26 = vsel %vm3472_vm10, 1.0, %v9120_v21  ;;  %v3444_v17 = vsub.f32 %v7684_v39, %v3408_v37  ;;  %v3442_v22 = vsub.f32 %v7640_v49, %v3406_v54  ;;  %v7843_v39 = vsel %vm3476_vm3, 1.0, %v9120_v21 }
 0x26f   : > { %v7846_v59 = vsel %vm3474_vm6, 1.0, %v9120_v21  ;;  %v7849_v0 = vsel %vm3477_vm4, 1.0, %v9120_v21  ;;  %v3371_v12 = vfloor.f32 %v3335_v35  ;;  %v7854_v49 = vsel %vm3475_vm5, 1.0, %v9120_v21 }
 0x270   : > { %v3338_v55 = vmul.f32 0.055555556, %v7698_v13  ;;  %vm7860_vm10 = vcmp.lt.f32.partialorder %v3444_v17, 15.5  ;;  %v7867_v37 = vadd.s32 136, %v7508_v23  ;;  %vm7869_vm13 = vcmp.lt.f32.partialorder %v3442_v22, 15.5 }
 0x271   : > { %v3445_v24 = vsub.f32 %v7686_v48, %v3409_v60  ;;  %v7876_v17 = vadd.s32 176, %v7508_v23  ;;  %v3407_v52 = vmul.f32 18.0, %v3371_v12  ;;  %v7880_v38 = vadd.s32 160, %v7508_v23 }
 0x272   : > { %v7883_v30 = vadd.s32 184, %v7508_v23  ;;  %v3376_v22 = vfloor.f32 %v3340_v14  ;;  %v3374_v7 = vfloor.f32 %v3338_v55  ;;  %v3339_v32 = vmul.f32 0.055555556, %v7700_v56 }
 0x273   : > { %v7887_v48 = vadd.s32 168, %v7508_v23  ;;  %v9129_v60 = vcvt.s32.f32 %v7826_v51  ;;  %v9130_v12 = vcvt.s32.f32 %v7829_v57  ;;  %v7902_v14 = vsel %vm7860_vm10, 1.0, %v9120_v21 }
 0x274   : > { %v7907_v55 = vsel %vm7869_vm13, 1.0, %v9120_v21  ;;  %v8975_v16 = vcvt.s32.f32 %v7883_v30  ;;  %v3410_v54 = vmul.f32 18.0, %v3374_v7  ;;  %vm7925_vm0 = vcmp.lt.f32.partialorder %v3445_v24, 15.5 }
 0x275   : > { %v3344_v35 = vmul.f32 0.055555556, %v9129_v60  ;;  %v9132_v60 = vcvt.s32.f32 %v7838_v28 }
 0x276   : > { %v3349_v24 = vmul.f32 0.055555556, %v8975_v16  ;;  %v7953_v16 = vsel %vm7925_vm0, 1.0, %v9120_v21 }
 0x2a3   : > { %v7605_v61 = vpop.f32.mrb[0].mxu1 }
 0x2a4   : > { %v7608_v1 = vpop.f32.mrb[1].mxu1 }
 0x2a5   : > { %v7612_v18 = vpop.f32.mrb[2].mxu1 }
 0x2a6   : > { %v7614_v44 = vpop.f32.mrb[3].mxu1 }
 0x2ab   : > { %v7638_v27 = vpop.f32.mrb[4].mxu1 }
 0x2ac   : > { %v7645_v19 = vpop.f32.mrb[5].mxu1 }
 0x2ad   : > { %v7647_v34 = vpop.f32.mrb[6].mxu1 }
 0x2ae   : > { %v7651_v53 = vpop.f32.mrb[7].mxu1 }
 0x2b3   : > { %v7669_v58 = vpop.f32.mrb[8].mxu1 }
 0x2b4   : > { %v7677_v62 = vpop.f32.mrb[9].mxu1 }
 0x2b5   : > { %v7680_v33 = vpop.f32.mrb[10].mxu1 }
 0x2b6   : > { %v7682_v20 = vpop.f32.mrb[11].mxu1 }
 0x2bb   : > { %v7696_v25 = vpop.f32.mrb[12].mxu1 }
 0x2bc   : > { %9088 = vst [vmem:[#allocation35_spill] sm:$0xff] %v7696_v25  ;;  %v7702_v4 = vpop.f32.mrb[13].mxu1 }
 0x2bd   : > { %9089 = vst [vmem:[#allocation34_spill] sm:$0xff] %v7702_v4  ;;  %v7714_v46 = vpop.f32.mrb[14].mxu1 }
 0x2be   : > { %9096 = vst [vmem:[#allocation37_spill] sm:$0xff] %v7714_v46  ;;  %v7722_v6 = vpop.f32.mrb[15].mxu1 }
 0x2bf   : > { %9097 = vst [vmem:[#allocation40_spill] sm:$0xff] %v7722_v6 }
 0x2c3   : > { %v7759_v31 = vpop.f32.mrb[16].mxu1 }
 0x2c4   : > { %9104 = vst [vmem:[#allocation42_spill] sm:$0xff] %v7759_v31  ;;  %v7767_v15 = vpop.f32.mrb[17].mxu1 }
 0x2c5   : > { %9106 = vst [vmem:[#allocation43_spill] sm:$0xff] %v7767_v15  ;;  %v7780_v5 = vpop.f32.mrb[18].mxu1  ;;  %v9148_v15 = vcvt.s32.f32 %v7826_v51 }
 0x2c6   : > { %9114 = vst [vmem:[#allocation46_spill] sm:$0xff] %v7780_v5  ;;  %v7786_v47 = vpop.f32.mrb[19].mxu1  ;;  %v3375_v5 = vfloor.f32 %v3339_v32  ;;  %v7932_v32 = vadd.s32 192, %v7508_v23 }
 0x2c7   : > { %9115 = vst [vmem:[#allocation47_spill] sm:$0xff] %v7786_v47  ;;  %v3412_v47 = vmul.f32 18.0, %v3376_v22  ;;  %v9139_v22 = vcvt.s32.f32 %v7876_v17 }
 0x2c9   : > { %v3348_v7 = vmul.f32 0.055555556, %v9139_v22  ;;  %v9142_v22 = vcvt.s32.f32 %v7887_v48 }
 0x2cb   : > { %v7800_v63 = vpop.f32.mrb[20].mxu1 }
 0x2cc   : > { %9116 = vst [vmem:[#allocation48_spill] sm:$0xff] %v7800_v63  ;;  %v7803_v8 = vpop.f32.mrb[21].mxu1 }
 0x2cd   : > { %9117 = vst [vmem:[#allocation49_spill] sm:$0xff] %v7803_v8  ;;  %v7806_v36 = vpop.f32.mrb[22].mxu1  ;;  %v8976_v8 = vcvt.s32.f32 %v7880_v38 }
 0x2ce   : > { %9118 = vst [vmem:[#allocation50_spill] sm:$0xff] %v7806_v36  ;;  %v7811_v42 = vpop.f32.mrb[23].mxu1  ;;  %v3443_v36 = vsub.f32 %v7642_v43, %v3407_v52 }
 0x2cf   : > { %9119 = vst [vmem:[#allocation51_spill] sm:$0xff] %v7811_v42 }
 0x2d0   : > { %vm7934_vm3 = vcmp.lt.f32.partialorder %v3443_v36, 15.5 }
 0x2d3   : > { %v7831_v29 = vpop.f32.mrb[24].mxu1 }
 0x2d4   : > { %9121 = vst [vmem:[#allocation52_spill] sm:$0xff] %v7831_v29  ;;  %v7840_v50 = vpop.f32.mrb[25].mxu1 }
 0x2d5   : > { %9122 = vst [vmem:[#allocation53_spill] sm:$0xff] %v7840_v50  ;;  %v7851_v45 = vpop.f32.mrb[26].mxu1  ;;  %v7895_v50 = vadd.s32 208, %v7508_v23 }
 0x2d6   : > { %9123 = vst [vmem:[#allocation54_spill] sm:$0xff] %v7851_v45  ;;  %v7858_v40 = vpop.f32.mrb[27].mxu1 }
 0x2d7   : > { %9124 = vst [vmem:[#allocation55_spill] sm:$0xff] %v7858_v40  ;;  %v3342_v40 = vmul.f32 0.055555556, %v9130_v12  ;;  %v3345_v12 = vmul.f32 0.055555556, %v9132_v60  ;;  %v3380_v60 = vfloor.f32 %v3344_v35  ;;  %v3448_v35 = vsub.f32 %v7725_v3, %v3412_v47 }
 0x2d8   : > { %v9143_v4 = vcvt.s32.f32 %v7895_v50  ;;  %v3384_v47 = vfloor.f32 %v3348_v7 }
 0x2d9   : > { %v3378_v45 = vfloor.f32 %v3342_v40  ;;  %v3381_v52 = vfloor.f32 %v3345_v12  ;;  %v3446_v12 = vsub.f32 %v7698_v13, %v3410_v54  ;;  %v3385_v54 = vfloor.f32 %v3349_v24 }
 0x2da   : > { %vm3484_vm4 = vcmp.lt.f32.partialorder %v3448_v35, 15.5  ;;  %v9149_v13 = vcvt.s32.f32 %v7829_v57  ;;  %v9150_v24 = vcvt.s32.f32 %v7838_v28  ;;  %v7993_v28 = vadd.s32 200, %v7508_v23 }
 0x2db   : > { %v7897_v29 = vpop.f32.mrb[28].mxu1  ;;  %v3414_v36 = vmul.f32 18.0, %v3378_v45  ;;  %v3417_v3 = vmul.f32 18.0, %v3381_v52  ;;  %vm7966_vm5 = vcmp.lt.f32.partialorder %v3446_v12, 15.5  ;;  %v3420_v12 = vmul.f32 18.0, %v3384_v47 }
 0x2dc   : > { %9131 = vst [vmem:[#allocation56_spill] sm:$0xff] %v7897_v29  ;;  %v7912_v42 = vpop.f32.mrb[29].mxu1  ;;  %v3377_v29 = vfloor.f32 %v3341_v2  ;;  %v3411_v2 = vmul.f32 18.0, %v3375_v5  ;;  %v3421_v51 = vmul.f32 18.0, %v3385_v54 }
 0x2dd   : > { %9133 = vst [vmem:[#allocation57_spill] sm:$0xff] %v7912_v42  ;;  %v7917_v63 = vpop.f32.mrb[30].mxu1  ;;  %v9136_v42 = vcvt.s32.f32 %v7867_v37  ;;  %v3453_v35 = vsub.f32 %v9150_v24, %v3417_v3  ;;  %v9153_v3 = vcvt.s32.f32 %v7876_v17  ;;  %v8027_v24 = vadd.s32 240, %v7508_v23 }
 0x2de   : > { %9134 = vst [vmem:[#allocation58_spill] sm:$0xff] %v7917_v63  ;;  %v7920_v31 = vpop.f32.mrb[31].mxu1  ;;  %v3413_v40 = vmul.f32 18.0, %v3377_v29  ;;  %v3416_v63 = vmul.f32 18.0, %v3380_v60  ;;  %v3352_v29 = vmul.f32 0.055555556, %v9143_v4  ;;  %v3447_v52 = vsub.f32 %v7700_v56, %v3411_v2 }
 0x2df   : > { %9135 = vst [vmem:[#allocation59_spill] sm:$0xff] %v7920_v31  ;;  %v3343_v6 = vmul.f32 0.055555556, %v9136_v42  ;;  %v3346_v42 = vmul.f32 0.055555556, %v8976_v8  ;;  %v7982_v56 = vadd.s32 216, %v7508_v23  ;;  %v9152_v2 = vcvt.s32.f32 %v7867_v37 }
 0x2e0   : > { %v3347_v31 = vmul.f32 0.055555556, %v9142_v22  ;;  %v3449_v4 = vsub.f32 %v7727_v10, %v3413_v40  ;;  %v3452_v8 = vsub.f32 %v9148_v15, %v3416_v63  ;;  %v3450_v10 = vsub.f32 %v9149_v13, %v3414_v36 }
 0x2e1   : > { %v3379_v46 = vfloor.f32 %v3343_v6  ;;  %v7961_v6 = vsel %vm7934_vm3, 1.0, %v9120_v21  ;;  %v3382_v45 = vfloor.f32 %v3346_v42  ;;  %v3388_v42 = vfloor.f32 %v3352_v29 }
 0x2e2   : > { %v3383_v7 = vfloor.f32 %v3347_v31  ;;  %v7985_v31 = vsel %vm3484_vm4, 1.0, %v9120_v21  ;;  %vm3485_vm6 = vcmp.lt.f32.partialorder %v3449_v4, 15.5  ;;  %vm3483_vm7 = vcmp.lt.f32.partialorder %v3447_v52, 15.5 }
 0x2e3   : > { %v7948_v25 = vpop.f32.mrb[32].mxu1  ;;  %v3415_v40 = vmul.f32 18.0, %v3379_v46  ;;  %v3418_v63 = vmul.f32 18.0, %v3382_v45  ;;  %v7990_v46 = vsel %vm7966_vm5, 1.0, %v9120_v21  ;;  %vm3488_vm10 = vcmp.lt.f32.partialorder %v3452_v8, 15.5 }
 0x2e4   : > { %v7956_v5 = vpop.f32.mrb[33].mxu1  ;;  %v3419_v57 = vmul.f32 18.0, %v3383_v7  ;;  %vm3486_vm13 = vcmp.lt.f32.partialorder %v3450_v10, 15.5  ;;  %v3424_v29 = vmul.f32 18.0, %v3388_v42  ;;  %vm3489_vm0 = vcmp.lt.f32.partialorder %v3453_v35, 15.5 }
 0x2e5   : > { %9144 = vst [vmem:[#allocation60_spill] sm:$0xff] %v7956_v5  ;;  %v7964_v60 = vpop.f32.mrb[34].mxu1  ;;  %v3451_v36 = vsub.f32 %v9152_v2, %v3415_v40  ;;  %v3456_v47 = vsub.f32 %v9153_v3, %v3420_v12  ;;  %v3316_v4 = vcvt.s32.f32 %v7982_v56  ;;  %v8001_v45 = vsel %vm3485_vm6, 1.0, %v9120_v21  ;;  %v8019_v40 = vld [vmem:[#allocation7] ss:$0 sm:$0xff] }
 0x2e6   : > { %9145 = vst [vmem:[#allocation61_spill] sm:$0xff] %v7964_v60  ;;  %v7971_v22 = vpop.f32.mrb[35].mxu1  ;;  %v9151_v60 = vcvt.s32.f32 %v7932_v32  ;;  %v8004_v54 = vsel %vm3483_vm7, 1.0, %v9120_v21  ;;  %v9154_v8 = vcvt.s32.f32 %v7880_v38  ;;  %v9155_v37 = vcvt.s32.f32 %v7883_v30 }
 0x2e7   : > { %v8011_v52 = vsel %vm3488_vm10, 1.0, %v9120_v21  ;;  %v8014_v17 = vsel %vm3486_vm13, 1.0, %v9120_v21  ;;  %v3314_v15 = vcvt.s32.f32 %v7993_v28  ;;  %v8022_v38 = vsel %vm3489_vm0, 1.0, %v9120_v21 }
 0x2e8   : > { %v3350_v5 = vmul.f32 0.055555556, %v9151_v60  ;;  %v3454_v60 = vsub.f32 %v9154_v8, %v3418_v63  ;;  %v3457_v43 = vsub.f32 %v9155_v37, %v3421_v51  ;;  %vm3487_vm3 = vcmp.lt.f32.partialorder %v3451_v36, 15.5 }
 0x2e9   : > { %v9157_v30 = vcvt.s32.f32 %v7895_v50  ;;  %vm3492_vm4 = vcmp.lt.f32.partialorder %v3456_v47, 15.5  ;;  %v3353_v63 = vmul.f32 0.055555556, %v3316_v4  ;;  %v8034_v2 = vadd.s32 224, %v7508_v23 }
 0x2ea   : > { %v3386_v13 = vfloor.f32 %v3350_v5  ;;  %v9156_v5 = vcvt.s32.f32 %v7887_v48  ;;  %vm3490_vm5 = vcmp.lt.f32.partialorder %v3454_v60, 15.5  ;;  %vm3493_vm6 = vcmp.lt.f32.partialorder %v3457_v43, 15.5 }
 0x2eb   : > { %v3460_v42 = vsub.f32 %v9157_v30, %v3424_v29  ;;  %v3389_v30 = vfloor.f32 %v3353_v63 }
 0x2ec   : > { %v3455_v7 = vsub.f32 %v9156_v5, %v3419_v57  ;;  %v3422_v48 = vmul.f32 18.0, %v3386_v13 }
 0x2ed   : > { %vm3496_vm10 = vcmp.lt.f32.partialorder %v3460_v42, 15.5 }
 0x2ee   : > { %v5322_v10 = vpop.f32.mrb[0].mxu0  ;;  %vm3491_vm7 = vcmp.lt.f32.partialorder %v3455_v7, 15.5 }
 0x2ef   : > { %v5474_v35 = vadd.f32 %v5322_v10, %v7605_v61  ;;  %v3030_v12 = vpop.f32.mrb[1].mxu0  ;;  %v3351_v61 = vmul.f32 0.055555556, %v3314_v15  ;;  %v9158_v10 = vcvt.s32.f32 %v7932_v32  ;;  %v8066_v32 = vsel %vm3490_vm5, 1.0, %v9120_v21 }
 0x2f0   : > { %v5475_v51 = vadd.f32 %v3030_v12, %v7608_v1  ;;  %v5323_v57 = vpop.f32.mrb[2].mxu0  ;;  %v8977_v1 = vcvt.s32.f32 %v8027_v24  ;;  %v8078_v47 = vsel %vm3491_vm7, 1.0, %v9120_v21 }
 0x2f1   : > { %v3218_v50 = vadd.f32 %v5474_v35, %v8019_v40  ;;  %v5476_v29 = vadd.f32 %v5323_v57, %v7612_v18  ;;  %v3033_v3 = vpop.f32.mrb[3].mxu0  ;;  %v3458_v18 = vsub.f32 %v9158_v10, %v3422_v48  ;;  %v3317_v48 = vcvt.s32.f32 %v8034_v2 }
 0x2f2   : > { %v3216_v13 = vadd.f32 %v5475_v51, %v8019_v40  ;;  %v5477_v8 = vadd.f32 %v3033_v3, %v7614_v44  ;;  %v8055_v44 = vsel %vm3487_vm3, 1.0, %v9120_v21  ;;  %v8059_v51 = vsel %vm3492_vm4, 1.0, %v9120_v21 }
 0x2f3   : > { %v8044_v37 = vmul.f32 %v7815_v26, %v3218_v50  ;;  %v3219_v5 = vadd.f32 %v5476_v29, %v8019_v40  ;;  %v3387_v60 = vfloor.f32 %v3351_v61  ;;  %vm3494_vm13 = vcmp.lt.f32.partialorder %v3458_v18, 15.5 }
 0x2f4   : > { %v8050_v35 = vmul.f32 %v7818_v9, %v3216_v13  ;;  %v3217_v12 = vadd.f32 %v5477_v8, %v8019_v40  ;;  %v8070_v9 = vsel %vm3493_vm6, 1.0, %v9120_v21  ;;  %v3425_v50 = vmul.f32 18.0, %v3389_v30 }
 0x2f5   : > { %v8062_v26 = vmul.f32 %v7822_v11, %v3219_v5  ;;  %v8082_v11 = vsel %vm3496_vm10, 1.0, %v9120_v21  ;;  %v8087_v29 = vmul.f32 0.055555556, %v8977_v1  ;;  %v8102_v10 = vmul.f32 0.055555556, %v3317_v48 }
 0x2f6   : > { %v8074_v36 = vmul.f32 %v7834_v41, %v3217_v12  ;;  %v5326_v63 = vpop.f32.mrb[4].mxu0  ;;  %v3655_v41 = vmul.f32 %v8050_v35, %v8050_v35 }
 0x2f7   : > { %v5478_v57 = vadd.f32 %v5326_v63, %v7638_v27  ;;  %v3046_v43 = vpop.f32.mrb[5].mxu0  ;;  %v3657_v27 = vmul.f32 %v8044_v37, %v8044_v37 }
 0x2f8   : > { %v3614_v7 = vadd.f32 %v8074_v36, %v8050_v35  ;;  %v3656_v42 = vmul.f32 %v8074_v36, %v8074_v36  ;;  %v5479_v3 = vadd.f32 %v3046_v43, %v7645_v19  ;;  %v5327_v61 = vpop.f32.mrb[6].mxu0  ;;  %v3658_v43 = vmul.f32 %v8062_v26, %v8062_v26 }
 0x2f9   : > { %v3222_v13 = vadd.f32 %v5478_v57, %v8019_v40  ;;  %v5480_v8 = vadd.f32 %v5327_v61, %v7647_v34  ;;  %v3049_v5 = vpop.f32.mrb[7].mxu0  ;;  %v8115_v57 = vsel %vm3494_vm13, 1.0, %v9120_v21 }
 0x2fa   : > { %v3615_v30 = vadd.f32 %v3614_v7, %v8044_v37  ;;  %v3691_v12 = vadd.f32 %v3656_v42, %v3655_v41  ;;  %v3220_v63 = vadd.f32 %v5479_v3, %v8019_v40  ;;  %v5481_v19 = vadd.f32 %v3049_v5, %v7651_v53 }
 0x2fb   : > { %v8110_v1 = vmul.f32 %v7843_v39, %v3222_v13  ;;  %v3223_v34 = vadd.f32 %v5480_v8, %v8019_v40  ;;  %v3423_v3 = vmul.f32 18.0, %v3387_v60  ;;  %v8126_v39 = vadd.s32 248, %v7508_v23 }
 0x2fc   : > { %v3692_v61 = vadd.f32 %v3691_v12, %v3657_v27  ;;  %v8118_v7 = vmul.f32 %v7846_v59, %v3220_v63  ;;  %v3616_v41 = vadd.f32 %v3615_v30, %v8062_v26  ;;  %v3221_v53 = vadd.f32 %v5481_v19, %v8019_v40 }
 0x2fd   : > { %v8123_v42 = vmul.f32 %v7849_v0, %v3223_v34  ;;  %v8129_v13 = vadd.s32 232, %v7508_v23  ;;  %v8140_v60 = vsub.f32 %v3316_v4, %v3425_v50  ;;  %v3392_v12 = vfloor.f32 %v8087_v29 }
 0x2fe   : > { %v3617_v18 = vadd.f32 %v3616_v41, %v8118_v7  ;;  %v3659_v59 = vmul.f32 %v8118_v7, %v8118_v7  ;;  %v3693_v27 = vadd.f32 %v3692_v61, %v3658_v43  ;;  %v8135_v8 = vmul.f32 %v7854_v49, %v3221_v53  ;;  %v5330_v5 = vpop.f32.mrb[8].mxu0 }
 0x2ff   : > { %v5482_v0 = vadd.f32 %v5330_v5, %v7669_v58  ;;  %v3062_v30 = vpop.f32.mrb[9].mxu0  ;;  %v3390_v63 = vfloor.f32 %v8102_v10  ;;  %v3661_v58 = vmul.f32 %v8110_v1, %v8110_v1  ;;  %v8153_v29 = vadd.s32 272, %v7508_v23 }
 0x300   : > { %v3694_v19 = vadd.f32 %v3693_v27, %v3659_v59  ;;  %v3618_v34 = vadd.f32 %v3617_v18, %v8135_v8  ;;  %v3660_v43 = vmul.f32 %v8135_v8, %v8135_v8  ;;  %v5483_v49 = vadd.f32 %v3062_v30, %v7677_v62  ;;  %v5331_v61 = vpop.f32.mrb[10].mxu0 }
 0x301   : > { %v3226_v56 = vadd.f32 %v5482_v0, %v8019_v40  ;;  %v5484_v4 = vadd.f32 %v5331_v61, %v7680_v33  ;;  %v3065_v50 = vpop.f32.mrb[11].mxu0  ;;  %v3662_v62 = vmul.f32 %v8123_v42, %v8123_v42  ;;  %v3459_v33 = vsub.f32 %v3314_v15, %v3423_v3  ;;  %v9159_v61 = vld [vmem:[#allocation35_spill] sm:$0xff] }
 0x302   : > { %v3619_v10 = vadd.f32 %v3618_v34, %v8110_v1  ;;  %v3695_v41 = vadd.f32 %v3694_v19, %v3660_v43  ;;  %v3224_v53 = vadd.f32 %v5483_v49, %v8019_v40  ;;  %v5485_v18 = vadd.f32 %v3065_v50, %v7682_v20 }
 0x303   : > { %v8161_v59 = vmul.f32 %v7902_v14, %v3226_v56  ;;  %v3227_v27 = vadd.f32 %v5484_v4, %v8019_v40  ;;  %v3320_v34 = vcvt.s32.f32 %v8126_v39  ;;  %v8979_v14 = vcvt.s32.f32 %v8129_v13 }
 0x304   : > { %v3696_v5 = vadd.f32 %v3695_v41, %v3661_v58  ;;  %v8167_v0 = vmul.f32 %v7907_v55, %v3224_v53  ;;  %v3620_v30 = vadd.f32 %v3619_v10, %v8123_v42  ;;  %v3225_v19 = vadd.f32 %v5485_v18, %v8019_v40  ;;  %v9160_v41 = vld [vmem:[#allocation34_spill] sm:$0xff] }
 0x305   : > { %v8172_v20 = vmul.f32 %v7953_v16, %v3227_v27  ;;  %v8177_v43 = vadd.s32 256, %v7508_v23  ;;  %vm3497_vm0 = vcmp.lt.f32.partialorder %v8140_v60, 15.5  ;;  %vm3495_vm3 = vcmp.lt.f32.partialorder %v3459_v33, 15.5  ;;  %v9161_v27 = vld [vmem:[#allocation37_spill] sm:$0xff]  ;;  %v9163_v60 = vld [vmem:[#allocation42_spill] sm:$0xff] }
 0x306   : > { %v3621_v28 = vadd.f32 %v3620_v30, %v8167_v0  ;;  %v3663_v55 = vmul.f32 %v8167_v0, %v8167_v0  ;;  %v3697_v15 = vadd.f32 %v3696_v5, %v3662_v62  ;;  %v8183_v3 = vmul.f32 %v7961_v6, %v3225_v19  ;;  %v5334_v49 = vpop.f32.mrb[12].mxu0 }
 0x307   : > { %v5486_v16 = vadd.f32 %v5334_v49, %v9159_v61  ;;  %v3078_v58 = vpop.f32.mrb[13].mxu0  ;;  %v3428_v56 = vmul.f32 18.0, %v3392_v12  ;;  %v3665_v6 = vmul.f32 %v8161_v59, %v8161_v59  ;;  %v3426_v19 = vmul.f32 18.0, %v3390_v63 }
 0x308   : > { %v3698_v4 = vadd.f32 %v3697_v15, %v3663_v55  ;;  %v3622_v50 = vadd.f32 %v3621_v28, %v8183_v3  ;;  %v3664_v10 = vmul.f32 %v8183_v3, %v8183_v3  ;;  %v5487_v53 = vadd.f32 %v3078_v58, %v9160_v41  ;;  %v5335_v18 = vpop.f32.mrb[14].mxu0  ;;  %v9162_v15 = vld [vmem:[#allocation40_spill] sm:$0xff] }
 0x309   : > { %v3230_v62 = vadd.f32 %v5486_v16, %v8019_v40  ;;  %v5488_v5 = vadd.f32 %v5335_v18, %v9161_v27  ;;  %v3081_v30 = vpop.f32.mrb[15].mxu0  ;;  %v3666_v61 = vmul.f32 %v8172_v20, %v8172_v20  ;;  %v3357_v16 = vmul.f32 0.055555556, %v3320_v34 }
 0x30a   : > { %v3623_v12 = vadd.f32 %v3622_v50, %v8161_v59  ;;  %v3699_v55 = vadd.f32 %v3698_v4, %v3664_v10  ;;  %v3228_v28 = vadd.f32 %v5487_v53, %v8019_v40  ;;  %v5489_v49 = vadd.f32 %v3081_v30, %v9162_v15 }
 0x30b   : > { %v8201_v58 = vmul.f32 %v7985_v31, %v3230_v62  ;;  %v3231_v41 = vadd.f32 %v5488_v5, %v8019_v40  ;;  %v8217_v31 = vsel %vm3497_vm0, 1.0, %v9120_v21  ;;  %v8221_v53 = vsel %vm3495_vm3, 1.0, %v9120_v21 }
 0x30c   : > { %v3700_v18 = vadd.f32 %v3699_v55, %v3665_v6  ;;  %v8207_v63 = vmul.f32 %v7990_v46, %v3228_v28  ;;  %v3624_v4 = vadd.f32 %v3623_v12, %v8172_v20  ;;  %v3229_v50 = vadd.f32 %v5489_v49, %v8019_v40 }
 0x30d   : > { %v8212_v10 = vmul.f32 %v8001_v45, %v3231_v41  ;;  %v3462_v46 = vsub.f32 %v3317_v48, %v3426_v19  ;;  %v9164_v33 = vcvt.s32.f32 %v8027_v24  ;;  %v3393_v28 = vfloor.f32 %v3357_v16 }
 0x30e   : > { %v3625_v6 = vadd.f32 %v3624_v4, %v8207_v63  ;;  %v3667_v62 = vmul.f32 %v8207_v63, %v8207_v63  ;;  %v3701_v27 = vadd.f32 %v3700_v18, %v3666_v61  ;;  %v8229_v45 = vmul.f32 %v8004_v54, %v3229_v50  ;;  %v5338_v5 = vpop.f32.mrb[16].mxu0  ;;  %v9165_v54 = vld [vmem:[#allocation43_spill] sm:$0xff] }
 0x30f   : > { %v5490_v30 = vadd.f32 %v5338_v5, %v9163_v60  ;;  %v3094_v12 = vpop.f32.mrb[17].mxu0  ;;  %v8234_v55 = vsub.f32 %v9164_v33, %v3428_v56  ;;  %v3355_v2 = vmul.f32 0.055555556, %v8979_v14  ;;  %v3669_v41 = vmul.f32 %v8201_v58, %v8201_v58  ;;  %v9166_v56 = vld [vmem:[#allocation46_spill] sm:$0xff] }
 0x310   : > { %v3702_v48 = vadd.f32 %v3701_v27, %v3667_v62  ;;  %v3626_v19 = vadd.f32 %v3625_v6, %v8229_v45  ;;  %v3668_v15 = vmul.f32 %v8229_v45, %v8229_v45  ;;  %v5491_v49 = vadd.f32 %v3094_v12, %v9165_v54  ;;  %v5339_v61 = vpop.f32.mrb[18].mxu0  ;;  %v9167_v62 = vld [vmem:[#allocation47_spill] sm:$0xff] }
 0x311   : > { %v3234_v24 = vadd.f32 %v5490_v30, %v8019_v40  ;;  %v5492_v18 = vadd.f32 %v5339_v61, %v9166_v56  ;;  %v3097_v16 = vpop.f32.mrb[19].mxu0  ;;  %vm3498_vm4 = vcmp.lt.f32.partialorder %v3462_v46, 15.5  ;;  %v3670_v5 = vmul.f32 %v8212_v10, %v8212_v10 }
 0x312   : > { %v3627_v4 = vadd.f32 %v3626_v19, %v8201_v58  ;;  %v3703_v50 = vadd.f32 %v3702_v48, %v3668_v15  ;;  %v3232_v6 = vadd.f32 %v5491_v49, %v8019_v40  ;;  %v5493_v27 = vadd.f32 %v3097_v16, %v9167_v62 }
 0x313   : > { %v3235_v60 = vadd.f32 %v5492_v18, %v8019_v40  ;;  %v8978_v12 = vcvt.s32.f32 %v8153_v29  ;;  %v8980_v30 = vcvt.s32.f32 %v8177_v43  ;;  %v8260_v19 = vmul.f32 %v8011_v52, %v3234_v24  ;;  %v9168_v52 = vld [vmem:[#allocation48_spill] sm:$0xff] }
 0x314   : > { %v3704_v33 = vadd.f32 %v3703_v50, %v3669_v41  ;;  %v8255_v54 = vmul.f32 %v8014_v17, %v3232_v6  ;;  %v3628_v46 = vadd.f32 %v3627_v4, %v8212_v10  ;;  %v3233_v48 = vadd.f32 %v5493_v27, %v8019_v40  ;;  %v9169_v27 = vld [vmem:[#allocation49_spill] sm:$0xff] }
 0x315   : > { %v8263_v15 = vsel %vm3498_vm4, 1.0, %v9120_v21  ;;  %v3429_v49 = vmul.f32 18.0, %v3393_v28  ;;  %v3391_v61 = vfloor.f32 %v3355_v2  ;;  %v8272_v4 = vmul.f32 %v8022_v38, %v3235_v60  ;;  %vm9193_vm4 = vmpackc.low %vm7533_vm9, %vm7528_vm8 }
 0x316   : > { %v3629_v56 = vadd.f32 %v3628_v46, %v8255_v54  ;;  %v3671_v41 = vmul.f32 %v8255_v54, %v8255_v54  ;;  %v3705_v18 = vadd.f32 %v3704_v33, %v3670_v5  ;;  %v8269_v17 = vmul.f32 %v8055_v44, %v3233_v48  ;;  %v5342_v16 = vpop.f32.mrb[20].mxu0  ;;  %v9170_v46 = vld [vmem:[#allocation50_spill] sm:$0xff]  ;;  %vm9201_vm8 = vmpackc.low %vm7587_vm15, %vm7582_vm14 }
 0x317   : > { %v5494_v24 = vadd.f32 %v5342_v16, %v9168_v52  ;;  %v3110_v50 = vpop.f32.mrb[21].mxu0  ;;  %v8277_v28 = vmul.f32 0.055555556, %v8978_v12  ;;  %v8280_v2 = vadd.s32 264, %v7508_v23  ;;  %v3673_v60 = vmul.f32 %v8260_v19, %v8260_v19  ;;  %v9171_v12 = vld [vmem:[#allocation51_spill] sm:$0xff]  ;;  %vm9204_vm9 = vmpackc.low %vm7624_vm2, %vm7619_vm1 }
 0x318   : > { %v3706_v6 = vadd.f32 %v3705_v18, %v3671_v41  ;;  %v3630_v62 = vadd.f32 %v3629_v56, %v8269_v17  ;;  %v3672_v44 = vmul.f32 %v8269_v17, %v8269_v17  ;;  %v5495_v5 = vadd.f32 %v3110_v50, %v9169_v27  ;;  %v5343_v38 = vpop.f32.mrb[22].mxu0 }
 0x319   : > { %v3238_v33 = vadd.f32 %v5494_v24, %v8019_v40  ;;  %v5496_v48 = vadd.f32 %v5343_v38, %v9170_v46  ;;  %v3113_v16 = vpop.f32.mrb[23].mxu0  ;;  %v3358_v52 = vmul.f32 0.055555556, %v8980_v30  ;;  %v3674_v50 = vmul.f32 %v8272_v4, %v8272_v4 }
 0x31a   : > { %v3631_v41 = vadd.f32 %v3630_v62, %v8260_v19  ;;  %v3707_v56 = vadd.f32 %v3706_v6, %v3672_v44  ;;  %v3236_v18 = vadd.f32 %v5495_v5, %v8019_v40  ;;  %v5497_v14 = vadd.f32 %v3113_v16, %v9171_v12 }
 0x31b   : > { %v3239_v27 = vadd.f32 %v5496_v48, %v8019_v40  ;;  %v8299_v24 = vadd.s32 280, %v7508_v23  ;;  %v8981_v38 = vcvt.s32.f32 %v8280_v2  ;;  %v8308_v12 = vmul.f32 %v8059_v51, %v3238_v33  ;;  %v9173_v33 = vld [vmem:[#allocation52_spill] sm:$0xff] }
 0x31c   : > { %v3708_v46 = vadd.f32 %v3707_v56, %v3673_v60  ;;  %v8303_v30 = vmul.f32 %v8066_v32, %v3236_v18  ;;  %v3632_v6 = vadd.f32 %v3631_v41, %v8272_v4  ;;  %v3237_v62 = vadd.f32 %v5497_v14, %v8019_v40 }
 0x31d   : > { %9172 = vst [vmem:[#allocation35_spill] sm:$0xff] %v8308_v12  ;;  %v8312_v44 = vsub.f32 %v3320_v34, %v3429_v49  ;;  %v3427_v5 = vmul.f32 18.0, %v3391_v61  ;;  %v3396_v48 = vfloor.f32 %v8277_v28  ;;  %v8322_v51 = vmul.f32 %v8070_v9, %v3239_v27 }
 0x31e   : > { %v3633_v16 = vadd.f32 %v3632_v6, %v8303_v30  ;;  %v3675_v32 = vmul.f32 %v8303_v30, %v8303_v30  ;;  %v3709_v60 = vadd.f32 %v3708_v46, %v3674_v50  ;;  %v8319_v41 = vmul.f32 %v8078_v47, %v3237_v62  ;;  %v5346_v14 = vpop.f32.mrb[24].mxu0  ;;  %v9174_v47 = vld [vmem:[#allocation53_spill] sm:$0xff]  ;;  %v9175_v6 = vld [vmem:[#allocation54_spill] sm:$0xff] }
 0x31f   : > { %v5498_v39 = vadd.f32 %v5346_v14, %v9173_v33  ;;  %v3126_v34 = vpop.f32.mrb[25].mxu0  ;;  %v3359_v61 = vmul.f32 0.055555556, %v8981_v38  ;;  %v3677_v9 = vmul.f32 %v8308_v12, %v8308_v12  ;;  %v3394_v33 = vfloor.f32 %v3358_v52 }
 0x320   : > { %v3710_v28 = vadd.f32 %v3709_v60, %v3675_v32  ;;  %v3634_v56 = vadd.f32 %v3633_v16, %v8319_v41  ;;  %v3676_v18 = vmul.f32 %v8319_v41, %v8319_v41  ;;  %v5499_v50 = vadd.f32 %v3126_v34, %v9174_v47  ;;  %v5347_v46 = vpop.f32.mrb[26].mxu0  ;;  %v9176_v60 = vld [vmem:[#allocation55_spill] sm:$0xff] }
 0x321   : > { %v3242_v27 = vadd.f32 %v5498_v39, %v8019_v40  ;;  %v5500_v62 = vadd.f32 %v5347_v46, %v9175_v6  ;;  %v3129_v14 = vpop.f32.mrb[27].mxu0  ;;  %vm3500_vm5 = vcmp.lt.f32.partialorder %v8234_v55, 15.5  ;;  %vm3501_vm6 = vcmp.lt.f32.partialorder %v8312_v44, 15.5 }
 0x322   : > { %v3635_v38 = vadd.f32 %v3634_v56, %v8308_v12  ;;  %v3711_v32 = vadd.f32 %v3710_v28, %v3676_v18  ;;  %v3240_v16 = vadd.f32 %v5499_v50, %v8019_v40  ;;  %v5501_v49 = vadd.f32 %v3129_v14, %v9176_v60 }
 0x323   : > { %v3678_v34 = vmul.f32 %v8322_v51, %v8322_v51  ;;  %v9177_v39 = vcvt.s32.f32 %v8129_v13  ;;  %v9178_v46 = vcvt.s32.f32 %v8299_v24  ;;  %v3395_v6 = vfloor.f32 %v3359_v61 }
 0x324   : > { %v3712_v56 = vadd.f32 %v3711_v32, %v3677_v9  ;;  %v8348_v28 = vmul.f32 %v8115_v57, %v3240_v16  ;;  %v3636_v18 = vadd.f32 %v3635_v38, %v8322_v51  ;;  %v3241_v50 = vadd.f32 %v5501_v49, %v8019_v40  ;;  %v9180_v38 = vld [vmem:[#allocation56_spill] sm:$0xff] }
 0x325   : > { %v3463_v47 = vsub.f32 %v9177_v39, %v3427_v5  ;;  %v3361_v52 = vmul.f32 0.055555556, %v9178_v46  ;;  %v8353_v14 = vmul.f32 %v8082_v11, %v3242_v27  ;;  %v3243_v60 = vadd.f32 %v5500_v62, %v8019_v40 }
 0x326   : > { %v3432_v12 = vmul.f32 18.0, %v3396_v48  ;;  %v3430_v13 = vmul.f32 18.0, %v3394_v33  ;;  %v3637_v5 = vadd.f32 %v3636_v18, %v8348_v28  ;;  %v3679_v61 = vmul.f32 %v8348_v28, %v8348_v28  ;;  %v5350_v32 = vpop.f32.mrb[28].mxu0  ;;  %v9181_v33 = vld [vmem:[#allocation57_spill] sm:$0xff] }
 0x327   : > { %v3713_v9 = vadd.f32 %v3712_v56, %v3678_v34  ;;  %v8360_v57 = vmul.f32 %v8221_v53, %v3241_v50  ;;  %v5502_v16 = vadd.f32 %v5350_v32, %v9180_v38  ;;  %v3142_v49 = vpop.f32.mrb[29].mxu0  ;;  %vm3499_vm7 = vcmp.lt.f32.partialorder %v3463_v47, 15.5  ;;  %v9182_v56 = vld [vmem:[#allocation58_spill] sm:$0xff]  ;;  %v9184_v38 = vld [vmem:[#allocation59_spill] sm:$0xff] }
 0x328   : > { %v3397_v11 = vfloor.f32 %v3361_v52  ;;  %v3431_v27 = vmul.f32 18.0, %v3395_v6  ;;  %v5503_v46 = vadd.f32 %v3142_v49, %v9181_v33  ;;  %v5351_v18 = vpop.f32.mrb[30].mxu0  ;;  %v3681_v53 = vmul.f32 %v8353_v14, %v8353_v14 }
 0x329   : > { %9179 = vst [vmem:[#allocation34_spill] sm:$0xff] %v8360_v57  ;;  %v3714_v39 = vadd.f32 %v3713_v9, %v3679_v61  ;;  %v3638_v48 = vadd.f32 %v3637_v5, %v8360_v57  ;;  %v3680_v62 = vmul.f32 %v8360_v57, %v8360_v57  ;;  %v8370_v34 = vmul.f32 %v8217_v31, %v3243_v60  ;;  %v3145_v32 = vpop.f32.mrb[31].mxu0 }
 0x32a   : > { %v5504_v50 = vadd.f32 %v5351_v18, %v9182_v56  ;;  %v9183_v52 = vcvt.s32.f32 %v8177_v43  ;;  %v3244_v9 = vadd.f32 %v5503_v46, %v8019_v40  ;;  %v5505_v49 = vadd.f32 %v3145_v32, %v9184_v38 }
 0x32b   : > { %v3639_v5 = vadd.f32 %v3638_v48, %v8353_v14  ;;  %v3715_v61 = vadd.f32 %v3714_v39, %v3680_v62  ;;  %v3246_v33 = vadd.f32 %v5502_v16, %v8019_v40  ;;  %v4715_v57 = vsel %vm3499_vm7, 1.0, %v9120_v21 }
 0x32c   : > { %v3466_v6 = vsub.f32 %v9183_v52, %v3430_v13  ;;  %v3433_v31 = vmul.f32 18.0, %v3397_v11  ;;  %v9185_v60 = vcvt.s32.f32 %v8280_v2  ;;  %v8384_v43 = vmul.f32 %v8263_v15, %v3244_v9  ;;  %v9189_v9 = vld [vmem:[#allocation61_spill] sm:$0xff] }
 0x32d   : > { %v3716_v56 = vadd.f32 %v3715_v61, %v3681_v53  ;;  %v3640_v13 = vadd.f32 %v3639_v5, %v8370_v34  ;;  %v3245_v39 = vadd.f32 %v5505_v49, %v8019_v40  ;;  %v3682_v48 = vmul.f32 %v8370_v34, %v8370_v34  ;;  %v9188_v61 = vld [vmem:[#allocation60_spill] sm:$0xff] }
 0x32e   : > { %v3467_v18 = vsub.f32 %v9185_v60, %v3431_v27  ;;  %v4716_v47 = vsel %vm3500_vm5, 1.0, %v9120_v21  ;;  %v4717_v2 = vsel %vm3501_vm6, 1.0, %v9120_v21  ;;  %v9186_v16 = vcvt.s32.f32 %v8153_v29  ;;  %v5354_v46 = vpop.f32.mrb[32].mxu0  ;;  %vm9198_vm6 = vmpackc.low %vm7558_vm12, %vm7553_vm11 }
 0x32f   : > { %v3641_v15 = vadd.f32 %v3640_v13, %v8384_v43  ;;  %v3247_v27 = vadd.f32 %v5504_v50, %v8019_v40  ;;  %v8400_v62 = vmul.f32 %v4715_v57, %v3245_v39  ;;  %vm3502_vm10 = vcmp.lt.f32.partialorder %v3466_v6, 15.5  ;;  %v3158_v52 = vpop.f32.mrb[33].mxu0 }
 0x330   : > { %v3468_v11 = vsub.f32 %v9186_v16, %v3432_v12  ;;  %v3683_v53 = vmul.f32 %v8384_v43, %v8384_v43  ;;  %v3717_v55 = vadd.f32 %v3716_v56, %v3682_v48  ;;  %v5506_v32 = vadd.f32 %v5354_v46, %v7948_v25  ;;  %v5355_v57 = vpop.f32.mrb[34].mxu0 }
 0x331   : > { %v9187_v44 = vcvt.s32.f32 %v8299_v24  ;;  %v8407_v29 = vmul.f32 %v4716_v47, %v3246_v33  ;;  %v3642_v12 = vadd.f32 %v3641_v15, %v8400_v62  ;;  %v5507_v50 = vadd.f32 %v3158_v52, %v9188_v61  ;;  %v3161_v49 = vpop.f32.mrb[35].mxu0 }
 0x332   : > { %vm3503_vm13 = vcmp.lt.f32.partialorder %v3467_v18, 15.5  ;;  %vm3504_vm0 = vcmp.lt.f32.partialorder %v3468_v11, 15.5  ;;  %v4718_v6 = vsel %vm3502_vm10, 1.0, %v9120_v21  ;;  %v5508_v38 = vadd.f32 %v5355_v57, %v9189_v9 }
 0x333   : > { %v3469_v5 = vsub.f32 %v9187_v44, %v3433_v31  ;;  %v8413_v60 = vmul.f32 %v4717_v2, %v3247_v27  ;;  %v3643_v25 = vadd.f32 %v3642_v12, %v8407_v29  ;;  %v3248_v24 = vadd.f32 %v5507_v50, %v8019_v40 }
 0x334   : > { %v5509_v33 = vadd.f32 %v3161_v49, %v7971_v22  ;;  %v3718_v31 = vadd.f32 %v3717_v55, %v3683_v53  ;;  %v3684_v56 = vmul.f32 %v8400_v62, %v8400_v62  ;;  %v4719_v18 = vsel %vm3503_vm13, 1.0, %v9120_v21 }
 0x335   : > { %vm3505_vm3 = vcmp.lt.f32.partialorder %v3469_v5, 15.5  ;;  %v3250_v13 = vadd.f32 %v5506_v32, %v8019_v40  ;;  %v8422_v39 = vmul.f32 %v4718_v6, %v3248_v24  ;;  %v3644_v48 = vadd.f32 %v3643_v25, %v8413_v60 }
 0x336   : > { %v3249_v47 = vadd.f32 %v5509_v33, %v8019_v40  ;;  %v4720_v2 = vsel %vm3504_vm0, 1.0, %v9120_v21  ;;  %v3251_v16 = vadd.f32 %v5508_v38, %v8019_v40  ;;  %v4721_v27 = vsel %vm3505_vm3, 1.0, %v9120_v21 }
 0x337   : > { %v3645_v22 = vadd.f32 %v3644_v48, %v8422_v39  ;;  %v3719_v46 = vadd.f32 %v3718_v31, %v3684_v56  ;;  %v8433_v53 = vmul.f32 %v4720_v2, %v3250_v13  ;;  %v3685_v32 = vmul.f32 %v8407_v29, %v8407_v29 }
 0x338   : > { %v8430_v15 = vmul.f32 %v4719_v18, %v3249_v47  ;;  %v8438_v52 = vmul.f32 %v4721_v27, %v3251_v16  ;;  %v3686_v40 = vmul.f32 %v8413_v60, %v8413_v60  ;;  %v3687_v61 = vmul.f32 %v8422_v39, %v8422_v39 }
 0x339   : > { %v3720_v44 = vadd.f32 %v3719_v46, %v3685_v32  ;;  %v3689_v31 = vmul.f32 %v8433_v53, %v8433_v53  ;;  %v9190_v56 = vmov 1.0|1.0   ;;  %vm9194_vm5 = vmmov 0   ;;  %v3965_v46 = vld [vmem:[#allocation8] sm:$0x1] }
 0x33a   : > { %v3646_v55 = vadd.f32 %v3645_v22, %v8430_v15  ;;  %v3688_v38 = vmul.f32 %v8430_v15, %v8430_v15  ;;  %v9195_v47 = vmov 0.0|0.0   ;;  %v3690_v2 = vmul.f32 %v8438_v52, %v8438_v52 }
 0x33b   : > { %v3721_v50 = vadd.f32 %v3720_v44, %v3686_v40  ;;  %v9207_v40 = vld [vmem:[#allocation33_spill] sm:$0xff] }
 0x33c   : > { %v3647_v11 = vadd.f32 %v3646_v55, %v8433_v53  ;;  %vm9208_vm12 = vnez %v9207_v40 }
 0x33d   : > { %v3722_v9 = vadd.f32 %v3721_v50, %v3687_v61  ;;  %v9210_v61 = vld [vmem:[#allocation38_spill] sm:$0xff]  ;;  %v9212_v50 = vld [vmem:[#allocation39_spill] sm:$0xff] }
 0x33e   : > { %v3648_v5 = vadd.f32 %v3647_v11, %v8438_v52  ;;  %vm9211_vm15 = vnez %v9210_v61  ;;  %vm9213_vm7 = vnez %v9212_v50  ;;  %v3967_v11 = vld [vmem:[#allocation10] sm:$0x1]  ;;  %v3974_v61 = vld [vmem:[%s375_s13] sm:$0x1] }
 0x33f   : > { %v3723_v24 = vadd.f32 %v3722_v9, %v3688_v38  ;;  %vm9214_vm1 = vmpackc.low %vm9211_vm15, %vm9213_vm7  ;;  %v9217_v9 = vld [vmem:[#allocation36_spill] sm:$0xff] }
 0x340   : > { %v3649_v12 = vrot.slane %v3648_v5, 4  ;;  %vm9218_vm10 = vnez %v9217_v9 }
 0x341   : > { %v3724_v48 = vadd.f32 %v3723_v24, %v3689_v31 }
 0x342   : > { %v3650_v57 = vadd.f32 %v3649_v12, %v3648_v5  ;;  %v9205_v5 = vld [vmem:[#allocation32_spill] sm:$0xff] }
 0x343   : > { %v3725_v27 = vadd.f32 %v3724_v48, %v3690_v2  ;;  %vm9206_vm11 = vnez %v9205_v5 }
 0x344   : > { %v3651_v6 = vrot.slane %v3650_v57, 2  ;;  %vm9209_vm14 = vmpackc.low %vm9206_vm11, %vm9208_vm12 }
 0x345   : > { %v3726_v55 = vrot.slane %v3725_v27, 4 }
 0x346   : > { %v3652_v49 = vadd.f32 %v3651_v6, %v3650_v57  ;;  %v9215_v6 = vld [vmem:[#allocation41_spill] sm:$0xff] }
 0x347   : > { %v3727_v44 = vadd.f32 %v3726_v55, %v3725_v27  ;;  %vm9216_vm2 = vnez %v9215_v6  ;;  %v3970_v27 = vld [vmem:[%s367_s12] sm:$0x1] }
 0x348   : > { %v3653_v25 = vrot.slane %v3652_v49, 1  ;;  %vm9219_vm13 = vmpackc.low %vm9216_vm2, %vm9218_vm10 }
 0x349   : > { %v3728_v12 = vrot.slane %v3727_v44, 2 }
 0x34a   : > { %v3654_v33 = vadd.f32 %v3653_v25, %v3652_v49  ;;  %v9220_v49 = vld [vmem:[#allocation45_spill] sm:$0xff]  ;;  %v9222_v25 = vld [vmem:[#allocation44_spill] sm:$0xff] }
 0x34b   : > { %v3729_v57 = vadd.f32 %v3728_v12, %v3727_v44  ;;  %vm9221_vm0 = vnez %v9220_v49  ;;  %vm9223_vm3 = vnez %v9222_v25 }
 0x34c   : > { %5389 = vmatmul.mubr.f32.vlgmr.msra.gmra.mrb[36].mxu1 %v3654_v33 }
 0x34d   : > { %5452 = vmatpush3.bf16.msk.msra.mxu1 %vm9193_vm4, %v9190_v56  ;;  %5423 = vmatprep.mubr.msk.f32.mxu1 %vm9194_vm5, %v9120_v21  ;;  %v3730_v38 = vrot.slane %v3729_v57, 1  ;;  %vm9224_vm4 = vmpackc.low %vm9221_vm0, %vm9223_vm3  ;;  %v3971_v21 = vadd.f32 1.0, %v3970_v27 }
 0x34e   : > { %5453 = vmatprep.subr.bf16.mxu1 %v9195_v47 }
 0x34f   : > { %v3731_v24 = vadd.f32 %v3730_v38, %v3729_v57 }
 0x351   : > { %5455 = vmatpush3.bf16.msk.msra.mxu1 %vm9198_vm6, %v9190_v56 }
 0x352   : > { %5456 = vmatprep.subr.bf16.mxu1 %v9195_v47 }
 0x355   : > { %5458 = vmatpush3.bf16.msk.msra.mxu1 %vm9201_vm8, %v9190_v56 }
 0x356   : > { %5459 = vmatprep.subr.bf16.mxu1 %v9195_v47 }
 0x359   : > { %5461 = vmatpush3.bf16.msk.msra.mxu1 %vm9204_vm9, %v9190_v56 }
 0x35a   : > { %5462 = vmatprep.subr.bf16.mxu1 %v9195_v47 }
 0x35d   : > { %5464 = vmatpush3.bf16.msk.msra.mxu1 %vm9209_vm14, %v9190_v56 }
 0x35e   : > { %5465 = vmatprep.subr.bf16.mxu1 %v9195_v47 }
 0x361   : > { %5467 = vmatpush3.bf16.msk.msra.mxu1 %vm9214_vm1, %v9190_v56 }
 0x362   : > { %5468 = vmatprep.subr.bf16.mxu1 %v9195_v47 }
 0x365   : > { %5470 = vmatpush3.bf16.msk.msra.mxu1 %vm9219_vm13, %v9190_v56 }
 0x366   : > { %5471 = vmatprep.subr.bf16.mxu1 %v9195_v47 }
 0x369   : > { %5473 = vmatpush3.bf16.msk.msra.mxu1 %vm9224_vm4, %v9190_v56  ;;  %v3978_v56 = vsub.s32 0, %v7508_v23 }
 0x36c   : > { %5424 = vmatmul.mubr.f32.vlgmr.msra.gmra.mrb[38].mxu1 %v3731_v24 }
 0x41f   : > { %v3884_v33 = vpop.f32.mrb[36].mxu1 }
 0x420   : > { %v5390_v31 = vpop.f32.mrb[37].mxu1  ;;  %v3959_v18 = vmul.f32 0.0009765625, %v3884_v33 }
 0x422   : > { %v3961_v48 = vmul.f32 %v3959_v18, %v3959_v18 }
 0x43f   : > { %v3954_v13 = vpop.f32.mrb[38].mxu1 }
 0x440   : > { %v3960_v2 = vmul.f32 0.0009765625, %v3954_v13  ;;  %v5425_v22 = vpop.f32.mrb[39].mxu1 }
 0x442   : > { %v3962_v16 = vsub.f32 %v3960_v2, %v3961_v48  ;;  %v9226_v2 = vld [vmem:[#allocation34_spill] sm:$0xff] }
 0x444   : > { %v3963_v47 = vadd.f32 1e-05, %v3962_v16 }
 0x446   : > { %5883 = vrsqrt.f32 %v3963_v47 }
 0x450   : > { %v5884_v55 = vpop.eup %5883 }
 0x451   : > { %v3966_v32 = vmul.f32 %v5884_v55, %v3965_v46 }
 0x453   : > { %v3968_v44 = vmul.f32 %v3966_v32, %v3959_v18  ;;  %v3972_v5 = vmul.f32 %v3971_v21, %v3966_v32 }
 0x455   : > { %v3969_v40 = vsub.f32 %v3967_v11, %v3968_v44  ;;  %v3979_v12 = vrot.slane %v3972_v5, %v3978_v56 }
 0x457   : > { %v3973_v50 = vmul.f32 %v3971_v21, %v3969_v40  ;;  %v3980_v57 = vmul.f32 %v3979_v12, %v8050_v35  ;;  %v3981_v6 = vmul.f32 %v3979_v12, %v8074_v36  ;;  %v3982_v9 = vmul.f32 %v3979_v12, %v8044_v37 }
 0x458   : > { %v3983_v38 = vmul.f32 %v3979_v12, %v8062_v26  ;;  %v3984_v49 = vmul.f32 %v3979_v12, %v8118_v7  ;;  %v3985_v23 = vmul.f32 %v3979_v12, %v8135_v8  ;;  %v3986_v25 = vmul.f32 %v3979_v12, %v8110_v1 }
 0x459   : > { %v3975_v24 = vadd.f32 %v3974_v61, %v3973_v50  ;;  %v3987_v33 = vmul.f32 %v3979_v12, %v8123_v42  ;;  %v3988_v31 = vmul.f32 %v3979_v12, %v8167_v0  ;;  %v3989_v18 = vmul.f32 %v3979_v12, %v8183_v3 }
 0x45a   : > { %v3990_v35 = vmul.f32 %v3979_v12, %v8161_v59  ;;  %v3991_v36 = vmul.f32 %v3979_v12, %v8172_v20  ;;  %v3992_v37 = vmul.f32 %v3979_v12, %v8207_v63  ;;  %v3993_v26 = vmul.f32 %v3979_v12, %v8229_v45  ;;  %v9225_v63 = vld [vmem:[#allocation35_spill] sm:$0xff] }
 0x45b   : > { %v4020_v7 = vrot.slane %v3975_v24, %v3978_v56  ;;  %v3994_v8 = vmul.f32 %v3979_v12, %v8201_v58  ;;  %v3995_v1 = vmul.f32 %v3979_v12, %v8212_v10  ;;  %v3996_v13 = vmul.f32 %v3979_v12, %v8255_v54 }
 0x45c   : > { %v3997_v42 = vmul.f32 %v3979_v12, %v8269_v17  ;;  %v3998_v0 = vmul.f32 %v3979_v12, %v8260_v19  ;;  %v3999_v3 = vmul.f32 %v3979_v12, %v8272_v4  ;;  %v4000_v59 = vmul.f32 %v3979_v12, %v8303_v30 }
 0x45d   : > { %v4001_v20 = vmul.f32 %v3979_v12, %v8319_v41  ;;  %v4002_v48 = vmul.f32 %v3979_v12, %v9225_v63  ;;  %v4003_v45 = vmul.f32 %v3979_v12, %v8322_v51  ;;  %v4004_v58 = vmul.f32 %v3979_v12, %v8348_v28 }
 0x45e   : > { %v4005_v10 = vmul.f32 %v3979_v12, %v9226_v2  ;;  %v4006_v54 = vmul.f32 %v3979_v12, %v8353_v14  ;;  %v4007_v17 = vmul.f32 %v3979_v12, %v8370_v34  ;;  %v4008_v19 = vmul.f32 %v3979_v12, %v8384_v43 }
 0x45f   : > { %v4009_v4 = vmul.f32 %v3979_v12, %v8400_v62  ;;  %v4010_v30 = vmul.f32 %v3979_v12, %v8407_v29  ;;  %v4011_v41 = vmul.f32 %v3979_v12, %v8413_v60  ;;  %v4012_v22 = vmul.f32 %v3979_v12, %v8422_v39 }
 0x460   : > { %v4013_v51 = vmul.f32 %v3979_v12, %v8430_v15  ;;  %v4014_v28 = vmul.f32 %v3979_v12, %v8433_v53  ;;  %v4015_v16 = vmul.f32 %v3979_v12, %v8438_v52  ;;  %v8549_v47 = vadd.f32 %v4020_v7, %v3980_v57 }
 0x461   : > { %v8551_v14 = vadd.f32 %v4020_v7, %v3981_v6  ;;  %v8553_v34 = vadd.f32 %v4020_v7, %v3982_v9  ;;  %v8555_v43 = vadd.f32 %v4020_v7, %v3983_v38  ;;  %v8557_v62 = vadd.f32 %v4020_v7, %v3984_v49 }
 0x462   : > { %v8559_v29 = vadd.f32 %v4020_v7, %v3985_v23  ;;  %v8561_v60 = vadd.f32 %v4020_v7, %v3986_v25  ;;  %v8563_v39 = vadd.f32 %v4020_v7, %v3987_v33  ;;  %v8565_v15 = vadd.f32 %v4020_v7, %v3988_v31 }
 0x463   : > { %v8567_v53 = vadd.f32 %v4020_v7, %v3989_v18  ;;  %v8569_v52 = vadd.f32 %v4020_v7, %v3990_v35  ;;  %v8571_v27 = vadd.f32 %v4020_v7, %v3991_v36  ;;  %v8573_v46 = vadd.f32 %v4020_v7, %v3992_v37 }
 0x464   : > { %v8575_v21 = vadd.f32 %v4020_v7, %v3993_v26  ;;  %v8577_v55 = vadd.f32 %v4020_v7, %v3994_v8  ;;  %v8579_v32 = vadd.f32 %v4020_v7, %v3995_v1  ;;  %v8581_v56 = vadd.f32 %v4020_v7, %v3996_v13 }
 0x465   : > { %v8583_v11 = vadd.f32 %v4020_v7, %v3997_v42  ;;  %v8585_v44 = vadd.f32 %v4020_v7, %v3998_v0  ;;  %v8587_v5 = vadd.f32 %v4020_v7, %v3999_v3  ;;  %v8589_v40 = vadd.f32 %v4020_v7, %v4000_v59 }
 0x466   : > { %v8591_v12 = vadd.f32 %v4020_v7, %v4001_v20  ;;  %v8593_v61 = vadd.f32 %v4020_v7, %v4002_v48  ;;  %v8595_v50 = vadd.f32 %v4020_v7, %v4003_v45  ;;  %v8597_v57 = vadd.f32 %v4020_v7, %v4004_v58 }
 0x467   : > { %v8599_v6 = vadd.f32 %v4020_v7, %v4005_v10  ;;  %v8601_v9 = vadd.f32 %v4020_v7, %v4006_v54  ;;  %v8603_v38 = vadd.f32 %v4020_v7, %v4007_v17  ;;  %v8605_v49 = vadd.f32 %v4020_v7, %v4008_v19 }
 0x468   : > { %v8607_v23 = vadd.f32 %v4020_v7, %v4009_v4  ;;  %v8609_v25 = vadd.f32 %v4020_v7, %v4010_v30  ;;  %v8611_v24 = vadd.f32 %v4020_v7, %v4011_v41  ;;  %v8613_v33 = vadd.f32 %v4020_v7, %v4012_v22 }
 0x469   : > { %9227 = vst [vmem:[#allocation37_spill] sm:$0xff] %v8603_v38  ;;  %9228 = vst [vmem:[#allocation40_spill] sm:$0xff] %v8605_v49  ;;  %v8615_v31 = vadd.f32 %v4020_v7, %v4013_v51  ;;  %v8617_v18 = vadd.f32 %v4020_v7, %v4014_v28  ;;  %v8619_v35 = vadd.f32 %v4020_v7, %v4015_v16  ;;  %v4770_v36 = vmul.f32 -1.442695, %v8549_v47 }
 0x46a   : > { %9229 = vst [vmem:[#allocation42_spill] sm:$0xff] %v8607_v23  ;;  %9230 = vst [vmem:[#allocation43_spill] sm:$0xff] %v8609_v25  ;;  %v4771_v37 = vmul.f32 -1.442695, %v8551_v14  ;;  %v4772_v26 = vmul.f32 -1.442695, %v8553_v34 }
 0x46b   : > { %9231 = vst [vmem:[#allocation46_spill] sm:$0xff] %v8611_v24  ;;  %9232 = vst [vmem:[#allocation47_spill] sm:$0xff] %v8613_v33  ;;  %v4773_v8 = vmul.f32 -1.442695, %v8555_v43  ;;  %5885 = vpow2.f32 %v4770_v36  ;;  %v4774_v1 = vmul.f32 -1.442695, %v8557_v62 }
 0x46c   : > { %9233 = vst [vmem:[#allocation48_spill] sm:$0xff] %v8615_v31  ;;  %9234 = vst [vmem:[#allocation49_spill] sm:$0xff] %v8617_v18  ;;  %5887 = vpow2.f32 %v4771_v37  ;;  %v4775_v13 = vmul.f32 -1.442695, %v8559_v29  ;;  %v4776_v42 = vmul.f32 -1.442695, %v8561_v60 }
 0x46d   : > { %9235 = vst [vmem:[#allocation50_spill] sm:$0xff] %v8619_v35  ;;  %5889 = vpow2.f32 %v4772_v26  ;;  %v4777_v7 = vmul.f32 -1.442695, %v8563_v39  ;;  %v4778_v0 = vmul.f32 -1.442695, %v8565_v15 }
 0x46e   : > { %5891 = vpow2.f32 %v4773_v8  ;;  %v4779_v3 = vmul.f32 -1.442695, %v8567_v53  ;;  %v4780_v59 = vmul.f32 -1.442695, %v8569_v52  ;;  %v4781_v20 = vmul.f32 -1.442695, %v8571_v27 }
 0x46f   : > { %5893 = vpow2.f32 %v4774_v1  ;;  %v4782_v63 = vmul.f32 -1.442695, %v8573_v46  ;;  %v4783_v48 = vmul.f32 -1.442695, %v8575_v21  ;;  %v4784_v58 = vmul.f32 -1.442695, %v8577_v55 }
 0x470   : > { %5895 = vpow2.f32 %v4775_v13  ;;  %v4785_v10 = vmul.f32 -1.442695, %v8579_v32  ;;  %v4786_v17 = vmul.f32 -1.442695, %v8581_v56  ;;  %v4787_v4 = vmul.f32 -1.442695, %v8583_v11 }
 0x471   : > { %5897 = vpow2.f32 %v4776_v42  ;;  %v4788_v41 = vmul.f32 -1.442695, %v8585_v44  ;;  %v4789_v51 = vmul.f32 -1.442695, %v8587_v5  ;;  %v4790_v16 = vmul.f32 -1.442695, %v8589_v40 }
 0x472   : > { %5899 = vpow2.f32 %v4777_v7  ;;  %v4791_v37 = vmul.f32 -1.442695, %v8591_v12  ;;  %v4792_v8 = vmul.f32 -1.442695, %v8593_v61  ;;  %v4793_v13 = vmul.f32 -1.442695, %v8595_v50 }
 0x473   : > { %5901 = vpow2.f32 %v4778_v0  ;;  %v4794_v7 = vmul.f32 -1.442695, %v8597_v57 }
 0x474   : > { %5903 = vpow2.f32 %v4779_v3  ;;  %v4795_v3 = vmul.f32 -1.442695, %v8599_v6 }
 0x475   : > { %v8635_v45 = vpop.eup %5885  ;;  %5905 = vpow2.f32 %v4780_v59 }
 0x476   : > { %v8638_v2 = vpop.eup %5887  ;;  %5907 = vpow2.f32 %v4781_v20  ;;  %v4796_v20 = vmul.f32 -1.442695, %v8601_v9 }
 0x477   : > { %v8641_v54 = vpop.eup %5889  ;;  %5909 = vpow2.f32 %v4782_v63 }
 0x478   : > { %v8644_v19 = vpop.eup %5891  ;;  %5911 = vpow2.f32 %v4783_v48  ;;  %v4797_v48 = vmul.f32 -1.442695, %v8603_v38 }
 0x479   : > { %v8647_v30 = vpop.eup %5893  ;;  %5913 = vpow2.f32 %v4784_v58 }
 0x47a   : > { %v8650_v22 = vpop.eup %5895  ;;  %5915 = vpow2.f32 %v4785_v10  ;;  %v4798_v10 = vmul.f32 -1.442695, %v8605_v49 }
 0x47b   : > { %v8653_v28 = vpop.eup %5897  ;;  %5917 = vpow2.f32 %v4786_v17 }
 0x47c   : > { %v8656_v36 = vpop.eup %5899  ;;  %5919 = vpow2.f32 %v4787_v4  ;;  %v4799_v4 = vmul.f32 -1.442695, %v8607_v23 }
 0x47d   : > { %v8659_v26 = vpop.eup %5901  ;;  %5921 = vpow2.f32 %v4788_v41 }
 0x47e   : > { %v8662_v1 = vpop.eup %5903  ;;  %5923 = vpow2.f32 %v4789_v51  ;;  %v4800_v51 = vmul.f32 -1.442695, %v8609_v25 }
 0x47f   : > { %v8665_v42 = vpop.eup %5905  ;;  %5925 = vpow2.f32 %v4790_v16 }
 0x480   : > { %v8668_v0 = vpop.eup %5907  ;;  %5927 = vpow2.f32 %v4791_v37  ;;  %v4801_v37 = vmul.f32 -1.442695, %v8611_v24 }
 0x481   : > { %v8671_v59 = vpop.eup %5909  ;;  %5929 = vpow2.f32 %v4792_v8 }
 0x482   : > { %v8674_v63 = vpop.eup %5911  ;;  %5931 = vpow2.f32 %v4793_v13  ;;  %v4802_v13 = vmul.f32 -1.442695, %v8613_v33 }
 0x483   : > { %v8677_v58 = vpop.eup %5913  ;;  %5933 = vpow2.f32 %v4794_v7 }
 0x484   : > { %v8680_v17 = vpop.eup %5915  ;;  %5935 = vpow2.f32 %v4795_v3  ;;  %v4803_v3 = vmul.f32 -1.442695, %v8615_v31  ;;  %v4180_v49 = vadd.f32 1.0, %v8677_v58 }
 0x485   : > { %v8683_v41 = vpop.eup %5917  ;;  %5937 = vpow2.f32 %v4796_v20  ;;  %v4804_v20 = vmul.f32 -1.442695, %v8617_v18 }
 0x486   : > { %v8686_v16 = vpop.eup %5919  ;;  %5939 = vpow2.f32 %v4797_v48  ;;  %v4805_v48 = vmul.f32 -1.442695, %v8619_v35  ;;  %v4182_v38 = vadd.f32 1.0, %v8683_v41 }
 0x487   : > { %v8689_v8 = vpop.eup %5921  ;;  %5941 = vpow2.f32 %v4798_v10  ;;  %v4166_v10 = vadd.f32 1.0, %v8635_v45 }
 0x488   : > { %v8692_v7 = vpop.eup %5923  ;;  %5943 = vpow2.f32 %v4799_v4  ;;  %v4167_v4 = vadd.f32 1.0, %v8638_v2  ;;  %v4171_v2 = vadd.f32 1.0, %v8650_v22  ;;  %v4175_v22 = vadd.f32 1.0, %v8662_v1 }
 0x489   : > { %v8695_v23 = vpop.eup %5925  ;;  %5945 = vpow2.f32 %v4800_v51  ;;  %v4168_v51 = vadd.f32 1.0, %v8641_v54  ;;  %v4172_v54 = vadd.f32 1.0, %v8653_v28  ;;  %v4176_v28 = vadd.f32 1.0, %v8665_v42 }
 0x48a   : > { %v8698_v25 = vpop.eup %5927  ;;  %5947 = vpow2.f32 %v4801_v37  ;;  %v4169_v37 = vadd.f32 1.0, %v8644_v19  ;;  %v4173_v19 = vadd.f32 1.0, %v8656_v36  ;;  %v4177_v36 = vadd.f32 1.0, %v8668_v0 }
 0x48b   : > { %v8701_v24 = vpop.eup %5929  ;;  %5949 = vpow2.f32 %v4802_v13  ;;  %v4170_v13 = vadd.f32 1.0, %v8647_v30  ;;  %v4174_v30 = vadd.f32 1.0, %v8659_v26  ;;  %v4178_v26 = vadd.f32 1.0, %v8671_v59 }
 0x48c   : > { %v8704_v33 = vpop.eup %5931  ;;  %5951 = vpow2.f32 %v4803_v3  ;;  %v4179_v1 = vadd.f32 1.0, %v8674_v63  ;;  %v4183_v63 = vadd.f32 1.0, %v8686_v16  ;;  %v4184_v58 = vadd.f32 1.0, %v8689_v8 }
 0x48d   : > { %v8707_v31 = vpop.eup %5933  ;;  %5953 = vpow2.f32 %v4804_v20  ;;  %v4185_v41 = vadd.f32 1.0, %v8692_v7 }
 0x48e   : > { %v8710_v18 = vpop.eup %5935  ;;  %5955 = vpow2.f32 %v4805_v48 }
 0x48f   : > { %v8713_v35 = vpop.eup %5937  ;;  %5957 = vrcp.f32 %v4166_v10 }
 0x490   : > { %v8716_v45 = vpop.eup %5939  ;;  %5959 = vrcp.f32 %v4167_v4 }
 0x491   : > { %v8719_v3 = vpop.eup %5941  ;;  %5961 = vrcp.f32 %v4168_v51 }
 0x492   : > { %v8722_v20 = vpop.eup %5943  ;;  %5963 = vrcp.f32 %v4169_v37 }
 0x493   : > { %v8725_v48 = vpop.eup %5945  ;;  %5965 = vrcp.f32 %v4170_v13 }
 0x494   : > { %v8728_v10 = vpop.eup %5947  ;;  %5967 = vrcp.f32 %v4171_v2 }
 0x495   : > { %v8731_v4 = vpop.eup %5949  ;;  %5969 = vrcp.f32 %v4172_v54  ;;  %v4181_v54 = vadd.f32 1.0, %v8680_v17 }
 0x496   : > { %v8735_v51 = vpop.eup %5951  ;;  %5971 = vrcp.f32 %v4173_v19 }
 0x497   : > { %v8738_v37 = vpop.eup %5953  ;;  %5973 = vrcp.f32 %v4174_v30 }
 0x498   : > { %v8741_v13 = vpop.eup %5955  ;;  %5975 = vrcp.f32 %v4175_v22 }
 0x499   : > { %v5958_v2 = vpop.eup %5957  ;;  %5977 = vrcp.f32 %v4176_v28  ;;  %v4186_v28 = vadd.f32 1.0, %v8695_v23 }
 0x49a   : > { %v5960_v42 = vpop.eup %5959  ;;  %5979 = vrcp.f32 %v4177_v36  ;;  %v4274_v0 = vmul.f32 %v5958_v2, %v8549_v47 }
 0x49b   : > { %v5962_v19 = vpop.eup %5961  ;;  %5981 = vrcp.f32 %v4178_v26  ;;  %v4275_v59 = vmul.f32 %v5960_v42, %v8551_v14 }
 0x49c   : > { %v5964_v30 = vpop.eup %5963  ;;  %5983 = vrcp.f32 %v4179_v1  ;;  %v4276_v22 = vmul.f32 %v5962_v19, %v8553_v34  ;;  %4310 = vst [vmem:[%s8751_s29] sm:$0xff] %v4274_v0 }
 0x49d   : > { %v5966_v47 = vpop.eup %5965  ;;  %5985 = vrcp.f32 %v4180_v49  ;;  %v4277_v17 = vmul.f32 %v5964_v30, %v8555_v43  ;;  %4311 = vst [vmem:[%s8751_s29 + $0x8] sm:$0xff] %v4275_v59  ;;  %v4187_v43 = vadd.f32 1.0, %v8698_v25 }
 0x49e   : > { %v5968_v14 = vpop.eup %5967  ;;  %5987 = vrcp.f32 %v4181_v54  ;;  %v4278_v34 = vmul.f32 %v5966_v47, %v8557_v62  ;;  %4312 = vst [vmem:[%s8751_s29 + $0x10] sm:$0xff] %v4276_v22  ;;  %v4188_v62 = vadd.f32 1.0, %v8701_v24 }
 0x49f   : > { %v5970_v16 = vpop.eup %5969  ;;  %5989 = vrcp.f32 %v4182_v38  ;;  %v4279_v36 = vmul.f32 %v5968_v14, %v8559_v29  ;;  %4313 = vst [vmem:[%s8751_s29 + $0x18] sm:$0xff] %v4277_v17  ;;  %v4189_v29 = vadd.f32 1.0, %v8704_v33 }
 0x4a0   : > { %v5972_v49 = vpop.eup %5971  ;;  %5991 = vrcp.f32 %v4183_v63  ;;  %v4280_v8 = vmul.f32 %v5970_v16, %v8561_v60  ;;  %4314 = vst [vmem:[%s8751_s29 + $0x20] sm:$0xff] %v4278_v34  ;;  %v4190_v60 = vadd.f32 1.0, %v8707_v31  ;;  %v9236_v16 = vld [vmem:[#allocation37_spill] sm:$0xff] }
 0x4a1   : > { %v5974_v7 = vpop.eup %5973  ;;  %5993 = vrcp.f32 %v4184_v58  ;;  %v4281_v26 = vmul.f32 %v5972_v49, %v8563_v39  ;;  %4315 = vst [vmem:[%s8751_s29 + $0x28] sm:$0xff] %v4279_v36  ;;  %v4191_v39 = vadd.f32 1.0, %v8710_v18 }
 0x4a2   : > { %v5976_v38 = vpop.eup %5975  ;;  %5995 = vrcp.f32 %v4185_v41  ;;  %v4282_v23 = vmul.f32 %v5974_v7, %v8565_v15  ;;  %4316 = vst [vmem:[%s8751_s29 + $0x30] sm:$0xff] %v4280_v8  ;;  %v4192_v15 = vadd.f32 1.0, %v8713_v35 }
 0x4a3   : > { %v5978_v25 = vpop.eup %5977  ;;  %5997 = vrcp.f32 %v4186_v28  ;;  %v4283_v1 = vmul.f32 %v5976_v38, %v8567_v53  ;;  %4317 = vst [vmem:[%s8751_s29 + $0x38] sm:$0xff] %v4281_v26  ;;  %v4193_v53 = vadd.f32 1.0, %v8716_v45  ;;  %v9240_v38 = vld [vmem:[#allocation46_spill] sm:$0xff] }
 0x4a4   : > { %v5980_v24 = vpop.eup %5979  ;;  %5999 = vrcp.f32 %v4187_v43  ;;  %v4284_v2 = vmul.f32 %v5978_v25, %v8569_v52  ;;  %4318 = vst [vmem:[%s8751_s29 + $0x40] sm:$0xff] %v4282_v23  ;;  %v4194_v52 = vadd.f32 1.0, %v8719_v3  ;;  %v9241_v25 = vld [vmem:[#allocation47_spill] sm:$0xff] }
 0x4a5   : > { %v5982_v33 = vpop.eup %5981  ;;  %6001 = vrcp.f32 %v4188_v62  ;;  %v4285_v42 = vmul.f32 %v5980_v24, %v8571_v27  ;;  %4319 = vst [vmem:[%s8751_s29 + $0x48] sm:$0xff] %v4283_v1  ;;  %v4195_v27 = vadd.f32 1.0, %v8722_v20  ;;  %v9239_v62 = vld [vmem:[#allocation43_spill] sm:$0xff]  ;;  %v9242_v24 = vld [vmem:[#allocation48_spill] sm:$0xff] }
 0x4a6   : > { %v5984_v31 = vpop.eup %5983  ;;  %6003 = vrcp.f32 %v4189_v29  ;;  %v4286_v54 = vmul.f32 %v5982_v33, %v8573_v46  ;;  %4320 = vst [vmem:[%s8751_s29 + $0x50] sm:$0xff] %v4284_v2  ;;  %v4196_v46 = vadd.f32 1.0, %v8725_v48  ;;  %v9243_v33 = vld [vmem:[#allocation49_spill] sm:$0xff] }
 0x4a7   : > { %v5986_v18 = vpop.eup %5985  ;;  %6005 = vrcp.f32 %v4190_v60  ;;  %v4287_v0 = vmul.f32 %v5984_v31, %v8575_v21  ;;  %4321 = vst [vmem:[%s8751_s29 + $0x58] sm:$0xff] %v4285_v42  ;;  %v4197_v21 = vadd.f32 1.0, %v8728_v10  ;;  %v9244_v42 = vld [vmem:[#allocation50_spill] sm:$0xff] }
 0x4a8   : > { %v5988_v35 = vpop.eup %5987  ;;  %6007 = vrcp.f32 %v4191_v39  ;;  %v4288_v19 = vmul.f32 %v5986_v18, %v8577_v55  ;;  %4322 = vst [vmem:[%s8751_s29 + $0x60] sm:$0xff] %v4286_v54  ;;  %v4198_v55 = vadd.f32 1.0, %v8731_v4 }
 0x4a9   : > { %v5990_v45 = vpop.eup %5989  ;;  %6009 = vrcp.f32 %v4192_v15  ;;  %v4289_v59 = vmul.f32 %v5988_v35, %v8579_v32  ;;  %4323 = vst [vmem:[%s8751_s29 + $0x68] sm:$0xff] %v4287_v0  ;;  %v4199_v32 = vadd.f32 1.0, %v8735_v51 }
 0x4aa   : > { %v5992_v3 = vpop.eup %5991  ;;  %6011 = vrcp.f32 %v4193_v53  ;;  %v4290_v30 = vmul.f32 %v5990_v45, %v8581_v56  ;;  %4324 = vst [vmem:[%s8751_s29 + $0x70] sm:$0xff] %v4288_v19  ;;  %v4200_v56 = vadd.f32 1.0, %v8738_v37 }
 0x4ab   : > { %v5994_v20 = vpop.eup %5993  ;;  %6013 = vrcp.f32 %v4194_v52  ;;  %v4291_v63 = vmul.f32 %v5992_v3, %v8583_v11  ;;  %4325 = vst [vmem:[%s8751_s29 + $0x78] sm:$0xff] %v4289_v59  ;;  %v4201_v11 = vadd.f32 1.0, %v8741_v13 }
 0x4ac   : > { %v5996_v48 = vpop.eup %5995  ;;  %6015 = vrcp.f32 %v4195_v27  ;;  %v4292_v10 = vmul.f32 %v5994_v20, %v8585_v44  ;;  %4326 = vst [vmem:[%s8751_s29 + $0x80] sm:$0xff] %v4290_v30 }
 0x4ad   : > { %v5998_v22 = vpop.eup %5997  ;;  %6017 = vrcp.f32 %v4196_v46  ;;  %v4293_v4 = vmul.f32 %v5996_v48, %v8587_v5  ;;  %4327 = vst [vmem:[%s8751_s29 + $0x88] sm:$0xff] %v4291_v63 }
 0x4ae   : > { %v6000_v47 = vpop.eup %5999  ;;  %6019 = vrcp.f32 %v4197_v21  ;;  %v4294_v51 = vmul.f32 %v5998_v22, %v8589_v40  ;;  %4328 = vst [vmem:[%s8751_s29 + $0x90] sm:$0xff] %v4292_v10 }
 0x4af   : > { %v6002_v58 = vpop.eup %6001  ;;  %6021 = vrcp.f32 %v4198_v55  ;;  %v4295_v44 = vmul.f32 %v6000_v47, %v8591_v12  ;;  %4329 = vst [vmem:[%s8751_s29 + $0x98] sm:$0xff] %v4293_v4 }
 0x4b0   : > { %v6004_v37 = vpop.eup %6003  ;;  %6023 = vrcp.f32 %v4199_v32  ;;  %v4296_v5 = vmul.f32 %v6002_v58, %v8593_v61  ;;  %4330 = vst [vmem:[%s8751_s29 + $0xa0] sm:$0xff] %v4294_v51 }
 0x4b1   : > { %v6006_v17 = vpop.eup %6005  ;;  %6025 = vrcp.f32 %v4200_v56  ;;  %v4297_v13 = vmul.f32 %v6004_v37, %v8595_v50  ;;  %4331 = vst [vmem:[%s8751_s29 + $0xa8] sm:$0xff] %v4295_v44 }
 0x4b2   : > { %v6008_v40 = vpop.eup %6007  ;;  %6027 = vrcp.f32 %v4201_v11  ;;  %v4298_v14 = vmul.f32 %v6006_v17, %v8597_v57  ;;  %4332 = vst [vmem:[%s8751_s29 + $0xb0] sm:$0xff] %v4296_v5  ;;  %v9237_v57 = vld [vmem:[#allocation40_spill] sm:$0xff] }
 0x4b3   : > { %v6010_v12 = vpop.eup %6009  ;;  %v4299_v41 = vmul.f32 %v6008_v40, %v8599_v6  ;;  %4333 = vst [vmem:[%s8751_s29 + $0xb8] sm:$0xff] %v4297_v13  ;;  %v9238_v6 = vld [vmem:[#allocation42_spill] sm:$0xff] }
 0x4b4   : > { %v6012_v61 = vpop.eup %6011  ;;  %v4300_v34 = vmul.f32 %v6010_v12, %v8601_v9  ;;  %4334 = vst [vmem:[%s8751_s29 + $0xc0] sm:$0xff] %v4298_v14 }
 0x4b5   : > { %v6014_v50 = vpop.eup %6013  ;;  %v4301_v28 = vmul.f32 %v6012_v61, %v9236_v16  ;;  %4335 = vst [vmem:[%s8751_s29 + $0xc8] sm:$0xff] %v4299_v41 }
 0x4b6   : > { %v6016_v36 = vpop.eup %6015  ;;  %v4302_v49 = vmul.f32 %v6014_v50, %v9237_v57  ;;  %4336 = vst [vmem:[%s8751_s29 + $0xd0] sm:$0xff] %v4300_v34 }
 0x4b7   : > { %v6018_v43 = vpop.eup %6017  ;;  %v4303_v8 = vmul.f32 %v6016_v36, %v9238_v6  ;;  %4337 = vst [vmem:[%s8751_s29 + $0xd8] sm:$0xff] %v4301_v28 }
 0x4b8   : > { %v6020_v7 = vpop.eup %6019  ;;  %v4304_v9 = vmul.f32 %v6018_v43, %v9239_v62  ;;  %4338 = vst [vmem:[%s8751_s29 + $0xe0] sm:$0xff] %v4302_v49 }
 0x4b9   : > { %v6022_v26 = vpop.eup %6021  ;;  %v4305_v29 = vmul.f32 %v6020_v7, %v9240_v38  ;;  %4339 = vst [vmem:[%s8751_s29 + $0xe8] sm:$0xff] %v4303_v8 }
 0x4ba   : > { %v6024_v23 = vpop.eup %6023  ;;  %v4306_v60 = vmul.f32 %v6022_v26, %v9241_v25  ;;  %4340 = vst [vmem:[%s8751_s29 + $0xf0] sm:$0xff] %v4304_v9 }
 0x4bb   : > { %v6026_v1 = vpop.eup %6025  ;;  %v4307_v39 = vmul.f32 %v6024_v23, %v9242_v24  ;;  %4341 = vst [vmem:[%s8751_s29 + $0xf8] sm:$0xff] %v4305_v29 }
 0x4bc   : > { %v6028_v2 = vpop.eup %6027  ;;  %v4308_v15 = vmul.f32 %v6026_v1, %v9243_v33  ;;  %4342 = vst [vmem:[%s8751_s29 + $0x100] sm:$0xff] %v4306_v60 }
 0x4bd   : > { %v4309_v31 = vmul.f32 %v6028_v2, %v9244_v42  ;;  %4343 = vst [vmem:[%s8751_s29 + $0x108] sm:$0xff] %v4307_v39 }
 0x4be   : > { %4344 = vst [vmem:[%s8751_s29 + $0x110] sm:$0xff] %v4308_v15 }
 0x4bf   : > { %4345 = vst [vmem:[%s8751_s29 + $0x118] sm:$0xff] %v4309_v31 }
 0x4c0   : > { %6244 = shalt.err (!%p6241_p12)
}
 0x4c1   : > { %s6245_s22 = scalar_lea.hbm %s8841_s1, 4608  ;;  %s6249_s11 = scalar_lea.hbm %s8898_s7, 9216 }
 0x4c2   : > { %p6246_p2 = scmp.ne.s32.totalorder %s8841_s1, %s6245_s22  ;;  %p6250_p0 = scmp.lt.u32.totalorder %s8841_s1, %s8898_s7 }
 0x4c3   : > { %p6251_p7 = scmp.lt.u32.totalorder %s6249_s11, %s6245_s22  ;;  %p6253_p6 = scmp.lt.u32.totalorder %s6245_s22, %s8841_s1 }
 0x4c4   : > { %p6247_p13 = pnand %p6246_p2, %p9245_p3 }
 0x4c5   : > { %p6252_p9 = por %p6251_p7, %p6250_p0 }
 0x4c6   : > { %p6248_p8 = pneg %p6247_p13 }
 0x4c7   : > { %p6254_p1 = por %p6253_p6, %p6252_p9 }
 0x4c9   : > { %p6255_p5 = pnand %p6254_p1, %p6248_p8 }
 0x4cb   : > { %6258 = shalt.err (!%p6255_p5)
}
 0x4cc   : > { %s6327_s8 = smov 128   ;;  %s6328_s12 = smov 8  }
 0x4cd   : > { %5798 = dma.vmem_to_hbm [thread:$0]  (%p9245_p3), %s8843_s26, 4608, %s8841_s1, %s4347_s17, %s6327_s8, %s6327_s8, %s6328_s12  }
 0x4ce PF: > { %s9246_s13 = sld [smem:[#allocation23_spill]]  ;;  %s4375_s16 = sand.u32 1, %s6297_s24  }
 0x4cf   : > { %p9248_p10 = scmp.ge.s32.totalorder %s6309_s27, 2  ;;  %s4376_s29 = scalar_lea.sflag [#allocation4], %s4375_s16 }
 0x4d4   : > { %p9247_p11 = scmp.ne.s32.totalorder %s9246_s13, 0 }
 0x4d6   : > { %p5824_p4 = pnand %p9248_p10, %p9247_p11 }
 0x4d8   : > { %6292 = dma.done.wait (!%p5824_p4), %s4376_s29, 4608  }
 0x4d9   : > { %6294 = vsyncadd (!%p5824_p4), %s4376_s29, 4294962688  ;;  %s9249_s27 = sld [smem:[#allocation21_spill]]  ;;  %s9250_s23 = sld [smem:[#allocation20_spill]] }
 0x4da   : > { %s9251_s26 = sld [smem:[#allocation22_spill]]  ;;  %s9252_s24 = smov %s6301_s25 }
 0x4df   : > { %p25_p12 = scmp.ge.s32.totalorder %s9249_s27, 4   ;;  %s9253_s25 = smov %s9250_s23 }
 0x4e1   :  { %27 = sbr.rel (!%p25_p12) target bundleno = 13 (0xd), region = 133 }
 0x4e8   :  { %4381 = vsyncpa [#allocation3], 1 }
 0x4e9   :  { %4383 = vsyncpa [#allocation3 + $0x1], 1 }
 0x4ea   :  { %4384 = vsyncpa [#allocation6], 1 }
 0x4eb   :  { %4385 = vsyncpa [#allocation9], 1 }
 0x4ec   :  { %4386 = vsyncpa [#allocation12], 1 }
 0x4ed   :  { %4388 = vsyncpa [#allocation12 + $0x1], 1 }
 0x4ee   :  { %4389 = vsyncpa [#allocation4], 1 }
 0x4ef   :  { %4391 = vsyncpa [#allocation4 + $0x1], 1 }

</bundles_post_ra>
